<compile_context>
chip_gen: v7x
topology: tpu7x:2x2x1
jax: 0.10.0
libtpu: 0.0.40
codegen_flags: <defaults>
</compile_context>

<pallas_src>
import jax
import jax.numpy as jnp
from jax.experimental import pallas as pl
from jax.experimental.pallas import tpu as pltpu

I_DIM = 28 * 28      # 784  (PyTorch input features)
N_DIM = 500          # hidden width
C_DIM = 10           # classes

I_PAD = 896          # 784 -> 7 * 128  (lane-aligned contraction dim)
N_PAD = 512          # 500 -> 4 * 128  (MXU-friendly hidden width)
C_PAD = 128          # 10  -> 128      (lane-dense output stores)

_NEG_BIG = -1e30     # mask value for padded class lanes


def _round_up(x, m):
    return (x + m - 1) // m * m


def _mlp_kernel(x_ref,
                w1_ref, b1_ref,
                w2_ref, b2_ref,
                w3_ref, b3_ref,
                w4_ref, b4_ref,
                w5_ref, b5_ref,
                o_ref):
    """One batch tile of the fused 5-layer MLP (+ ReLU + LogSoftmax).

    Weights/biases have constant index_maps so they are copied to VMEM once and
    stay resident across all batch-tile grid steps. All matmuls accumulate in
    f32 on the MXU regardless of the weight storage dtype; bias add, ReLU and
    the log-softmax epilogue run in f32 (keeps v5e's VPU on native f32).
    """
    x = x_ref[...]

    def linear(h, w_ref, b_ref):
        y = jnp.dot(h.astype(w_ref.dtype), w_ref[...],
                    preferred_element_type=jnp.float32)
        return y + b_ref[...]

    h = jnp.maximum(linear(x, w1_ref, b1_ref), 0.0)
    h = jnp.maximum(linear(h, w2_ref, b2_ref), 0.0)
    h = jnp.maximum(linear(h, w3_ref, b3_ref), 0.0)
    h = jnp.maximum(linear(h, w4_ref, b4_ref), 0.0)

    logits = linear(h, w5_ref, b5_ref)                     # (TB, C_PAD), f32

    # Padded class lanes (>= C_DIM) must not contribute to the softmax.
    lane = jax.lax.broadcasted_iota(jnp.int32, logits.shape, dimension=1)
    logits = jnp.where(lane < C_DIM, logits, _NEG_BIG)

    # Numerically stable LogSoftmax over the class dimension.
    m = jnp.max(logits, axis=-1, keepdims=True)
    shifted = logits - m
    lse = jnp.log(jnp.sum(jnp.exp(shifted), axis=-1, keepdims=True))
    o_ref[...] = (shifted - lse).astype(o_ref.dtype)


def _pad2d(a, rows, cols):
    return jnp.pad(a, ((0, rows - a.shape[0]), (0, cols - a.shape[1])))


def mnist_mlp_forward(x, params, *, weight_dtype=jnp.float32, tb_max=512):
    """x: (B, 1, 28, 28) f32 (NCHW). Returns (B, 10) log-probabilities.

    weight_dtype: jnp.float32 (exact module semantics) or jnp.bfloat16
    (halves weight HBM traffic; f32 accumulation keeps the error small).
    """
    b = x.shape[0]
    x2d = x.reshape(b, I_DIM).astype(jnp.float32)          # == X.view(-1, 784)

    # Batch tile: multiple of 8 sublanes, capped so VMEM stays comfortable on
    # every generation (v7x: 64 MiB physical / 32 MiB default scoped).
    tb = min(tb_max, _round_up(max(b, 1), 8))
    b_pad = _round_up(b, tb)
    grid = (b_pad // tb,)

    x_p = _pad2d(x2d, b_pad, I_PAD).astype(weight_dtype)

    (w1, b1, w2, b2, w3, b3, w4, b4, w5, b5) = params
    w1p = _pad2d(w1, I_PAD, N_PAD).astype(weight_dtype)
    w2p = _pad2d(w2, N_PAD, N_PAD).astype(weight_dtype)
    w3p = _pad2d(w3, N_PAD, N_PAD).astype(weight_dtype)
    w4p = _pad2d(w4, N_PAD, N_PAD).astype(weight_dtype)
    w5p = _pad2d(w5, N_PAD, C_PAD).astype(weight_dtype)
    # Biases stay f32 (added after the f32 accumulation).
    b1p = _pad2d(b1, 1, N_PAD).astype(jnp.float32)
    b2p = _pad2d(b2, 1, N_PAD).astype(jnp.float32)
    b3p = _pad2d(b3, 1, N_PAD).astype(jnp.float32)
    b4p = _pad2d(b4, 1, N_PAD).astype(jnp.float32)
    b5p = _pad2d(b5, 1, C_PAD).astype(jnp.float32)

    def _const(shape):
        # Same block for every grid step -> loaded once, VMEM resident.
        return pl.BlockSpec(shape, lambda i: (0, 0))

    in_specs = [
        pl.BlockSpec((tb, I_PAD), lambda i: (i, 0)),        # x batch tile
        _const((I_PAD, N_PAD)), _const((1, N_PAD)),
        _const((N_PAD, N_PAD)), _const((1, N_PAD)),
        _const((N_PAD, N_PAD)), _const((1, N_PAD)),
        _const((N_PAD, N_PAD)), _const((1, N_PAD)),
        _const((N_PAD, C_PAD)), _const((1, C_PAD)),
    ]
    out_spec = pl.BlockSpec((tb, C_PAD), lambda i: (i, 0))

    weight_bytes = sum(
        int(a.size) * a.dtype.itemsize
        for a in (w1p, b1p, w2p, b2p, w3p, b3p, w4p, b4p, w5p, b5p))
    flops = 2 * b_pad * (I_PAD * N_PAD + 3 * N_PAD * N_PAD + N_PAD * C_PAD)
    cost = pl.CostEstimate(
        flops=flops,
        transcendentals=b_pad * C_PAD,
        bytes_accessed=weight_bytes
        + int(x_p.size) * x_p.dtype.itemsize
        + b_pad * C_PAD * 4,
    )

    out = pl.pallas_call(
        _mlp_kernel,
        out_shape=jax.ShapeDtypeStruct((b_pad, C_PAD), jnp.float32),
        grid=grid,
        in_specs=in_specs,
        out_specs=out_spec,
        compiler_params=pltpu.CompilerParams(
            dimension_semantics=("parallel",),
            vmem_limit_bytes=64 * 1024 * 1024,
        ),
        cost_estimate=cost,
    )(x_p, w1p, b1p, w2p, b2p, w3p, b3p, w4p, b4p, w5p, b5p)

    return out[:b, :C_DIM]


def init_params(key):
    """Deterministic synthetic parameters (PyTorch-Linear-like uniform init).

    Weights stored as (in, out) so the kernel computes y = x @ W + b, which is
    identical to PyTorch's y = x @ W_pt.T + b. Biases stored as (1, out).
    """
    def linear_init(k, fan_in, fan_out):
        kw, kb = jax.random.split(k)
        bound = 1.0 / jnp.sqrt(fan_in)
        w = jax.random.uniform(kw, (fan_in, fan_out), jnp.float32, -bound, bound)
        bias = jax.random.uniform(kb, (1, fan_out), jnp.float32, -bound, bound)
        return w, bias

    k1, k2, k3, k4, k5 = jax.random.split(key, 5)
    w1, b1 = linear_init(k1, I_DIM, N_DIM)
    w2, b2 = linear_init(k2, N_DIM, N_DIM)
    w3, b3 = linear_init(k3, N_DIM, N_DIM)
    w4, b4 = linear_init(k4, N_DIM, N_DIM)
    w5, b5 = linear_init(k5, N_DIM, C_DIM)
    return (w1, b1, w2, b2, w3, b3, w4, b4, w5, b5)


def _reference_forward(x, params):
    """Pure-JAX f32 reference (exact PyTorch module semantics)."""
    b = x.shape[0]
    h = x.reshape(b, I_DIM).astype(jnp.float32)
    (w1, b1, w2, b2, w3, b3, w4, b4, w5, b5) = params
    h = jnp.maximum(h @ w1 + b1, 0.0)
    h = jnp.maximum(h @ w2 + b2, 0.0)
    h = jnp.maximum(h @ w3 + b3, 0.0)
    h = jnp.maximum(h @ w4 + b4, 0.0)
    logits = h @ w5 + b5
    return jax.nn.log_softmax(logits, axis=1)


if __name__ == "__main__":
    key = jax.random.PRNGKey(0)
    k_params, k_x = jax.random.split(key)

    params = init_params(k_params)
    x = jax.random.normal(k_x, (2, 1, 28, 28), dtype=jnp.float32)  # NCHW, B=2

    ref = _reference_forward(x, params)

    # f32 weights: exact module semantics.
    out_f32 = jax.block_until_ready(
        mnist_mlp_forward(x, params, weight_dtype=jnp.float32))
    assert out_f32.shape == (2, C_DIM)
    assert jnp.allclose(out_f32, ref, atol=1e-3, rtol=1e-3), "f32 mismatch vs reference"
    # log-probabilities normalize.
    assert jnp.allclose(jnp.sum(jnp.exp(out_f32), axis=-1), 1.0, atol=1e-4)

    # bf16 weights: ~2x less weight HBM traffic (the kernel is HBM-bound at
    # small batch). f32 accumulation keeps logits close to the f32 reference.
    out_bf16 = jax.block_until_ready(
        mnist_mlp_forward(x, params, weight_dtype=jnp.bfloat16))
    assert out_bf16.shape == (2, C_DIM)
    assert jnp.allclose(out_bf16, ref, atol=1e-1, rtol=1e-1), "bf16 mismatch vs reference"

    print("KERNEL_OK")
</pallas_src>

<mosaic_0001>
module attributes {stable_mosaic.version = 11 : i64} {
  func.func @_mlp_kernel(%arg0: i32, %arg1: memref<8x896xf32, #tpu.memory_space<vmem>>, %arg2: memref<896x512xf32, #tpu.memory_space<vmem>>, %arg3: memref<1x512xf32, #tpu.memory_space<vmem>>, %arg4: memref<512x512xf32, #tpu.memory_space<vmem>>, %arg5: memref<1x512xf32, #tpu.memory_space<vmem>>, %arg6: memref<512x512xf32, #tpu.memory_space<vmem>>, %arg7: memref<1x512xf32, #tpu.memory_space<vmem>>, %arg8: memref<512x512xf32, #tpu.memory_space<vmem>>, %arg9: memref<1x512xf32, #tpu.memory_space<vmem>>, %arg10: memref<512x128xf32, #tpu.memory_space<vmem>>, %arg11: memref<1x128xf32, #tpu.memory_space<vmem>>, %arg12: memref<8x128xf32, #tpu.memory_space<vmem>>) attributes {dimension_semantics = [#tpu.dimension_semantics<parallel>], iteration_bounds = array<i64: 1>, scalar_prefetch = 0 : i64, scratch_operands = 0 : i64, tpu.core_type = #tpu.core_type<tc>, window_params = [{transform_indices = @transform_0, window_bounds = array<i64: 8, 896>}, {pipeline_mode = #tpu.pipeline_mode<synchronous>, transform_indices = @transform_1, window_bounds = array<i64: 896, 512>}, {pipeline_mode = #tpu.pipeline_mode<synchronous>, transform_indices = @transform_2, window_bounds = array<i64: 1, 512>}, {pipeline_mode = #tpu.pipeline_mode<synchronous>, transform_indices = @transform_3, window_bounds = array<i64: 512, 512>}, {pipeline_mode = #tpu.pipeline_mode<synchronous>, transform_indices = @transform_4, window_bounds = array<i64: 1, 512>}, {pipeline_mode = #tpu.pipeline_mode<synchronous>, transform_indices = @transform_5, window_bounds = array<i64: 512, 512>}, {pipeline_mode = #tpu.pipeline_mode<synchronous>, transform_indices = @transform_6, window_bounds = array<i64: 1, 512>}, {pipeline_mode = #tpu.pipeline_mode<synchronous>, transform_indices = @transform_7, window_bounds = array<i64: 512, 512>}, {pipeline_mode = #tpu.pipeline_mode<synchronous>, transform_indices = @transform_8, window_bounds = array<i64: 1, 512>}, {pipeline_mode = #tpu.pipeline_mode<synchronous>, transform_indices = @transform_9, window_bounds = array<i64: 512, 128>}, {pipeline_mode = #tpu.pipeline_mode<synchronous>, transform_indices = @transform_10, window_bounds = array<i64: 1, 128>}, {transform_indices = @transform_11, window_bounds = array<i64: 8, 128>}]} {
    %c0 = arith.constant 0 : index
    %c0_0 = arith.constant 0 : index
    %0 = vector.load %arg1[%c0, %c0_0] : memref<8x896xf32, #tpu.memory_space<vmem>>, vector<8x896xf32>
    %c0_1 = arith.constant 0 : index
    %c0_2 = arith.constant 0 : index
    %1 = vector.load %arg2[%c0_1, %c0_2] : memref<896x512xf32, #tpu.memory_space<vmem>>, vector<896x512xf32>
    %cst = arith.constant dense<0.000000e+00> : vector<8x512xf32>
    %2 = tpu.matmul %0, %1, %cst {dimension_numbers = #tpu.dot_dimension_numbers<[1], [0], [0], [1], [0, 0, 1, 1], [], []>} : vector<8x896xf32>, vector<896x512xf32>, vector<8x512xf32> -> vector<8x512xf32>
    %c0_3 = arith.constant 0 : index
    %c0_4 = arith.constant 0 : index
    %3 = vector.load %arg3[%c0_3, %c0_4] : memref<1x512xf32, #tpu.memory_space<vmem>>, vector<1x512xf32>
    %4 = vector.broadcast %3 : vector<1x512xf32> to vector<8x512xf32>
    %5 = arith.addf %2, %4 : vector<8x512xf32>
    %cst_5 = arith.constant 0.000000e+00 : f32
    %6 = vector.broadcast %cst_5 : f32 to vector<8x512xf32>
    %7 = arith.maximumf %5, %6 : vector<8x512xf32>
    %c0_6 = arith.constant 0 : index
    %c0_7 = arith.constant 0 : index
    %8 = vector.load %arg4[%c0_6, %c0_7] : memref<512x512xf32, #tpu.memory_space<vmem>>, vector<512x512xf32>
    %cst_8 = arith.constant dense<0.000000e+00> : vector<8x512xf32>
    %9 = tpu.matmul %7, %8, %cst_8 {dimension_numbers = #tpu.dot_dimension_numbers<[1], [0], [0], [1], [0, 0, 1, 1], [], []>} : vector<8x512xf32>, vector<512x512xf32>, vector<8x512xf32> -> vector<8x512xf32>
    %c0_9 = arith.constant 0 : index
    %c0_10 = arith.constant 0 : index
    %10 = vector.load %arg5[%c0_9, %c0_10] : memref<1x512xf32, #tpu.memory_space<vmem>>, vector<1x512xf32>
    %11 = vector.broadcast %10 : vector<1x512xf32> to vector<8x512xf32>
    %12 = arith.addf %9, %11 : vector<8x512xf32>
    %cst_11 = arith.constant 0.000000e+00 : f32
    %13 = vector.broadcast %cst_11 : f32 to vector<8x512xf32>
    %14 = arith.maximumf %12, %13 : vector<8x512xf32>
    %c0_12 = arith.constant 0 : index
    %c0_13 = arith.constant 0 : index
    %15 = vector.load %arg6[%c0_12, %c0_13] : memref<512x512xf32, #tpu.memory_space<vmem>>, vector<512x512xf32>
    %cst_14 = arith.constant dense<0.000000e+00> : vector<8x512xf32>
    %16 = tpu.matmul %14, %15, %cst_14 {dimension_numbers = #tpu.dot_dimension_numbers<[1], [0], [0], [1], [0, 0, 1, 1], [], []>} : vector<8x512xf32>, vector<512x512xf32>, vector<8x512xf32> -> vector<8x512xf32>
    %c0_15 = arith.constant 0 : index
    %c0_16 = arith.constant 0 : index
    %17 = vector.load %arg7[%c0_15, %c0_16] : memref<1x512xf32, #tpu.memory_space<vmem>>, vector<1x512xf32>
    %18 = vector.broadcast %17 : vector<1x512xf32> to vector<8x512xf32>
    %19 = arith.addf %16, %18 : vector<8x512xf32>
    %cst_17 = arith.constant 0.000000e+00 : f32
    %20 = vector.broadcast %cst_17 : f32 to vector<8x512xf32>
    %21 = arith.maximumf %19, %20 : vector<8x512xf32>
    %c0_18 = arith.constant 0 : index
    %c0_19 = arith.constant 0 : index
    %22 = vector.load %arg8[%c0_18, %c0_19] : memref<512x512xf32, #tpu.memory_space<vmem>>, vector<512x512xf32>
    %cst_20 = arith.constant dense<0.000000e+00> : vector<8x512xf32>
    %23 = tpu.matmul %21, %22, %cst_20 {dimension_numbers = #tpu.dot_dimension_numbers<[1], [0], [0], [1], [0, 0, 1, 1], [], []>} : vector<8x512xf32>, vector<512x512xf32>, vector<8x512xf32> -> vector<8x512xf32>
    %c0_21 = arith.constant 0 : index
    %c0_22 = arith.constant 0 : index
    %24 = vector.load %arg9[%c0_21, %c0_22] : memref<1x512xf32, #tpu.memory_space<vmem>>, vector<1x512xf32>
    %25 = vector.broadcast %24 : vector<1x512xf32> to vector<8x512xf32>
    %26 = arith.addf %23, %25 : vector<8x512xf32>
    %cst_23 = arith.constant 0.000000e+00 : f32
    %27 = vector.broadcast %cst_23 : f32 to vector<8x512xf32>
    %28 = arith.maximumf %26, %27 : vector<8x512xf32>
    %c0_24 = arith.constant 0 : index
    %c0_25 = arith.constant 0 : index
    %29 = vector.load %arg10[%c0_24, %c0_25] : memref<512x128xf32, #tpu.memory_space<vmem>>, vector<512x128xf32>
    %cst_26 = arith.constant dense<0.000000e+00> : vector<8x128xf32>
    %30 = tpu.matmul %28, %29, %cst_26 {dimension_numbers = #tpu.dot_dimension_numbers<[1], [0], [0], [1], [0, 0, 1, 1], [], []>} : vector<8x512xf32>, vector<512x128xf32>, vector<8x128xf32> -> vector<8x128xf32>
    %c0_27 = arith.constant 0 : index
    %c0_28 = arith.constant 0 : index
    %31 = vector.load %arg11[%c0_27, %c0_28] : memref<1x128xf32, #tpu.memory_space<vmem>>, vector<1x128xf32>
    %32 = vector.broadcast %31 : vector<1x128xf32> to vector<8x128xf32>
    %33 = arith.addf %30, %32 : vector<8x128xf32>
    %34 = tpu.iota {dimensions = array<i32: 1>} : vector<8x128xi32>
    %c10_i32 = arith.constant 10 : i32
    %35 = vector.broadcast %c10_i32 : i32 to vector<8x128xi32>
    %36 = arith.cmpi slt, %34, %35 : vector<8x128xi32>
    %cst_29 = arith.constant -1.000000e+30 : f32
    %37 = vector.broadcast %cst_29 : f32 to vector<8x128xf32>
    %38 = arith.select %36, %33, %37 : vector<8x128xi1>, vector<8x128xf32>
    %cst_30 = arith.constant dense<0xFF800000> : vector<8xf32>
    %39 = vector.multi_reduction <maximumf>, %38, %cst_30 [1] : vector<8x128xf32> to vector<8xf32>
    %40 = vector.shape_cast %39 : vector<8xf32> to vector<8x1xf32>
    %41 = vector.broadcast %40 : vector<8x1xf32> to vector<8x128xf32>
    %42 = arith.subf %38, %41 : vector<8x128xf32>
    %43 = math.exp %42 : vector<8x128xf32>
    %cst_31 = arith.constant dense<0.000000e+00> : vector<8xf32>
    %44 = vector.multi_reduction <add>, %43, %cst_31 [1] : vector<8x128xf32> to vector<8xf32>
    %45 = vector.shape_cast %44 : vector<8xf32> to vector<8x1xf32>
    %46 = math.log %45 : vector<8x1xf32>
    %47 = vector.broadcast %46 : vector<8x1xf32> to vector<8x128xf32>
    %48 = arith.subf %42, %47 : vector<8x128xf32>
    %c0_32 = arith.constant 0 : index
    %c0_33 = arith.constant 0 : index
    %49 = vector.load %arg12[%c0_32, %c0_33] : memref<8x128xf32, #tpu.memory_space<vmem>>, vector<8x128xf32>
    tpu.vector_store %arg12[%c0_32, %c0_33], %48 {strides = array<i32>} : memref<8x128xf32, #tpu.memory_space<vmem>>, vector<8x128xf32>,
    return
  }
  func.func @transform_0(%arg0: i32) -> (i32, i32) {
    %c0_i32 = arith.constant 0 : i32
    %c0_i32_0 = arith.constant 0 : i32
    return %arg0, %c0_i32 : i32, i32
  }
  func.func @transform_1(%arg0: i32) -> (i32, i32) {
    %c0_i32 = arith.constant 0 : i32
    %c0_i32_0 = arith.constant 0 : i32
    %c0_i32_1 = arith.constant 0 : i32
    return %c0_i32, %c0_i32_0 : i32, i32
  }
  func.func @transform_2(%arg0: i32) -> (i32, i32) {
    %c0_i32 = arith.constant 0 : i32
    %c0_i32_0 = arith.constant 0 : i32
    %c0_i32_1 = arith.constant 0 : i32
    return %c0_i32, %c0_i32_0 : i32, i32
  }
  func.func @transform_3(%arg0: i32) -> (i32, i32) {
    %c0_i32 = arith.constant 0 : i32
    %c0_i32_0 = arith.constant 0 : i32
    %c0_i32_1 = arith.constant 0 : i32
    return %c0_i32, %c0_i32_0 : i32, i32
  }
  func.func @transform_4(%arg0: i32) -> (i32, i32) {
    %c0_i32 = arith.constant 0 : i32
    %c0_i32_0 = arith.constant 0 : i32
    %c0_i32_1 = arith.constant 0 : i32
    return %c0_i32, %c0_i32_0 : i32, i32
  }
  func.func @transform_5(%arg0: i32) -> (i32, i32) {
    %c0_i32 = arith.constant 0 : i32
    %c0_i32_0 = arith.constant 0 : i32
    %c0_i32_1 = arith.constant 0 : i32
    return %c0_i32, %c0_i32_0 : i32, i32
  }
  func.func @transform_6(%arg0: i32) -> (i32, i32) {
    %c0_i32 = arith.constant 0 : i32
    %c0_i32_0 = arith.constant 0 : i32
    %c0_i32_1 = arith.constant 0 : i32
    return %c0_i32, %c0_i32_0 : i32, i32
  }
  func.func @transform_7(%arg0: i32) -> (i32, i32) {
    %c0_i32 = arith.constant 0 : i32
    %c0_i32_0 = arith.constant 0 : i32
    %c0_i32_1 = arith.constant 0 : i32
    return %c0_i32, %c0_i32_0 : i32, i32
  }
  func.func @transform_8(%arg0: i32) -> (i32, i32) {
    %c0_i32 = arith.constant 0 : i32
    %c0_i32_0 = arith.constant 0 : i32
    %c0_i32_1 = arith.constant 0 : i32
    return %c0_i32, %c0_i32_0 : i32, i32
  }
  func.func @transform_9(%arg0: i32) -> (i32, i32) {
    %c0_i32 = arith.constant 0 : i32
    %c0_i32_0 = arith.constant 0 : i32
    %c0_i32_1 = arith.constant 0 : i32
    return %c0_i32, %c0_i32_0 : i32, i32
  }
  func.func @transform_10(%arg0: i32) -> (i32, i32) {
    %c0_i32 = arith.constant 0 : i32
    %c0_i32_0 = arith.constant 0 : i32
    %c0_i32_1 = arith.constant 0 : i32
    return %c0_i32, %c0_i32_0 : i32, i32
  }
  func.func @transform_11(%arg0: i32) -> (i32, i32) {
    %c0_i32 = arith.constant 0 : i32
    %c0_i32_0 = arith.constant 0 : i32
    return %arg0, %c0_i32 : i32, i32
  }
}

</mosaic_0001>

<bundles_post_ra>
// kernel: tpu_custom_call.1
= control target key start
LH: loop header
LB: loop body
LE: loop exit
PB: predicated region body
PF: predicated region fallthrough
CT: control target
= control target key end

     0   :  { %16 = vsyncpa [#allocation3], 0  ;;  %s5151_s0 = inlined_call_operand.hbm [shape: f32[8,896], index: 0, kind: input, shape index: {}]   ;;  %s5152_s1 = inlined_call_operand.hbm [shape: f32[896,512], index: 1, kind: input, shape index: {}]   ;;  %s5153_s2 = inlined_call_operand.hbm [shape: f32[1,512], index: 2, kind: input, shape index: {}]   ;;  %s5154_s3 = inlined_call_operand.hbm [shape: f32[512,512], index: 3, kind: input, shape index: {}]   ;;  %s5155_s4 = inlined_call_operand.hbm [shape: f32[1,512], index: 4, kind: input, shape index: {}]   ;;  %s5156_s5 = inlined_call_operand.hbm [shape: f32[512,512], index: 5, kind: input, shape index: {}]   ;;  %s5157_s6 = inlined_call_operand.hbm [shape: f32[1,512], index: 6, kind: input, shape index: {}]   ;;  %s5158_s7 = inlined_call_operand.hbm [shape: f32[512,512], index: 7, kind: input, shape index: {}]   ;;  %s5159_s8 = inlined_call_operand.hbm [shape: f32[1,512], index: 8, kind: input, shape index: {}]   ;;  %s5160_s9 = inlined_call_operand.hbm [shape: f32[512,128], index: 9, kind: input, shape index: {}]   ;;  %s5161_s10 = inlined_call_operand.hbm [shape: f32[1,128], index: 10, kind: input, shape index: {}]   ;;  %s5162_s11 = inlined_call_operand.hbm [shape: f32[8,128], index: 11, kind: output, shape index: {}]  }
   0x1   :  { %17 = vsyncpa [#allocation6], 0 }
   0x2   :  { %18 = vsyncpa [#allocation9], 0 }
   0x3   :  { %19 = vsyncpa [#allocation12], 0 }
   0x4   :  { %20 = vsyncpa [#allocation15], 0 }
   0x5   :  { %21 = vsyncpa [#allocation18], 0 }
   0x6   :  { %22 = vsyncpa [#allocation4], 0  ;;  %s4859_s17 = smov [#allocation5]   ;;  %s4581_s21 = scalar_lea.hbm %s5152_s1, 57344 }
   0x7   :  { %s38_s18 = sshll.u32 %s4859_s17, 4  ;;  %p4582_p0 = scmp.ne.s32.totalorder %s5152_s1, %s4581_s21  ;;  %s39_s18 = int_to_ptr.vmem [resolvable:$true] %s38_s18 }
   0x8   :  { %p4585_p1 = scmp.lt.u32.totalorder %s4581_s21, %s5152_s1 }
   0xa   :  { %p4587_p2 = pnand %p4585_p1, %p4582_p0 }
   0xc   :  { %4590 = shalt.err (!%p4587_p2)
}
   0xd   :  { %s4591_s26 = scalar_lea.vmem %s39_s18, 57344  ;;  %p4596_p4 = scmp.lt.s32.totalorder %s39_s18, %s39_s18 }
   0xe   :  { %p4592_p3 = scmp.ne.s32.totalorder %s39_s18, %s4591_s26  ;;  %p4597_p5 = scmp.lt.s32.totalorder %s4591_s26, %s4591_s26 }
  0x10   :  { %p4598_p6 = por %p4597_p5, %p4596_p4 }
  0x12   :  { %p4599_p7 = pnand %p4598_p6, %p4592_p3 }
  0x14   :  { %4602 = shalt.err (!%p4599_p7)
}
  0x15   :  { %s4860_s27 = smov 512   ;;  %s4861_s28 = smov 32  }
  0x16   :  { %44 = dma.hbm_to_vmem [thread:$0]  %s5152_s1, 57344, %s39_s18, [#allocation6], %s4860_s27, %s4860_s27, %s4861_s28  }
  0x17   :  { %s4862_s12 = smov [#allocation8]   ;;  %s4863_s14 = smov [#allocation11]  }
  0x18   :  { %s60_s13 = sshll.u32 %s4862_s12, 4  ;;  %s82_s15 = sshll.u32 %s4863_s14, 4  ;;  %s61_s13 = int_to_ptr.vmem [resolvable:$true] %s60_s13  ;;  %s83_s15 = int_to_ptr.vmem [resolvable:$true] %s82_s15 }
  0x19   :  { %s4603_s19 = scalar_lea.hbm %s5154_s3, 32768 }
  0x1a   :  { %p4604_p8 = scmp.ne.s32.totalorder %s5154_s3, %s4603_s19  ;;  %p4607_p9 = scmp.lt.u32.totalorder %s4603_s19, %s5154_s3 }
  0x1c   :  { %p4609_p10 = pnand %p4607_p9, %p4604_p8 }
  0x1e   :  { %4612 = shalt.err (!%p4609_p10)
}
  0x1f   :  { %s4613_s1 = scalar_lea.vmem %s61_s13, 32768  ;;  %p4618_p12 = scmp.lt.s32.totalorder %s61_s13, %s61_s13 }
  0x20   :  { %p4614_p11 = scmp.ne.s32.totalorder %s61_s13, %s4613_s1  ;;  %p4619_p13 = scmp.lt.s32.totalorder %s4613_s1, %s4613_s1 }
  0x22   :  { %p4620_p0 = por %p4619_p13, %p4618_p12 }
  0x24   :  { %p4621_p1 = pnand %p4620_p0, %p4614_p11 }
  0x26   :  { %4624 = shalt.err (!%p4621_p1)
}
  0x27   :  { %66 = dma.hbm_to_vmem [thread:$0]  %s5154_s3, 32768, %s61_s13, [#allocation9], %s4860_s27, %s4860_s27, %s4861_s28  }
  0x28   :  { %s4625_s29 = scalar_lea.hbm %s5156_s5, 32768 }
  0x29   :  { %p4626_p2 = scmp.ne.s32.totalorder %s5156_s5, %s4625_s29  ;;  %p4629_p3 = scmp.lt.u32.totalorder %s4625_s29, %s5156_s5 }
  0x2b   :  { %p4631_p4 = pnand %p4629_p3, %p4626_p2 }
  0x2d   :  { %4634 = shalt.err (!%p4631_p4)
}
  0x2e   :  { %s4635_s17 = scalar_lea.vmem %s83_s15, 32768  ;;  %p4640_p6 = scmp.lt.s32.totalorder %s83_s15, %s83_s15 }
  0x2f   :  { %p4636_p5 = scmp.ne.s32.totalorder %s83_s15, %s4635_s17  ;;  %p4641_p7 = scmp.lt.s32.totalorder %s4635_s17, %s4635_s17 }
  0x31   :  { %p4642_p8 = por %p4641_p7, %p4640_p6 }
  0x33   :  { %p4643_p9 = pnand %p4642_p8, %p4636_p5 }
  0x35   :  { %4646 = shalt.err (!%p4643_p9)
}
  0x36   :  { %88 = dma.hbm_to_vmem [thread:$0]  %s5156_s5, 32768, %s83_s15, [#allocation12], %s4860_s27, %s4860_s27, %s4861_s28  }
  0x37   :  { %s4864_s19 = smov [#allocation14]   ;;  %s4865_s21 = smov [#allocation17]  }
  0x38   :  { %s104_s20 = sshll.u32 %s4864_s19, 4  ;;  %s126_s22 = sshll.u32 %s4865_s21, 4  ;;  %s105_s20 = int_to_ptr.vmem [resolvable:$true] %s104_s20  ;;  %s127_s22 = int_to_ptr.vmem [resolvable:$true] %s126_s22 }
  0x39   :  { %s4647_s18 = scalar_lea.hbm %s5158_s7, 32768 }
  0x3a   :  { %p4648_p10 = scmp.ne.s32.totalorder %s5158_s7, %s4647_s18  ;;  %p4651_p11 = scmp.lt.u32.totalorder %s4647_s18, %s5158_s7 }
  0x3c   :  { %p4653_p12 = pnand %p4651_p11, %p4648_p10 }
  0x3e   :  { %4656 = shalt.err (!%p4653_p12)
}
  0x3f   :  { %s4657_s5 = scalar_lea.vmem %s105_s20, 32768  ;;  %p4662_p0 = scmp.lt.s32.totalorder %s105_s20, %s105_s20 }
  0x40   :  { %p4658_p13 = scmp.ne.s32.totalorder %s105_s20, %s4657_s5  ;;  %p4663_p1 = scmp.lt.s32.totalorder %s4657_s5, %s4657_s5 }
  0x42   :  { %p4664_p2 = por %p4663_p1, %p4662_p0 }
  0x44   :  { %p4665_p3 = pnand %p4664_p2, %p4658_p13 }
  0x46   :  { %4668 = shalt.err (!%p4665_p3)
}
  0x47   :  { %110 = dma.hbm_to_vmem [thread:$0]  %s5158_s7, 32768, %s105_s20, [#allocation15], %s4860_s27, %s4860_s27, %s4861_s28  }
  0x48   :  { %s4669_s16 = scalar_lea.hbm %s5160_s9, 8192 }
  0x49   :  { %p4670_p4 = scmp.ne.s32.totalorder %s5160_s9, %s4669_s16  ;;  %p4673_p5 = scmp.lt.u32.totalorder %s4669_s16, %s5160_s9 }
  0x4b   :  { %p4675_p6 = pnand %p4673_p5, %p4670_p4 }
  0x4d   :  { %4678 = shalt.err (!%p4675_p6)
}
  0x4e   :  { %s4679_s21 = scalar_lea.vmem %s127_s22, 8192  ;;  %p4684_p8 = scmp.lt.s32.totalorder %s127_s22, %s127_s22 }
  0x4f   :  { %p4680_p7 = scmp.ne.s32.totalorder %s127_s22, %s4679_s21  ;;  %p4685_p9 = scmp.lt.s32.totalorder %s4679_s21, %s4679_s21 }
  0x51   :  { %p4686_p10 = por %p4685_p9, %p4684_p8 }
  0x53   :  { %p4687_p11 = pnand %p4686_p10, %p4680_p7 }
  0x55   :  { %4690 = shalt.err (!%p4687_p11)
}
  0x56   :  { %s4866_s7 = smov 128   ;;  %s4867_s27 = smov 8  }
  0x57   :  { %132 = dma.hbm_to_vmem [thread:$0]  %s5160_s9, 8192, %s127_s22, [#allocation18], %s4866_s7, %s4866_s7, %s4867_s27  }
  0x58   :  { %s4868_s23 = smov [#allocation2]   ;;  %s4869_s18 = smov [#allocation7]  }
  0x59   :  { %s29_s1 = sshll.u32 %s4868_s23, 4  ;;  %s51_s24 = sshll.u32 %s4869_s18, 4  ;;  %s30_s1 = int_to_ptr.vmem [resolvable:$true] %s29_s1  ;;  %s52_s24 = int_to_ptr.vmem [resolvable:$true] %s51_s24 }
  0x5a   :  { %s4691_s29 = scalar_lea.hbm %s5151_s0, 896 }
  0x5b   :  { %p4692_p12 = scmp.ne.s32.totalorder %s5151_s0, %s4691_s29  ;;  %p4695_p13 = scmp.lt.u32.totalorder %s4691_s29, %s5151_s0 }
  0x5d   :  { %p4697_p0 = pnand %p4695_p13, %p4692_p12 }
  0x5f   :  { %4700 = shalt.err (!%p4697_p0)
}
  0x60   :  { %s4701_s9 = scalar_lea.vmem %s30_s1, 896  ;;  %p4706_p2 = scmp.lt.s32.totalorder %s30_s1, %s30_s1 }
  0x61   :  { %p4702_p1 = scmp.ne.s32.totalorder %s30_s1, %s4701_s9  ;;  %p4707_p3 = scmp.lt.s32.totalorder %s4701_s9, %s4701_s9 }
  0x63   :  { %p4708_p4 = por %p4707_p3, %p4706_p2 }
  0x65   :  { %p4709_p5 = pnand %p4708_p4, %p4702_p1 }
  0x67   :  { %4712 = shalt.err (!%p4709_p5)
}
  0x68   :  { %32 = dma.hbm_to_vmem [thread:$0]  %s5151_s0, 896, %s30_s1, [#allocation3]  }
  0x69   :  { %s4713_s3 = scalar_lea.hbm %s5153_s2, 64 }
  0x6a   :  { %p4714_p6 = scmp.ne.s32.totalorder %s5153_s2, %s4713_s3  ;;  %p4717_p7 = scmp.lt.u32.totalorder %s4713_s3, %s5153_s2 }
  0x6c   :  { %p4719_p8 = pnand %p4717_p7, %p4714_p6 }
  0x6e   :  { %4722 = shalt.err (!%p4719_p8)
}
  0x6f   :  { %s4723_s27 = scalar_lea.vmem %s52_s24, 64  ;;  %p4728_p10 = scmp.lt.s32.totalorder %s52_s24, %s52_s24 }
  0x70   :  { %p4724_p9 = scmp.ne.s32.totalorder %s52_s24, %s4723_s27  ;;  %p4729_p11 = scmp.lt.s32.totalorder %s4723_s27, %s4723_s27 }
  0x72   :  { %p4730_p12 = por %p4729_p11, %p4728_p10 }
  0x74   :  { %p4731_p13 = pnand %p4730_p12, %p4724_p9 }
  0x76   :  { %4734 = shalt.err (!%p4731_p13)
}
  0x77   :  { %54 = dma.hbm_to_vmem [thread:$0]  %s5153_s2, 64, %s52_s24, [#allocation6]  }
  0x78   :  { %s4870_s20 = smov [#allocation10]   ;;  %s4871_s1 = smov [#allocation13]  }
  0x79   :  { %s73_s23 = sshll.u32 %s4870_s20, 4  ;;  %s95_s18 = sshll.u32 %s4871_s1, 4  ;;  %s74_s23 = int_to_ptr.vmem [resolvable:$true] %s73_s23  ;;  %s96_s18 = int_to_ptr.vmem [resolvable:$true] %s95_s18 }
  0x7a   :  { %s4735_s29 = scalar_lea.hbm %s5155_s4, 64 }
  0x7b   :  { %p4736_p0 = scmp.ne.s32.totalorder %s5155_s4, %s4735_s29  ;;  %p4739_p1 = scmp.lt.u32.totalorder %s4735_s29, %s5155_s4 }
  0x7d   :  { %p4741_p2 = pnand %p4739_p1, %p4736_p0 }
  0x7f   :  { %4744 = shalt.err (!%p4741_p2)
}
  0x80   :  { %s4745_s2 = scalar_lea.vmem %s74_s23, 64  ;;  %p4750_p4 = scmp.lt.s32.totalorder %s74_s23, %s74_s23 }
  0x81   :  { %p4746_p3 = scmp.ne.s32.totalorder %s74_s23, %s4745_s2  ;;  %p4751_p5 = scmp.lt.s32.totalorder %s4745_s2, %s4745_s2 }
  0x83   :  { %p4752_p6 = por %p4751_p5, %p4750_p4 }
  0x85   :  { %p4753_p7 = pnand %p4752_p6, %p4746_p3 }
  0x87   :  { %4756 = shalt.err (!%p4753_p7)
}
  0x88   :  { %76 = dma.hbm_to_vmem [thread:$0]  %s5155_s4, 64, %s74_s23, [#allocation9]  }
  0x89   :  { %s4757_s16 = scalar_lea.hbm %s5157_s6, 64 }
  0x8a   :  { %p4758_p8 = scmp.ne.s32.totalorder %s5157_s6, %s4757_s16  ;;  %p4761_p9 = scmp.lt.u32.totalorder %s4757_s16, %s5157_s6 }
  0x8c   :  { %p4763_p10 = pnand %p4761_p9, %p4758_p8 }
  0x8e   :  { %4766 = shalt.err (!%p4763_p10)
}
  0x8f   :  { %s4767_s21 = scalar_lea.vmem %s96_s18, 64  ;;  %p4772_p12 = scmp.lt.s32.totalorder %s96_s18, %s96_s18 }
  0x90   :  { %p4768_p11 = scmp.ne.s32.totalorder %s96_s18, %s4767_s21  ;;  %p4773_p13 = scmp.lt.s32.totalorder %s4767_s21, %s4767_s21 }
  0x92   :  { %p4774_p0 = por %p4773_p13, %p4772_p12 }
  0x94   :  { %p4775_p1 = pnand %p4774_p0, %p4768_p11 }
  0x96   :  { %4778 = shalt.err (!%p4775_p1)
}
  0x97   :  { %98 = dma.hbm_to_vmem [thread:$0]  %s5157_s6, 64, %s96_s18, [#allocation12]  }
  0x98   :  { %s4872_s27 = smov [#allocation16]   ;;  %s4873_s28 = smov [#allocation19]  }
  0x99   :  { %s117_s0 = sshll.u32 %s4872_s27, 4  ;;  %s139_s20 = sshll.u32 %s4873_s28, 4  ;;  %s118_s0 = int_to_ptr.vmem [resolvable:$true] %s117_s0  ;;  %s140_s20 = int_to_ptr.vmem [resolvable:$true] %s139_s20 }
  0x9a   :  { %s4779_s25 = scalar_lea.hbm %s5159_s8, 64 }
  0x9b   :  { %p4780_p2 = scmp.ne.s32.totalorder %s5159_s8, %s4779_s25  ;;  %p4783_p3 = scmp.lt.u32.totalorder %s4779_s25, %s5159_s8 }
  0x9d   :  { %p4785_p4 = pnand %p4783_p3, %p4780_p2 }
  0x9f   :  { %4788 = shalt.err (!%p4785_p4)
}
  0xa0   :  { %s4789_s6 = scalar_lea.vmem %s118_s0, 64  ;;  %p4794_p6 = scmp.lt.s32.totalorder %s118_s0, %s118_s0 }
  0xa1   :  { %p4790_p5 = scmp.ne.s32.totalorder %s118_s0, %s4789_s6  ;;  %p4795_p7 = scmp.lt.s32.totalorder %s4789_s6, %s4789_s6 }
  0xa3   :  { %p4796_p8 = por %p4795_p7, %p4794_p6 }
  0xa5   :  { %p4797_p9 = pnand %p4796_p8, %p4790_p5 }
  0xa7   :  { %4800 = shalt.err (!%p4797_p9)
}
  0xa8   :  { %120 = dma.hbm_to_vmem [thread:$0]  %s5159_s8, 64, %s118_s0, [#allocation15]  }
  0xa9   :  { %s4801_s24 = scalar_lea.hbm %s5161_s10, 16 }
  0xaa   :  { %p4802_p10 = scmp.ne.s32.totalorder %s5161_s10, %s4801_s24  ;;  %p4805_p11 = scmp.lt.u32.totalorder %s4801_s24, %s5161_s10 }
  0xac   :  { %p4807_p12 = pnand %p4805_p11, %p4802_p10 }
  0xae   :  { %4810 = shalt.err (!%p4807_p12)
}
  0xaf   :  { %s4811_s17 = scalar_lea.vmem %s140_s20, 16  ;;  %s4815_s3 = scalar_lea.vmem %s140_s20, 32 }
  0xb0   :  { %p4812_p13 = scmp.ne.s32.totalorder %s140_s20, %s4811_s17  ;;  %p4816_p0 = scmp.lt.s32.totalorder %s140_s20, %s140_s20 }
  0xb1   :  { %p4817_p1 = scmp.lt.s32.totalorder %s4815_s3, %s4811_s17 }
  0xb3   :  { %p4818_p2 = por %p4817_p1, %p4816_p0 }
  0xb5   :  { %p4819_p3 = pnand %p4818_p2, %p4812_p13 }
  0xb7   :  { %4822 = shalt.err (!%p4819_p3)
}
  0xb8   :  { %142 = dma.hbm_to_vmem [thread:$0]  %s5161_s10, 16, %s140_s20, [#allocation18]  }
  0xb9   :  { %4845 = dma.done.wait [#allocation3], 896  }
  0xba   :  { %4846 = vsyncadd [#allocation3], 4294966400 }
  0xbb   :  { %4847 = dma.done.wait [#allocation6], 57408  }
  0xbc   :  { %4848 = vsyncadd [#allocation6], 4294909888 }
  0xbd   :  { %4849 = dma.done.wait [#allocation9], 32832  }
  0xbe   :  { %4850 = vsyncadd [#allocation9], 4294934464 }
  0xbf   :  { %4851 = dma.done.wait [#allocation12], 32832  }
  0xc0   :  { %4852 = vsyncadd [#allocation12], 4294934464 }
  0xc1   :  { %4853 = dma.done.wait [#allocation15], 32832  }
  0xc2   :  { %4854 = vsyncadd [#allocation15], 4294934464 }
  0xc3   :  { %4855 = dma.done.wait [#allocation18], 8208  }
  0xc4   :  { %4856 = vsyncadd [#allocation18], 4294959088  ;;  %v184_v0 = vld [vmem:[#allocation5 + $0x8] sm:$0xff]  ;;  %v186_v2 = vld [vmem:[#allocation5 + $0x18] sm:$0xff]  ;;  %s4875_s10 = smov [#allocation20]  }
  0xc5   :  { %v188_v1 = vld [vmem:[#allocation5 + $0x28] sm:$0xff]  ;;  %v190_v4 = vld [vmem:[#allocation5 + $0x38] sm:$0xff]  ;;  %v183_v5 = vld [vmem:[#allocation5] sm:$0xff]  ;;  %s3155_s19 = sshll.u32 %s4875_s10, 4  ;;  %s3156_s19 = int_to_ptr.vmem [resolvable:$true] %s3155_s19 }
  0xc6   :  { %v3240_v3 = vpack.c.bf16 %v188_v1, %v184_v0  ;;  %v187_v6 = vld [vmem:[#allocation5 + $0x20] sm:$0xff]  ;;  %v3464_v7 = vpack.c.bf16 %v190_v4, %v186_v2  ;;  %v185_v9 = vld [vmem:[#allocation5 + $0x10] sm:$0xff]  ;;  %v192_v11 = vld [vmem:[#allocation5 + $0x48] sm:$0xff]  ;;  %s4823_s21 = scalar_lea.vmem %s3156_s19, 128  ;;  %p4828_p5 = scmp.lt.s32.totalorder %s3156_s19, %s3156_s19 }
  0xc7   :  { %v3242_v8 = vpack.c.bf16 %v187_v6, %v183_v5  ;;  %v189_v10 = vld [vmem:[#allocation5 + $0x30] sm:$0xff]  ;;  %v196_v13 = vld [vmem:[#allocation5 + $0x68] sm:$0xff]  ;;  %v194_v14 = vld [vmem:[#allocation5 + $0x58] sm:$0xff]  ;;  %p4824_p4 = scmp.ne.s32.totalorder %s3156_s19, %s4823_s21  ;;  %p4829_p6 = scmp.lt.s32.totalorder %s4823_s21, %s4823_s21 }
  0xc8   :  { %3241 = vmatprep.subr.bf16.mxu0 %v3240_v3  ;;  %v3466_v12 = vpack.c.bf16 %v189_v10, %v185_v9  ;;  %v198_v15 = vld [vmem:[#allocation5 + $0x78] sm:$0xff]  ;;  %3465 = vmatprep.subr.bf16.mxu1 %v3464_v7  ;;  %v3244_v16 = vpack.c.bf16 %v196_v13, %v192_v11  ;;  %v191_v18 = vld [vmem:[#allocation5 + $0x40] sm:$0xff]  ;;  %v193_v20 = vld [vmem:[#allocation5 + $0x50] sm:$0xff] }
  0xc9   :  { %3243 = vmatpush1.bf16.msra.mxu0 %v3242_v8  ;;  %v3468_v17 = vpack.c.bf16 %v198_v15, %v194_v14  ;;  %v195_v19 = vld [vmem:[#allocation5 + $0x60] sm:$0xff]  ;;  %v197_v22 = vld [vmem:[#allocation5 + $0x70] sm:$0xff]  ;;  %v200_v23 = vld [vmem:[#allocation5 + $0x88] sm:$0xff]  ;;  %p4830_p7 = por %p4829_p6, %p4828_p5 }
  0xca   :  { %3467 = vmatpush1.bf16.msra.mxu1 %v3466_v12  ;;  %v3246_v21 = vpack.c.bf16 %v195_v19, %v191_v18  ;;  %v204_v24 = vld [vmem:[#allocation5 + $0xa8] sm:$0xff]  ;;  %3245 = vmatprep.subr.bf16.mxu0 %v3244_v16  ;;  %v3470_v25 = vpack.c.bf16 %v197_v22, %v193_v20  ;;  %v202_v27 = vld [vmem:[#allocation5 + $0x98] sm:$0xff]  ;;  %v199_v29 = vld [vmem:[#allocation5 + $0x80] sm:$0xff] }
  0xcb   :  { %3469 = vmatprep.subr.bf16.mxu1 %v3468_v17  ;;  %v3248_v26 = vpack.c.bf16 %v204_v24, %v200_v23  ;;  %v206_v28 = vld [vmem:[#allocation5 + $0xb8] sm:$0xff]  ;;  %v203_v31 = vld [vmem:[#allocation5 + $0xa0] sm:$0xff]  ;;  %v201_v32 = vld [vmem:[#allocation5 + $0x90] sm:$0xff]  ;;  %p4831_p8 = pnand %p4830_p7, %p4824_p4 }
  0xcc   :  { %v3472_v30 = vpack.c.bf16 %v206_v28, %v202_v27  ;;  %v205_v33 = vld [vmem:[#allocation5 + $0xb0] sm:$0xff]  ;;  %v3250_v34 = vpack.c.bf16 %v203_v31, %v199_v29  ;;  %v208_v35 = vld [vmem:[#allocation5 + $0xc8] sm:$0xff]  ;;  %v210_v37 = vld [vmem:[#allocation5 + $0xd8] sm:$0xff] }
  0xcd   :  { %3247 = vmatpush1.bf16.msra.mxu0 %v3246_v21  ;;  %v212_v36 = vld [vmem:[#allocation5 + $0xe8] sm:$0xff]  ;;  %v3474_v38 = vpack.c.bf16 %v205_v33, %v201_v32  ;;  %v214_v40 = vld [vmem:[#allocation5 + $0xf8] sm:$0xff]  ;;  %v207_v41 = vld [vmem:[#allocation5 + $0xc0] sm:$0xff] }
  0xce   :  { %3471 = vmatpush1.bf16.msra.mxu1 %v3470_v25  ;;  %3249 = vmatprep.subr.bf16.mxu0 %v3248_v26  ;;  %v3252_v39 = vpack.c.bf16 %v212_v36, %v208_v35  ;;  %v211_v42 = vld [vmem:[#allocation5 + $0xe0] sm:$0xff]  ;;  %v3476_v43 = vpack.c.bf16 %v214_v40, %v210_v37  ;;  %v209_v44 = vld [vmem:[#allocation5 + $0xd0] sm:$0xff]  ;;  %v216_v46 = vld [vmem:[#allocation5 + $0x108] sm:$0xff] }
  0xcf   :  { %3473 = vmatprep.subr.bf16.mxu1 %v3472_v30  ;;  %v213_v45 = vld [vmem:[#allocation5 + $0xf0] sm:$0xff]  ;;  %v220_v47 = vld [vmem:[#allocation5 + $0x128] sm:$0xff]  ;;  %v218_v48 = vld [vmem:[#allocation5 + $0x118] sm:$0xff]  ;;  %v3254_v50 = vpack.c.bf16 %v211_v42, %v207_v41 }
  0xd0   :  { %v222_v49 = vld [vmem:[#allocation5 + $0x138] sm:$0xff]  ;;  %v3478_v51 = vpack.c.bf16 %v213_v45, %v209_v44  ;;  %v3256_v52 = vpack.c.bf16 %v220_v47, %v216_v46  ;;  %v215_v53 = vld [vmem:[#allocation5 + $0x100] sm:$0xff]  ;;  %v217_v55 = vld [vmem:[#allocation5 + $0x110] sm:$0xff] }
  0xd1   :  { %3251 = vmatpush1.bf16.msra.mxu0 %v3250_v34  ;;  %v219_v54 = vld [vmem:[#allocation5 + $0x120] sm:$0xff]  ;;  %v3480_v56 = vpack.c.bf16 %v222_v49, %v218_v48  ;;  %v221_v57 = vld [vmem:[#allocation5 + $0x130] sm:$0xff]  ;;  %v224_v58 = vld [vmem:[#allocation5 + $0x148] sm:$0xff] }
  0xd2   :  { %3475 = vmatpush1.bf16.msra.mxu1 %v3474_v38  ;;  %3253 = vmatprep.subr.bf16.mxu0 %v3252_v39  ;;  %v228_v59 = vld [vmem:[#allocation5 + $0x168] sm:$0xff]  ;;  %v226_v60 = vld [vmem:[#allocation5 + $0x158] sm:$0xff]  ;;  %v3258_v62 = vpack.c.bf16 %v219_v54, %v215_v53  ;;  %v3482_v63 = vpack.c.bf16 %v221_v57, %v217_v55  ;;  %v223_v1 = vld [vmem:[#allocation5 + $0x140] sm:$0xff] }
  0xd3   :  { %3477 = vmatprep.subr.bf16.mxu1 %v3476_v43  ;;  %v230_v61 = vld [vmem:[#allocation5 + $0x178] sm:$0xff]  ;;  %v3260_v0 = vpack.c.bf16 %v228_v59, %v224_v58  ;;  %v227_v2 = vld [vmem:[#allocation5 + $0x160] sm:$0xff]  ;;  %v225_v3 = vld [vmem:[#allocation5 + $0x150] sm:$0xff] }
  0xd4   :  { %v3484_v4 = vpack.c.bf16 %v230_v61, %v226_v60  ;;  %v229_v5 = vld [vmem:[#allocation5 + $0x170] sm:$0xff]  ;;  %v232_v6 = vld [vmem:[#allocation5 + $0x188] sm:$0xff]  ;;  %v234_v8 = vld [vmem:[#allocation5 + $0x198] sm:$0xff]  ;;  %v3262_v10 = vpack.c.bf16 %v227_v2, %v223_v1 }
  0xd5   :  { %3255 = vmatpush1.bf16.msra.mxu0 %v3254_v50  ;;  %v236_v7 = vld [vmem:[#allocation5 + $0x1a8] sm:$0xff]  ;;  %v238_v9 = vld [vmem:[#allocation5 + $0x1b8] sm:$0xff]  ;;  %v3486_v11 = vpack.c.bf16 %v229_v5, %v225_v3  ;;  %v231_v13 = vld [vmem:[#allocation5 + $0x180] sm:$0xff] }
  0xd6   :  { %3479 = vmatpush1.bf16.msra.mxu1 %v3478_v51  ;;  %3257 = vmatprep.subr.bf16.mxu0 %v3256_v52  ;;  %v3264_v12 = vpack.c.bf16 %v236_v7, %v232_v6  ;;  %v235_v14 = vld [vmem:[#allocation5 + $0x1a0] sm:$0xff]  ;;  %v233_v15 = vld [vmem:[#allocation5 + $0x190] sm:$0xff]  ;;  %v3488_v16 = vpack.c.bf16 %v238_v9, %v234_v8  ;;  %v240_v18 = vld [vmem:[#allocation5 + $0x1c8] sm:$0xff] }
  0xd7   :  { %3481 = vmatprep.subr.bf16.mxu1 %v3480_v56  ;;  %v237_v17 = vld [vmem:[#allocation5 + $0x1b0] sm:$0xff]  ;;  %v244_v19 = vld [vmem:[#allocation5 + $0x1e8] sm:$0xff]  ;;  %v242_v20 = vld [vmem:[#allocation5 + $0x1d8] sm:$0xff]  ;;  %v3266_v22 = vpack.c.bf16 %v235_v14, %v231_v13 }
  0xd8   :  { %v246_v21 = vld [vmem:[#allocation5 + $0x1f8] sm:$0xff]  ;;  %v3490_v23 = vpack.c.bf16 %v237_v17, %v233_v15  ;;  %v3268_v24 = vpack.c.bf16 %v244_v19, %v240_v18  ;;  %v239_v25 = vld [vmem:[#allocation5 + $0x1c0] sm:$0xff]  ;;  %v241_v27 = vld [vmem:[#allocation5 + $0x1d0] sm:$0xff] }
  0xd9   :  { %3259 = vmatpush1.bf16.msra.mxu0 %v3258_v62  ;;  %v243_v26 = vld [vmem:[#allocation5 + $0x1e0] sm:$0xff]  ;;  %v3492_v28 = vpack.c.bf16 %v246_v21, %v242_v20  ;;  %v245_v29 = vld [vmem:[#allocation5 + $0x1f0] sm:$0xff]  ;;  %v248_v30 = vld [vmem:[#allocation5 + $0x208] sm:$0xff] }
  0xda   :  { %3483 = vmatpush1.bf16.msra.mxu1 %v3482_v63  ;;  %3261 = vmatprep.subr.bf16.mxu0 %v3260_v0  ;;  %v252_v31 = vld [vmem:[#allocation5 + $0x228] sm:$0xff]  ;;  %v250_v32 = vld [vmem:[#allocation5 + $0x218] sm:$0xff]  ;;  %v3270_v34 = vpack.c.bf16 %v243_v26, %v239_v25  ;;  %v3494_v35 = vpack.c.bf16 %v245_v29, %v241_v27  ;;  %v247_v37 = vld [vmem:[#allocation5 + $0x200] sm:$0xff] }
  0xdb   :  { %3485 = vmatprep.subr.bf16.mxu1 %v3484_v4  ;;  %v254_v33 = vld [vmem:[#allocation5 + $0x238] sm:$0xff]  ;;  %v3272_v36 = vpack.c.bf16 %v252_v31, %v248_v30  ;;  %v251_v38 = vld [vmem:[#allocation5 + $0x220] sm:$0xff]  ;;  %v249_v39 = vld [vmem:[#allocation5 + $0x210] sm:$0xff] }
  0xdc   :  { %v3496_v40 = vpack.c.bf16 %v254_v33, %v250_v32  ;;  %v253_v41 = vld [vmem:[#allocation5 + $0x230] sm:$0xff]  ;;  %v256_v42 = vld [vmem:[#allocation5 + $0x248] sm:$0xff]  ;;  %v258_v44 = vld [vmem:[#allocation5 + $0x258] sm:$0xff]  ;;  %v3274_v46 = vpack.c.bf16 %v251_v38, %v247_v37 }
  0xdd   :  { %3263 = vmatpush1.bf16.msra.mxu0 %v3262_v10  ;;  %v260_v43 = vld [vmem:[#allocation5 + $0x268] sm:$0xff]  ;;  %v262_v45 = vld [vmem:[#allocation5 + $0x278] sm:$0xff]  ;;  %v3498_v47 = vpack.c.bf16 %v253_v41, %v249_v39  ;;  %v255_v49 = vld [vmem:[#allocation5 + $0x240] sm:$0xff] }
  0xde   :  { %3487 = vmatpush1.bf16.msra.mxu1 %v3486_v11  ;;  %3265 = vmatprep.subr.bf16.mxu0 %v3264_v12  ;;  %v3276_v48 = vpack.c.bf16 %v260_v43, %v256_v42  ;;  %v259_v50 = vld [vmem:[#allocation5 + $0x260] sm:$0xff]  ;;  %v257_v51 = vld [vmem:[#allocation5 + $0x250] sm:$0xff]  ;;  %v3500_v52 = vpack.c.bf16 %v262_v45, %v258_v44  ;;  %v264_v54 = vld [vmem:[#allocation5 + $0x288] sm:$0xff] }
  0xdf   :  { %3489 = vmatprep.subr.bf16.mxu1 %v3488_v16  ;;  %v261_v53 = vld [vmem:[#allocation5 + $0x270] sm:$0xff]  ;;  %v268_v55 = vld [vmem:[#allocation5 + $0x2a8] sm:$0xff]  ;;  %v266_v56 = vld [vmem:[#allocation5 + $0x298] sm:$0xff]  ;;  %v3278_v58 = vpack.c.bf16 %v259_v50, %v255_v49 }
  0xe0   :  { %v270_v57 = vld [vmem:[#allocation5 + $0x2b8] sm:$0xff]  ;;  %v3502_v59 = vpack.c.bf16 %v261_v53, %v257_v51  ;;  %v3280_v60 = vpack.c.bf16 %v268_v55, %v264_v54  ;;  %v263_v61 = vld [vmem:[#allocation5 + $0x280] sm:$0xff]  ;;  %v265_v63 = vld [vmem:[#allocation5 + $0x290] sm:$0xff] }
  0xe1   :  { %3267 = vmatpush1.bf16.msra.mxu0 %v3266_v22  ;;  %v267_v62 = vld [vmem:[#allocation5 + $0x2a0] sm:$0xff]  ;;  %v3504_v0 = vpack.c.bf16 %v270_v57, %v266_v56  ;;  %v269_v1 = vld [vmem:[#allocation5 + $0x2b0] sm:$0xff]  ;;  %v272_v2 = vld [vmem:[#allocation5 + $0x2c8] sm:$0xff] }
  0xe2   :  { %3491 = vmatpush1.bf16.msra.mxu1 %v3490_v23  ;;  %3269 = vmatprep.subr.bf16.mxu0 %v3268_v24  ;;  %v276_v3 = vld [vmem:[#allocation5 + $0x2e8] sm:$0xff]  ;;  %v274_v4 = vld [vmem:[#allocation5 + $0x2d8] sm:$0xff]  ;;  %v3282_v6 = vpack.c.bf16 %v267_v62, %v263_v61  ;;  %v271_v7 = vld [vmem:[#allocation5 + $0x2c0] sm:$0xff]  ;;  %v3506_v8 = vpack.c.bf16 %v269_v1, %v265_v63 }
  0xe3   :  { %3493 = vmatprep.subr.bf16.mxu1 %v3492_v28  ;;  %v278_v5 = vld [vmem:[#allocation5 + $0x2f8] sm:$0xff]  ;;  %v3284_v9 = vpack.c.bf16 %v276_v3, %v272_v2  ;;  %v275_v10 = vld [vmem:[#allocation5 + $0x2e0] sm:$0xff]  ;;  %v273_v11 = vld [vmem:[#allocation5 + $0x2d0] sm:$0xff] }
  0xe4   :  { %v277_v12 = vld [vmem:[#allocation5 + $0x2f0] sm:$0xff]  ;;  %v3508_v13 = vpack.c.bf16 %v278_v5, %v274_v4  ;;  %v280_v14 = vld [vmem:[#allocation5 + $0x308] sm:$0xff]  ;;  %v282_v17 = vld [vmem:[#allocation5 + $0x318] sm:$0xff]  ;;  %v3286_v19 = vpack.c.bf16 %v275_v10, %v271_v7 }
  0xe5   :  { %3271 = vmatpush1.bf16.msra.mxu0 %v3270_v34  ;;  %v284_v15 = vld [vmem:[#allocation5 + $0x328] sm:$0xff]  ;;  %v177_v16 = vld [vmem:[#allocation2 + $0x8] sm:$0xff]  ;;  %v286_v18 = vld [vmem:[#allocation5 + $0x338] sm:$0xff]  ;;  %v3510_v20 = vpack.c.bf16 %v277_v12, %v273_v11 }
  0xe6   :  { %3495 = vmatpush1.bf16.msra.mxu1 %v3494_v35  ;;  %3273 = vmatprep.subr.bf16.mxu0 %v3272_v36  ;;  %v3288_v21 = vpack.c.bf16 %v284_v15, %v280_v14  ;;  %v279_v22 = vld [vmem:[#allocation5 + $0x300] sm:$0xff]  ;;  %v281_v24 = vld [vmem:[#allocation5 + $0x310] sm:$0xff]  ;;  %v3512_v25 = vpack.c.bf16 %v286_v18, %v282_v17  ;;  %v288_v27 = vld [vmem:[#allocation5 + $0x348] sm:$0xff] }
  0xe7   :  { %3497 = vmatprep.subr.bf16.mxu1 %v3496_v40  ;;  %717 = vmatprep.mubr.f32.mxu0 %v177_v16  ;;  %v283_v23 = vld [vmem:[#allocation5 + $0x320] sm:$0xff]  ;;  %v285_v26 = vld [vmem:[#allocation5 + $0x330] sm:$0xff]  ;;  %v292_v28 = vld [vmem:[#allocation5 + $0x368] sm:$0xff] }
  0xe8   :  { %1001 = vmatprep.mubr.f32.mxu1 %v177_v16  ;;  %v290_v29 = vld [vmem:[#allocation5 + $0x358] sm:$0xff]  ;;  %v3290_v31 = vpack.c.bf16 %v283_v23, %v279_v22  ;;  %v3514_v32 = vpack.c.bf16 %v285_v26, %v281_v24  ;;  %v3292_v33 = vpack.c.bf16 %v292_v28, %v288_v27  ;;  %v287_v34 = vld [vmem:[#allocation5 + $0x340] sm:$0xff]  ;;  %v289_v36 = vld [vmem:[#allocation5 + $0x350] sm:$0xff] }
  0xe9   :  { %3275 = vmatpush1.bf16.msra.mxu0 %v3274_v46  ;;  %v294_v30 = vld [vmem:[#allocation5 + $0x378] sm:$0xff]  ;;  %v291_v35 = vld [vmem:[#allocation5 + $0x360] sm:$0xff]  ;;  %v293_v38 = vld [vmem:[#allocation5 + $0x370] sm:$0xff] }
  0xea   :  { %3499 = vmatpush1.bf16.msra.mxu1 %v3498_v47  ;;  %3277 = vmatprep.subr.bf16.mxu0 %v3276_v48  ;;  %v3516_v37 = vpack.c.bf16 %v294_v30, %v290_v29  ;;  %v296_v39 = vld [vmem:[#allocation5 + $0x388] sm:$0xff]  ;;  %v298_v41 = vld [vmem:[#allocation5 + $0x398] sm:$0xff]  ;;  %v3294_v43 = vpack.c.bf16 %v291_v35, %v287_v34  ;;  %v3518_v44 = vpack.c.bf16 %v293_v38, %v289_v36  ;;  %v295_v46 = vld [vmem:[#allocation5 + $0x380] sm:$0xff] }
  0xeb   :  { %3501 = vmatprep.subr.bf16.mxu1 %v3500_v52  ;;  %v300_v40 = vld [vmem:[#allocation5 + $0x3a8] sm:$0xff]  ;;  %v302_v42 = vld [vmem:[#allocation5 + $0x3b8] sm:$0xff]  ;;  %v299_v47 = vld [vmem:[#allocation5 + $0x3a0] sm:$0xff] }
  0xec   :  { %v3296_v45 = vpack.c.bf16 %v300_v40, %v296_v39  ;;  %v297_v48 = vld [vmem:[#allocation5 + $0x390] sm:$0xff]  ;;  %v3520_v49 = vpack.c.bf16 %v302_v42, %v298_v41  ;;  %v304_v51 = vld [vmem:[#allocation5 + $0x3c8] sm:$0xff]  ;;  %v306_v53 = vld [vmem:[#allocation5 + $0x3d8] sm:$0xff]  ;;  %v3298_v55 = vpack.c.bf16 %v299_v47, %v295_v46 }
  0xed   :  { %3279 = vmatpush1.bf16.msra.mxu0 %v3278_v58  ;;  %v301_v50 = vld [vmem:[#allocation5 + $0x3b0] sm:$0xff]  ;;  %v308_v52 = vld [vmem:[#allocation5 + $0x3e8] sm:$0xff]  ;;  %v310_v54 = vld [vmem:[#allocation5 + $0x3f8] sm:$0xff] }
  0xee   :  { %3503 = vmatpush1.bf16.msra.mxu1 %v3502_v59  ;;  %3281 = vmatprep.subr.bf16.mxu0 %v3280_v60  ;;  %v3522_v56 = vpack.c.bf16 %v301_v50, %v297_v48  ;;  %v3300_v57 = vpack.c.bf16 %v308_v52, %v304_v51  ;;  %v303_v58 = vld [vmem:[#allocation5 + $0x3c0] sm:$0xff]  ;;  %v305_v60 = vld [vmem:[#allocation5 + $0x3d0] sm:$0xff]  ;;  %v3524_v61 = vpack.c.bf16 %v310_v54, %v306_v53  ;;  %v312_v63 = vld [vmem:[#allocation5 + $0x408] sm:$0xff] }
  0xef   :  { %3505 = vmatprep.subr.bf16.mxu1 %v3504_v0  ;;  %v307_v59 = vld [vmem:[#allocation5 + $0x3e0] sm:$0xff]  ;;  %v309_v62 = vld [vmem:[#allocation5 + $0x3f0] sm:$0xff]  ;;  %v316_v0 = vld [vmem:[#allocation5 + $0x428] sm:$0xff] }
  0xf0   :  { %v314_v1 = vld [vmem:[#allocation5 + $0x418] sm:$0xff]  ;;  %v3302_v3 = vpack.c.bf16 %v307_v59, %v303_v58  ;;  %v3526_v4 = vpack.c.bf16 %v309_v62, %v305_v60  ;;  %v3304_v5 = vpack.c.bf16 %v316_v0, %v312_v63  ;;  %v315_v7 = vld [vmem:[#allocation5 + $0x420] sm:$0xff]  ;;  %v317_v10 = vld [vmem:[#allocation5 + $0x430] sm:$0xff] }
  0xf1   :  { %3283 = vmatpush1.bf16.msra.mxu0 %v3282_v6  ;;  %v318_v2 = vld [vmem:[#allocation5 + $0x438] sm:$0xff]  ;;  %v311_v6 = vld [vmem:[#allocation5 + $0x400] sm:$0xff]  ;;  %v320_v11 = vld [vmem:[#allocation5 + $0x448] sm:$0xff] }
  0xf2   :  { %3507 = vmatpush1.bf16.msra.mxu1 %v3506_v8  ;;  %3285 = vmatprep.subr.bf16.mxu0 %v3284_v9  ;;  %v313_v8 = vld [vmem:[#allocation5 + $0x410] sm:$0xff]  ;;  %v3528_v9 = vpack.c.bf16 %v318_v2, %v314_v1  ;;  %v324_v12 = vld [vmem:[#allocation5 + $0x468] sm:$0xff]  ;;  %v326_v14 = vld [vmem:[#allocation5 + $0x478] sm:$0xff]  ;;  %v3306_v16 = vpack.c.bf16 %v315_v7, %v311_v6 }
  0xf3   :  { %3509 = vmatprep.subr.bf16.mxu1 %v3508_v13  ;;  %v322_v13 = vld [vmem:[#allocation5 + $0x458] sm:$0xff]  ;;  %v176_v15 = vld [vmem:[#allocation2] sm:$0xff]  ;;  %v3530_v17 = vpack.c.bf16 %v317_v10, %v313_v8  ;;  %v3308_v18 = vpack.c.bf16 %v324_v12, %v320_v11  ;;  %v325_v23 = vld [vmem:[#allocation5 + $0x470] sm:$0xff] }
  0xf4   :  { %v3532_v22 = vpack.c.bf16 %v326_v14, %v322_v13  ;;  %v328_v24 = vld [vmem:[#allocation5 + $0x488] sm:$0xff]  ;;  %v330_v26 = vld [vmem:[#allocation5 + $0x498] sm:$0xff]  ;;  %v333_v35 = vld [vmem:[#allocation5 + $0x4b0] sm:$0xff] }
  0xf5   :  { %3287 = vmatpush1.bf16.msra.mxu0 %v3286_v19  ;;  %v319_v19 = vld [vmem:[#allocation5 + $0x440] sm:$0xff]  ;;  %v334_v27 = vld [vmem:[#allocation5 + $0x4b8] sm:$0xff]  ;;  %v336_v36 = vld [vmem:[#allocation5 + $0x4c8] sm:$0xff] }
  0xf6   :  { %3511 = vmatpush1.bf16.msra.mxu1 %v3510_v20  ;;  %3289 = vmatprep.subr.bf16.mxu0 %v3288_v21  ;;  %v323_v20 = vld [vmem:[#allocation5 + $0x460] sm:$0xff]  ;;  %v321_v21 = vld [vmem:[#allocation5 + $0x450] sm:$0xff]  ;;  %v3536_v34 = vpack.c.bf16 %v334_v27, %v330_v26  ;;  %v338_v38 = vld [vmem:[#allocation5 + $0x4d8] sm:$0xff] }
  0xf7   :  { %3513 = vmatprep.subr.bf16.mxu1 %v3512_v25  ;;  %v332_v25 = vld [vmem:[#allocation5 + $0x4a8] sm:$0xff]  ;;  %v3310_v28 = vpack.c.bf16 %v323_v20, %v319_v19  ;;  %v3534_v29 = vpack.c.bf16 %v325_v23, %v321_v21  ;;  %v342_v39 = vld [vmem:[#allocation5 + $0x4f8] sm:$0xff]  ;;  %v341_v47 = vld [vmem:[#allocation5 + $0x4f0] sm:$0xff] }
  0xf8   :  { %v3312_v30 = vpack.c.bf16 %v332_v25, %v328_v24  ;;  %v3540_v46 = vpack.c.bf16 %v342_v39, %v338_v38  ;;  %v344_v48 = vld [vmem:[#allocation5 + $0x508] sm:$0xff]  ;;  %v346_v50 = vld [vmem:[#allocation5 + $0x518] sm:$0xff]  ;;  %v349_v59 = vld [vmem:[#allocation5 + $0x530] sm:$0xff] }
  0xf9   :  { %3291 = vmatpush1.bf16.msra.mxu0 %v3290_v31  ;;  %v327_v31 = vld [vmem:[#allocation5 + $0x480] sm:$0xff]  ;;  %v350_v51 = vld [vmem:[#allocation5 + $0x538] sm:$0xff]  ;;  %v352_v60 = vld [vmem:[#allocation5 + $0x548] sm:$0xff] }
  0xfa   :  { %3515 = vmatpush1.bf16.msra.mxu1 %v3514_v32  ;;  %3293 = vmatprep.subr.bf16.mxu0 %v3292_v33  ;;  %v331_v32 = vld [vmem:[#allocation5 + $0x4a0] sm:$0xff]  ;;  %v329_v33 = vld [vmem:[#allocation5 + $0x490] sm:$0xff]  ;;  %v3544_v58 = vpack.c.bf16 %v350_v51, %v346_v50  ;;  %v354_v62 = vld [vmem:[#allocation5 + $0x558] sm:$0xff] }
  0xfb   :  { %3517 = vmatprep.subr.bf16.mxu1 %v3516_v37  ;;  %v340_v37 = vld [vmem:[#allocation5 + $0x4e8] sm:$0xff]  ;;  %v3314_v40 = vpack.c.bf16 %v331_v32, %v327_v31  ;;  %v3538_v41 = vpack.c.bf16 %v333_v35, %v329_v33  ;;  %v358_v63 = vld [vmem:[#allocation5 + $0x578] sm:$0xff]  ;;  %v357_v7 = vld [vmem:[#allocation5 + $0x570] sm:$0xff] }
  0xfc   :  { %v3316_v42 = vpack.c.bf16 %v340_v37, %v336_v36  ;;  %v3548_v6 = vpack.c.bf16 %v358_v63, %v354_v62  ;;  %v360_v8 = vld [vmem:[#allocation5 + $0x588] sm:$0xff]  ;;  %v362_v10 = vld [vmem:[#allocation5 + $0x598] sm:$0xff]  ;;  %v359_v13 = vld [vmem:[#allocation5 + $0x580] sm:$0xff] }
  0xfd   :  { %3295 = vmatpush1.bf16.msra.mxu0 %v3294_v43  ;;  %v335_v43 = vld [vmem:[#allocation5 + $0x4c0] sm:$0xff]  ;;  %v366_v11 = vld [vmem:[#allocation5 + $0x5b8] sm:$0xff]  ;;  %v368_v20 = vld [vmem:[#allocation5 + $0x5c8] sm:$0xff] }
  0xfe   :  { %3519 = vmatpush1.bf16.msra.mxu1 %v3518_v44  ;;  %3297 = vmatprep.subr.bf16.mxu0 %v3296_v45  ;;  %v339_v44 = vld [vmem:[#allocation5 + $0x4e0] sm:$0xff]  ;;  %v337_v45 = vld [vmem:[#allocation5 + $0x4d0] sm:$0xff]  ;;  %v3552_v19 = vpack.c.bf16 %v366_v11, %v362_v10  ;;  %v372_v21 = vld [vmem:[#allocation5 + $0x5e8] sm:$0xff] }
  0xff   :  { %3521 = vmatprep.subr.bf16.mxu1 %v3520_v49  ;;  %v348_v49 = vld [vmem:[#allocation5 + $0x528] sm:$0xff]  ;;  %v3318_v52 = vpack.c.bf16 %v339_v44, %v335_v43  ;;  %v3542_v53 = vpack.c.bf16 %v341_v47, %v337_v45  ;;  %v370_v23 = vld [vmem:[#allocation5 + $0x5d8] sm:$0xff]  ;;  %v3332_v27 = vpack.c.bf16 %v372_v21, %v368_v20  ;;  %v373_v32 = vld [vmem:[#allocation5 + $0x5f0] sm:$0xff] }
 0x100   :  { %v3320_v54 = vpack.c.bf16 %v348_v49, %v344_v48  ;;  %v374_v24 = vld [vmem:[#allocation5 + $0x5f8] sm:$0xff]  ;;  %v376_v33 = vld [vmem:[#allocation5 + $0x608] sm:$0xff]  ;;  %v381_v44 = vld [vmem:[#allocation5 + $0x630] sm:$0xff] }
 0x101   :  { %3299 = vmatpush1.bf16.msra.mxu0 %v3298_v55  ;;  %v343_v55 = vld [vmem:[#allocation5 + $0x500] sm:$0xff]  ;;  %v3556_v31 = vpack.c.bf16 %v374_v24, %v370_v23  ;;  %v378_v35 = vld [vmem:[#allocation5 + $0x618] sm:$0xff]  ;;  %v384_v45 = vld [vmem:[#allocation5 + $0x648] sm:$0xff] }
 0x102   :  { %3523 = vmatpush1.bf16.msra.mxu1 %v3522_v56  ;;  %3301 = vmatprep.subr.bf16.mxu0 %v3300_v57  ;;  %v347_v56 = vld [vmem:[#allocation5 + $0x520] sm:$0xff]  ;;  %v345_v57 = vld [vmem:[#allocation5 + $0x510] sm:$0xff]  ;;  %v382_v36 = vld [vmem:[#allocation5 + $0x638] sm:$0xff] }
 0x103   :  { %3525 = vmatprep.subr.bf16.mxu1 %v3524_v61  ;;  %v356_v61 = vld [vmem:[#allocation5 + $0x568] sm:$0xff]  ;;  %v3322_v0 = vpack.c.bf16 %v347_v56, %v343_v55  ;;  %v3546_v1 = vpack.c.bf16 %v349_v59, %v345_v57  ;;  %v3560_v43 = vpack.c.bf16 %v382_v36, %v378_v35  ;;  %v386_v47 = vld [vmem:[#allocation5 + $0x658] sm:$0xff]  ;;  %v389_v56 = vld [vmem:[#allocation5 + $0x670] sm:$0xff] }
 0x104   :  { %v3324_v2 = vpack.c.bf16 %v356_v61, %v352_v60  ;;  %v390_v48 = vld [vmem:[#allocation5 + $0x678] sm:$0xff]  ;;  %v392_v57 = vld [vmem:[#allocation5 + $0x688] sm:$0xff]  ;;  %v407_v24 = vld [vmem:[#allocation5 + $0x700] sm:$0xff] }
 0x105   :  { %3303 = vmatpush1.bf16.msra.mxu0 %v3302_v3  ;;  %v351_v3 = vld [vmem:[#allocation5 + $0x540] sm:$0xff]  ;;  %v3564_v55 = vpack.c.bf16 %v390_v48, %v386_v47  ;;  %v394_v59 = vld [vmem:[#allocation5 + $0x698] sm:$0xff] }
 0x106   :  { %3527 = vmatpush1.bf16.msra.mxu1 %v3526_v4  ;;  %3305 = vmatprep.subr.bf16.mxu0 %v3304_v5  ;;  %v355_v4 = vld [vmem:[#allocation5 + $0x560] sm:$0xff]  ;;  %v353_v5 = vld [vmem:[#allocation5 + $0x550] sm:$0xff]  ;;  %v398_v60 = vld [vmem:[#allocation5 + $0x6b8] sm:$0xff] }
 0x107   :  { %3529 = vmatprep.subr.bf16.mxu1 %v3528_v9  ;;  %v364_v9 = vld [vmem:[#allocation5 + $0x5a8] sm:$0xff]  ;;  %v3326_v12 = vpack.c.bf16 %v355_v4, %v351_v3  ;;  %v3550_v14 = vpack.c.bf16 %v357_v7, %v353_v5  ;;  %v3568_v3 = vpack.c.bf16 %v398_v60, %v394_v59  ;;  %v397_v4 = vld [vmem:[#allocation5 + $0x6b0] sm:$0xff]  ;;  %v402_v7 = vld [vmem:[#allocation5 + $0x6d8] sm:$0xff] }
 0x108   :  { %718 = vmatmul.mubr.f32.vlgmr.msra.gmra.mrb[0].mxu0 %v176_v15  ;;  %v400_v5 = vld [vmem:[#allocation5 + $0x6c8] sm:$0xff]  ;;  %v414_v20 = vld [vmem:[#allocation5 + $0x738] sm:$0xff]  ;;  %v415_v36 = vld [vmem:[#allocation5 + $0x740] sm:$0xff] }
 0x109   :  { %3307 = vmatpush1.bf16.msra.mxu0 %v3306_v16  ;;  %1002 = vmatmul.mubr.f32.vlgmr.msra.gmra.mrb[0].mxu1 %v176_v15  ;;  %v3328_v15 = vpack.c.bf16 %v364_v9, %v360_v8  ;;  %v363_v16 = vld [vmem:[#allocation5 + $0x5a0] sm:$0xff]  ;;  %v406_v8 = vld [vmem:[#allocation5 + $0x6f8] sm:$0xff] }
 0x10a   :  { %3531 = vmatpush1.bf16.msra.mxu1 %v3530_v17  ;;  %3309 = vmatprep.subr.bf16.mxu0 %v3308_v18  ;;  %v361_v17 = vld [vmem:[#allocation5 + $0x590] sm:$0xff]  ;;  %v3330_v25 = vpack.c.bf16 %v363_v16, %v359_v13  ;;  %v403_v13 = vld [vmem:[#allocation5 + $0x6e0] sm:$0xff] }
 0x10b   :  { %3533 = vmatprep.subr.bf16.mxu1 %v3532_v22  ;;  %v365_v18 = vld [vmem:[#allocation5 + $0x5b0] sm:$0xff]  ;;  %v179_v22 = vld [vmem:[#allocation2 + $0x18] sm:$0xff] }
 0x10c   :  { %788 = vmatprep.mubr.f32.mxu0 %v179_v22  ;;  %1072 = vmatprep.mubr.f32.mxu1 %v179_v22  ;;  %v3554_v26 = vpack.c.bf16 %v365_v18, %v361_v17  ;;  %v405_v16 = vld [vmem:[#allocation5 + $0x6f0] sm:$0xff]  ;;  %v408_v17 = vld [vmem:[#allocation5 + $0x708] sm:$0xff]  ;;  %v423_v48 = vld [vmem:[#allocation5 + $0x780] sm:$0xff] }
 0x10d   :  { %3311 = vmatpush1.bf16.msra.mxu0 %v3310_v28  ;;  %v367_v28 = vld [vmem:[#allocation5 + $0x5c0] sm:$0xff]  ;;  %v412_v18 = vld [vmem:[#allocation5 + $0x728] sm:$0xff] }
 0x10e   :  { %3535 = vmatpush1.bf16.msra.mxu1 %v3534_v29  ;;  %3313 = vmatprep.subr.bf16.mxu0 %v3312_v30  ;;  %v371_v29 = vld [vmem:[#allocation5 + $0x5e0] sm:$0xff]  ;;  %v369_v30 = vld [vmem:[#allocation5 + $0x5d0] sm:$0xff]  ;;  %v3352_v23 = vpack.c.bf16 %v412_v18, %v408_v17  ;;  %v178_v17 = vld [vmem:[#allocation2 + $0x10] sm:$0xff] }
 0x10f   :  { %3537 = vmatprep.subr.bf16.mxu1 %v3536_v34  ;;  %v380_v34 = vld [vmem:[#allocation5 + $0x628] sm:$0xff]  ;;  %v3334_v37 = vpack.c.bf16 %v371_v29, %v367_v28  ;;  %v3558_v38 = vpack.c.bf16 %v373_v32, %v369_v30  ;;  %v413_v28 = vld [vmem:[#allocation5 + $0x730] sm:$0xff]  ;;  %v422_v32 = vld [vmem:[#allocation5 + $0x778] sm:$0xff] }
 0x110   :  { %v3336_v39 = vpack.c.bf16 %v380_v34, %v376_v33  ;;  %v416_v29 = vld [vmem:[#allocation5 + $0x748] sm:$0xff]  ;;  %v431_v60 = vld [vmem:[#allocation5 + $0x7c0] sm:$0xff] }
 0x111   :  { %3315 = vmatpush1.bf16.msra.mxu0 %v3314_v40  ;;  %v375_v40 = vld [vmem:[#allocation5 + $0x600] sm:$0xff]  ;;  %v420_v30 = vld [vmem:[#allocation5 + $0x768] sm:$0xff] }
 0x112   :  { %3539 = vmatpush1.bf16.msra.mxu1 %v3538_v41  ;;  %3317 = vmatprep.subr.bf16.mxu0 %v3316_v42  ;;  %v379_v41 = vld [vmem:[#allocation5 + $0x620] sm:$0xff]  ;;  %v377_v42 = vld [vmem:[#allocation5 + $0x610] sm:$0xff]  ;;  %v3356_v35 = vpack.c.bf16 %v420_v30, %v416_v29  ;;  %v462_v29 = vld [vmem:[#allocation5 + $0x8b8] sm:$0xff] }
 0x113   :  { %3541 = vmatprep.subr.bf16.mxu1 %v3540_v46  ;;  %v388_v46 = vld [vmem:[#allocation5 + $0x668] sm:$0xff]  ;;  %v3338_v49 = vpack.c.bf16 %v379_v41, %v375_v40  ;;  %v3562_v50 = vpack.c.bf16 %v381_v44, %v377_v42  ;;  %v421_v40 = vld [vmem:[#allocation5 + $0x770] sm:$0xff]  ;;  %v430_v44 = vld [vmem:[#allocation5 + $0x7b8] sm:$0xff] }
 0x114   :  { %v3340_v51 = vpack.c.bf16 %v388_v46, %v384_v45  ;;  %v424_v41 = vld [vmem:[#allocation5 + $0x788] sm:$0xff]  ;;  %v181_v30 = vld [vmem:[#allocation2 + $0x28] sm:$0xff] }
 0x115   :  { %3319 = vmatpush1.bf16.msra.mxu0 %v3318_v52  ;;  %v383_v52 = vld [vmem:[#allocation5 + $0x640] sm:$0xff]  ;;  %v428_v42 = vld [vmem:[#allocation5 + $0x7a8] sm:$0xff] }
 0x116   :  { %3543 = vmatpush1.bf16.msra.mxu1 %v3542_v53  ;;  %3321 = vmatprep.subr.bf16.mxu0 %v3320_v54  ;;  %v387_v53 = vld [vmem:[#allocation5 + $0x660] sm:$0xff]  ;;  %v385_v54 = vld [vmem:[#allocation5 + $0x650] sm:$0xff]  ;;  %v3360_v47 = vpack.c.bf16 %v428_v42, %v424_v41  ;;  %v466_v41 = vld [vmem:[#allocation5 + $0x8d8] sm:$0xff] }
 0x117   :  { %3545 = vmatprep.subr.bf16.mxu1 %v3544_v58  ;;  %v396_v58 = vld [vmem:[#allocation5 + $0x6a8] sm:$0xff]  ;;  %v3342_v61 = vpack.c.bf16 %v387_v53, %v383_v52  ;;  %v3566_v62 = vpack.c.bf16 %v389_v56, %v385_v54  ;;  %v429_v52 = vld [vmem:[#allocation5 + $0x7b0] sm:$0xff]  ;;  %v438_v56 = vld [vmem:[#allocation5 + $0x7f8] sm:$0xff] }
 0x118   :  { %v3344_v63 = vpack.c.bf16 %v396_v58, %v392_v57  ;;  %v432_v53 = vld [vmem:[#allocation5 + $0x7c8] sm:$0xff]  ;;  %v470_v42 = vld [vmem:[#allocation5 + $0x8f8] sm:$0xff] }
 0x119   :  { %3323 = vmatpush1.bf16.msra.mxu0 %v3322_v0  ;;  %v391_v0 = vld [vmem:[#allocation5 + $0x680] sm:$0xff]  ;;  %v436_v54 = vld [vmem:[#allocation5 + $0x7e8] sm:$0xff] }
 0x11a   :  { %3547 = vmatpush1.bf16.msra.mxu1 %v3546_v1  ;;  %3325 = vmatprep.subr.bf16.mxu0 %v3324_v2  ;;  %v395_v1 = vld [vmem:[#allocation5 + $0x6a0] sm:$0xff]  ;;  %v393_v2 = vld [vmem:[#allocation5 + $0x690] sm:$0xff]  ;;  %v3364_v59 = vpack.c.bf16 %v436_v54, %v432_v53  ;;  %v474_v53 = vld [vmem:[#allocation5 + $0x918] sm:$0xff] }
 0x11b   :  { %3549 = vmatprep.subr.bf16.mxu1 %v3548_v6  ;;  %v404_v6 = vld [vmem:[#allocation5 + $0x6e8] sm:$0xff]  ;;  %v3346_v9 = vpack.c.bf16 %v395_v1, %v391_v0  ;;  %v3570_v10 = vpack.c.bf16 %v397_v4, %v393_v2  ;;  %v437_v0 = vld [vmem:[#allocation5 + $0x7f0] sm:$0xff]  ;;  %v446_v4 = vld [vmem:[#allocation5 + $0x838] sm:$0xff] }
 0x11c   :  { %v3348_v11 = vpack.c.bf16 %v404_v6, %v400_v5  ;;  %v440_v1 = vld [vmem:[#allocation5 + $0x808] sm:$0xff]  ;;  %v478_v54 = vld [vmem:[#allocation5 + $0x938] sm:$0xff] }
 0x11d   :  { %3327 = vmatpush1.bf16.msra.mxu0 %v3326_v12  ;;  %v399_v12 = vld [vmem:[#allocation5 + $0x6c0] sm:$0xff]  ;;  %v444_v2 = vld [vmem:[#allocation5 + $0x828] sm:$0xff] }
 0x11e   :  { %3551 = vmatpush1.bf16.msra.mxu1 %v3550_v14  ;;  %3329 = vmatprep.subr.bf16.mxu0 %v3328_v15  ;;  %v401_v14 = vld [vmem:[#allocation5 + $0x6d0] sm:$0xff]  ;;  %v3572_v15 = vpack.c.bf16 %v406_v8, %v402_v7  ;;  %v3350_v21 = vpack.c.bf16 %v403_v13, %v399_v12  ;;  %v3368_v7 = vpack.c.bf16 %v444_v2, %v440_v1  ;;  %v439_v8 = vld [vmem:[#allocation5 + $0x800] sm:$0xff]  ;;  %v448_v13 = vld [vmem:[#allocation5 + $0x848] sm:$0xff] }
 0x11f   :  { %3553 = vmatprep.subr.bf16.mxu1 %v3552_v19  ;;  %v410_v19 = vld [vmem:[#allocation5 + $0x718] sm:$0xff]  ;;  %v3574_v22 = vpack.c.bf16 %v405_v16, %v401_v14  ;;  %v445_v12 = vld [vmem:[#allocation5 + $0x830] sm:$0xff]  ;;  %v452_v14 = vld [vmem:[#allocation5 + $0x868] sm:$0xff] }
 0x120   :  { %v454_v16 = vld [vmem:[#allocation5 + $0x878] sm:$0xff] }
 0x121   :  { %3331 = vmatpush1.bf16.msra.mxu0 %v3330_v25  ;;  %v411_v25 = vld [vmem:[#allocation5 + $0x720] sm:$0xff]  ;;  %v482_v1 = vld [vmem:[#allocation5 + $0x958] sm:$0xff] }
 0x122   :  { %3555 = vmatpush1.bf16.msra.mxu1 %v3554_v26  ;;  %3333 = vmatprep.subr.bf16.mxu0 %v3332_v27  ;;  %v409_v26 = vld [vmem:[#allocation5 + $0x710] sm:$0xff]  ;;  %v3576_v27 = vpack.c.bf16 %v414_v20, %v410_v19  ;;  %v3354_v33 = vpack.c.bf16 %v411_v25, %v407_v24  ;;  %v3372_v20 = vpack.c.bf16 %v452_v14, %v448_v13  ;;  %v486_v2 = vld [vmem:[#allocation5 + $0x978] sm:$0xff] }
 0x123   :  { %3557 = vmatprep.subr.bf16.mxu1 %v3556_v31  ;;  %v418_v31 = vld [vmem:[#allocation5 + $0x758] sm:$0xff]  ;;  %v3578_v34 = vpack.c.bf16 %v413_v28, %v409_v26  ;;  %v453_v25 = vld [vmem:[#allocation5 + $0x870] sm:$0xff]  ;;  %v456_v26 = vld [vmem:[#allocation5 + $0x888] sm:$0xff] }
 0x124   :  { %v458_v28 = vld [vmem:[#allocation5 + $0x898] sm:$0xff] }
 0x125   :  { %3335 = vmatpush1.bf16.msra.mxu0 %v3334_v37  ;;  %v419_v37 = vld [vmem:[#allocation5 + $0x760] sm:$0xff]  ;;  %v490_v13 = vld [vmem:[#allocation5 + $0x998] sm:$0xff] }
 0x126   :  { %3559 = vmatpush1.bf16.msra.mxu1 %v3558_v38  ;;  %3337 = vmatprep.subr.bf16.mxu0 %v3336_v39  ;;  %v417_v38 = vld [vmem:[#allocation5 + $0x750] sm:$0xff]  ;;  %v3580_v39 = vpack.c.bf16 %v422_v32, %v418_v31  ;;  %v3358_v45 = vpack.c.bf16 %v419_v37, %v415_v36  ;;  %v3600_v37 = vpack.c.bf16 %v462_v29, %v458_v28  ;;  %v494_v14 = vld [vmem:[#allocation5 + $0x9b8] sm:$0xff] }
 0x127   :  { %3561 = vmatprep.subr.bf16.mxu1 %v3560_v43  ;;  %v426_v43 = vld [vmem:[#allocation5 + $0x798] sm:$0xff]  ;;  %v3582_v46 = vpack.c.bf16 %v421_v40, %v417_v38  ;;  %v457_v36 = vld [vmem:[#allocation5 + $0x890] sm:$0xff]  ;;  %v468_v40 = vld [vmem:[#allocation5 + $0x8e8] sm:$0xff] }
 0x128   :  { %v461_v38 = vld [vmem:[#allocation5 + $0x8b0] sm:$0xff] }
 0x129   :  { %3339 = vmatpush1.bf16.msra.mxu0 %v3338_v49  ;;  %v427_v49 = vld [vmem:[#allocation5 + $0x7a0] sm:$0xff] }
 0x12a   :  { %3563 = vmatpush1.bf16.msra.mxu1 %v3562_v50  ;;  %3341 = vmatprep.subr.bf16.mxu0 %v3340_v51  ;;  %v425_v50 = vld [vmem:[#allocation5 + $0x790] sm:$0xff]  ;;  %v3584_v51 = vpack.c.bf16 %v430_v44, %v426_v43  ;;  %v3362_v57 = vpack.c.bf16 %v427_v49, %v423_v48  ;;  %v3602_v44 = vpack.c.bf16 %v461_v38, %v457_v36  ;;  %v508_v36 = vld [vmem:[#allocation5 + $0xa28] sm:$0xff]  ;;  %v510_v38 = vld [vmem:[#allocation5 + $0xa38] sm:$0xff] }
 0x12b   :  { %3565 = vmatprep.subr.bf16.mxu1 %v3564_v55  ;;  %v434_v55 = vld [vmem:[#allocation5 + $0x7d8] sm:$0xff]  ;;  %v3586_v58 = vpack.c.bf16 %v429_v52, %v425_v50  ;;  %v465_v48 = vld [vmem:[#allocation5 + $0x8d0] sm:$0xff]  ;;  %v3604_v49 = vpack.c.bf16 %v470_v42, %v466_v41  ;;  %v476_v52 = vld [vmem:[#allocation5 + $0x928] sm:$0xff] }
 0x12c   :  { %v469_v50 = vld [vmem:[#allocation5 + $0x8f0] sm:$0xff]  ;;  %v503_v42 = vld [vmem:[#allocation5 + $0xa00] sm:$0xff] }
 0x12d   :  { %3343 = vmatpush1.bf16.msra.mxu0 %v3342_v61  ;;  %v435_v61 = vld [vmem:[#allocation5 + $0x7e0] sm:$0xff] }
 0x12e   :  { %3567 = vmatpush1.bf16.msra.mxu1 %v3566_v62  ;;  %3345 = vmatprep.subr.bf16.mxu0 %v3344_v63  ;;  %v433_v62 = vld [vmem:[#allocation5 + $0x7d0] sm:$0xff]  ;;  %v3588_v63 = vpack.c.bf16 %v438_v56, %v434_v55  ;;  %v3366_v5 = vpack.c.bf16 %v435_v61, %v431_v60  ;;  %v3606_v56 = vpack.c.bf16 %v469_v50, %v465_v48  ;;  %v516_v48 = vld [vmem:[#allocation5 + $0xa68] sm:$0xff]  ;;  %v518_v50 = vld [vmem:[#allocation5 + $0xa78] sm:$0xff] }
 0x12f   :  { %3569 = vmatprep.subr.bf16.mxu1 %v3568_v3  ;;  %v442_v3 = vld [vmem:[#allocation5 + $0x818] sm:$0xff]  ;;  %v3590_v6 = vpack.c.bf16 %v437_v0, %v433_v62  ;;  %v473_v60 = vld [vmem:[#allocation5 + $0x910] sm:$0xff]  ;;  %v3608_v61 = vpack.c.bf16 %v478_v54, %v474_v53  ;;  %v484_v0 = vld [vmem:[#allocation5 + $0x968] sm:$0xff] }
 0x130   :  { %v477_v62 = vld [vmem:[#allocation5 + $0x930] sm:$0xff]  ;;  %v511_v54 = vld [vmem:[#allocation5 + $0xa40] sm:$0xff] }
 0x131   :  { %3347 = vmatpush1.bf16.msra.mxu0 %v3346_v9  ;;  %v443_v9 = vld [vmem:[#allocation5 + $0x820] sm:$0xff] }
 0x132   :  { %3571 = vmatpush1.bf16.msra.mxu1 %v3570_v10  ;;  %3349 = vmatprep.subr.bf16.mxu0 %v3348_v11  ;;  %v441_v10 = vld [vmem:[#allocation5 + $0x810] sm:$0xff]  ;;  %v3592_v11 = vpack.c.bf16 %v446_v4, %v442_v3  ;;  %v3370_v18 = vpack.c.bf16 %v443_v9, %v439_v8  ;;  %v3610_v4 = vpack.c.bf16 %v477_v62, %v473_v60  ;;  %v524_v60 = vld [vmem:[#allocation5 + $0xaa8] sm:$0xff]  ;;  %v526_v62 = vld [vmem:[#allocation5 + $0xab8] sm:$0xff] }
 0x133   :  { %3573 = vmatprep.subr.bf16.mxu1 %v3572_v15  ;;  %v450_v15 = vld [vmem:[#allocation5 + $0x858] sm:$0xff]  ;;  %v3594_v19 = vpack.c.bf16 %v445_v12, %v441_v10  ;;  %v481_v8 = vld [vmem:[#allocation5 + $0x950] sm:$0xff]  ;;  %v3612_v9 = vpack.c.bf16 %v486_v2, %v482_v1  ;;  %v492_v12 = vld [vmem:[#allocation5 + $0x9a8] sm:$0xff] }
 0x134   :  { %v3596_v24 = vpack.c.bf16 %v454_v16, %v450_v15  ;;  %v485_v10 = vld [vmem:[#allocation5 + $0x970] sm:$0xff]  ;;  %v519_v2 = vld [vmem:[#allocation5 + $0xa80] sm:$0xff] }
 0x135   :  { %3351 = vmatpush1.bf16.msra.mxu0 %v3350_v21  ;;  %v447_v21 = vld [vmem:[#allocation5 + $0x840] sm:$0xff]  ;;  %v3614_v16 = vpack.c.bf16 %v485_v10, %v481_v8  ;;  %v532_v8 = vld [vmem:[#allocation5 + $0xae8] sm:$0xff]  ;;  %v534_v10 = vld [vmem:[#allocation5 + $0xaf8] sm:$0xff] }
 0x136   :  { %3575 = vmatpush1.bf16.msra.mxu1 %v3574_v22  ;;  %3353 = vmatprep.subr.bf16.mxu0 %v3352_v23  ;;  %v451_v22 = vld [vmem:[#allocation5 + $0x860] sm:$0xff]  ;;  %v449_v23 = vld [vmem:[#allocation5 + $0x850] sm:$0xff] }
 0x137   :  { %3577 = vmatprep.subr.bf16.mxu1 %v3576_v27  ;;  %v460_v27 = vld [vmem:[#allocation5 + $0x8a8] sm:$0xff]  ;;  %v3374_v31 = vpack.c.bf16 %v451_v22, %v447_v21  ;;  %v3598_v32 = vpack.c.bf16 %v453_v25, %v449_v23  ;;  %v3616_v21 = vpack.c.bf16 %v494_v14, %v490_v13  ;;  %v493_v22 = vld [vmem:[#allocation5 + $0x9b0] sm:$0xff]  ;;  %v498_v25 = vld [vmem:[#allocation5 + $0x9d8] sm:$0xff] }
 0x138   :  { %v496_v23 = vld [vmem:[#allocation5 + $0x9c8] sm:$0xff]  ;;  %v527_v14 = vld [vmem:[#allocation5 + $0xac0] sm:$0xff] }
 0x139   :  { %3355 = vmatpush1.bf16.msra.mxu0 %v3354_v33  ;;  %v3376_v33 = vpack.c.bf16 %v460_v27, %v456_v26  ;;  %v502_v26 = vld [vmem:[#allocation5 + $0x9f8] sm:$0xff] }
 0x13a   :  { %3579 = vmatpush1.bf16.msra.mxu1 %v3578_v34  ;;  %3357 = vmatprep.subr.bf16.mxu0 %v3356_v35  ;;  %v455_v34 = vld [vmem:[#allocation5 + $0x880] sm:$0xff] }
 0x13b   :  { %3581 = vmatprep.subr.bf16.mxu1 %v3580_v39  ;;  %v459_v35 = vld [vmem:[#allocation5 + $0x8a0] sm:$0xff]  ;;  %v464_v39 = vld [vmem:[#allocation5 + $0x8c8] sm:$0xff] }
 0x13c   :  { %v3378_v43 = vpack.c.bf16 %v459_v35, %v455_v34  ;;  %v501_v34 = vld [vmem:[#allocation5 + $0x9f0] sm:$0xff]  ;;  %v504_v35 = vld [vmem:[#allocation5 + $0xa08] sm:$0xff] }
 0x13d   :  { %3359 = vmatpush1.bf16.msra.mxu0 %v3358_v45  ;;  %v3380_v45 = vpack.c.bf16 %v468_v40, %v464_v39  ;;  %v3400_v41 = vpack.c.bf16 %v508_v36, %v504_v35 }
 0x13e   :  { %3583 = vmatpush1.bf16.msra.mxu1 %v3582_v46  ;;  %3361 = vmatprep.subr.bf16.mxu0 %v3360_v47  ;;  %v463_v46 = vld [vmem:[#allocation5 + $0x8c0] sm:$0xff] }
 0x13f   :  { %3585 = vmatprep.subr.bf16.mxu1 %v3584_v51  ;;  %v467_v47 = vld [vmem:[#allocation5 + $0x8e0] sm:$0xff]  ;;  %v472_v51 = vld [vmem:[#allocation5 + $0x908] sm:$0xff] }
 0x140   :  { %v3382_v55 = vpack.c.bf16 %v467_v47, %v463_v46  ;;  %v509_v46 = vld [vmem:[#allocation5 + $0xa30] sm:$0xff]  ;;  %v512_v47 = vld [vmem:[#allocation5 + $0xa48] sm:$0xff] }
 0x141   :  { %3363 = vmatpush1.bf16.msra.mxu0 %v3362_v57  ;;  %v3384_v57 = vpack.c.bf16 %v476_v52, %v472_v51  ;;  %v3404_v53 = vpack.c.bf16 %v516_v48, %v512_v47 }
 0x142   :  { %3587 = vmatpush1.bf16.msra.mxu1 %v3586_v58  ;;  %3365 = vmatprep.subr.bf16.mxu0 %v3364_v59  ;;  %v471_v58 = vld [vmem:[#allocation5 + $0x900] sm:$0xff] }
 0x143   :  { %3589 = vmatprep.subr.bf16.mxu1 %v3588_v63  ;;  %v475_v59 = vld [vmem:[#allocation5 + $0x920] sm:$0xff]  ;;  %v480_v63 = vld [vmem:[#allocation5 + $0x948] sm:$0xff] }
 0x144   :  { %v3386_v3 = vpack.c.bf16 %v475_v59, %v471_v58  ;;  %v517_v58 = vld [vmem:[#allocation5 + $0xa70] sm:$0xff]  ;;  %v520_v59 = vld [vmem:[#allocation5 + $0xa88] sm:$0xff] }
 0x145   :  { %3367 = vmatpush1.bf16.msra.mxu0 %v3366_v5  ;;  %v3388_v5 = vpack.c.bf16 %v484_v0, %v480_v63  ;;  %v3408_v1 = vpack.c.bf16 %v524_v60, %v520_v59 }
 0x146   :  { %3591 = vmatpush1.bf16.msra.mxu1 %v3590_v6  ;;  %3369 = vmatprep.subr.bf16.mxu0 %v3368_v7  ;;  %v479_v6 = vld [vmem:[#allocation5 + $0x940] sm:$0xff] }
 0x147   :  { %3593 = vmatprep.subr.bf16.mxu1 %v3592_v11  ;;  %v483_v7 = vld [vmem:[#allocation5 + $0x960] sm:$0xff]  ;;  %v488_v11 = vld [vmem:[#allocation5 + $0x988] sm:$0xff] }
 0x148   :  { %789 = vmatmul.mubr.f32.vlgmr.msra.gmra.mrb[0].mxu0 %v178_v17  ;;  %v3390_v15 = vpack.c.bf16 %v483_v7, %v479_v6  ;;  %v525_v6 = vld [vmem:[#allocation5 + $0xab0] sm:$0xff]  ;;  %v528_v7 = vld [vmem:[#allocation5 + $0xac8] sm:$0xff] }
 0x149   :  { %3371 = vmatpush1.bf16.msra.mxu0 %v3370_v18  ;;  %1073 = vmatmul.mubr.f32.vlgmr.msra.gmra.mrb[0].mxu1 %v178_v17  ;;  %v3392_v17 = vpack.c.bf16 %v492_v12, %v488_v11  ;;  %v487_v18 = vld [vmem:[#allocation5 + $0x980] sm:$0xff]  ;;  %v3412_v13 = vpack.c.bf16 %v532_v8, %v528_v7 }
 0x14a   :  { %3595 = vmatpush1.bf16.msra.mxu1 %v3594_v19  ;;  %3373 = vmatprep.subr.bf16.mxu0 %v3372_v20  ;;  %v491_v19 = vld [vmem:[#allocation5 + $0x9a0] sm:$0xff]  ;;  %v489_v20 = vld [vmem:[#allocation5 + $0x990] sm:$0xff] }
 0x14b   :  { %3597 = vmatprep.subr.bf16.mxu1 %v3596_v24  ;;  %859 = vmatprep.mubr.f32.mxu0 %v181_v30  ;;  %v500_v24 = vld [vmem:[#allocation5 + $0x9e8] sm:$0xff]  ;;  %v3394_v27 = vpack.c.bf16 %v491_v19, %v487_v18  ;;  %v3618_v28 = vpack.c.bf16 %v493_v22, %v489_v20  ;;  %v533_v18 = vld [vmem:[#allocation5 + $0xaf0] sm:$0xff]  ;;  %v542_v22 = vld [vmem:[#allocation5 + $0xb38] sm:$0xff] }
 0x14c   :  { %1143 = vmatprep.mubr.f32.mxu1 %v181_v30  ;;  %v3396_v29 = vpack.c.bf16 %v500_v24, %v496_v23  ;;  %v495_v30 = vld [vmem:[#allocation5 + $0x9c0] sm:$0xff]  ;;  %v536_v19 = vld [vmem:[#allocation5 + $0xb08] sm:$0xff] }
 0x14d   :  { %3375 = vmatpush1.bf16.msra.mxu0 %v3374_v31  ;;  %v499_v31 = vld [vmem:[#allocation5 + $0x9e0] sm:$0xff]  ;;  %v540_v20 = vld [vmem:[#allocation5 + $0xb28] sm:$0xff] }
 0x14e   :  { %3599 = vmatpush1.bf16.msra.mxu1 %v3598_v32  ;;  %3377 = vmatprep.subr.bf16.mxu0 %v3376_v33  ;;  %v497_v32 = vld [vmem:[#allocation5 + $0x9d0] sm:$0xff]  ;;  %v3620_v33 = vpack.c.bf16 %v502_v26, %v498_v25  ;;  %v3398_v39 = vpack.c.bf16 %v499_v31, %v495_v30  ;;  %v3416_v25 = vpack.c.bf16 %v540_v20, %v536_v19  ;;  %v535_v26 = vld [vmem:[#allocation5 + $0xb00] sm:$0xff]  ;;  %v544_v31 = vld [vmem:[#allocation5 + $0xb48] sm:$0xff] }
 0x14f   :  { %3601 = vmatprep.subr.bf16.mxu1 %v3600_v37  ;;  %v506_v37 = vld [vmem:[#allocation5 + $0xa18] sm:$0xff]  ;;  %v3622_v40 = vpack.c.bf16 %v501_v34, %v497_v32  ;;  %v541_v30 = vld [vmem:[#allocation5 + $0xb30] sm:$0xff]  ;;  %v548_v32 = vld [vmem:[#allocation5 + $0xb68] sm:$0xff] }
 0x150   :  { %v550_v34 = vld [vmem:[#allocation5 + $0xb78] sm:$0xff]  ;;  %v180_v19 = vld [vmem:[#allocation2 + $0x20] sm:$0xff] }
 0x151   :  { %3379 = vmatpush1.bf16.msra.mxu0 %v3378_v43  ;;  %v507_v43 = vld [vmem:[#allocation5 + $0xa20] sm:$0xff] }
 0x152   :  { %3603 = vmatpush1.bf16.msra.mxu1 %v3602_v44  ;;  %3381 = vmatprep.subr.bf16.mxu0 %v3380_v45  ;;  %v505_v44 = vld [vmem:[#allocation5 + $0xa10] sm:$0xff]  ;;  %v3624_v45 = vpack.c.bf16 %v510_v38, %v506_v37  ;;  %v3402_v51 = vpack.c.bf16 %v507_v43, %v503_v42  ;;  %v3420_v37 = vpack.c.bf16 %v548_v32, %v544_v31  ;;  %v543_v38 = vld [vmem:[#allocation5 + $0xb40] sm:$0xff]  ;;  %v552_v43 = vld [vmem:[#allocation5 + $0xb88] sm:$0xff] }
 0x153   :  { %3605 = vmatprep.subr.bf16.mxu1 %v3604_v49  ;;  %v514_v49 = vld [vmem:[#allocation5 + $0xa58] sm:$0xff]  ;;  %v3626_v52 = vpack.c.bf16 %v509_v46, %v505_v44  ;;  %v549_v42 = vld [vmem:[#allocation5 + $0xb70] sm:$0xff]  ;;  %v556_v44 = vld [vmem:[#allocation5 + $0xba8] sm:$0xff] }
 0x154   :  { %v558_v46 = vld [vmem:[#allocation5 + $0xbb8] sm:$0xff] }
 0x155   :  { %3383 = vmatpush1.bf16.msra.mxu0 %v3382_v55  ;;  %v515_v55 = vld [vmem:[#allocation5 + $0xa60] sm:$0xff]  ;;  %v590_v31 = vld [vmem:[#allocation5 + $0xcb8] sm:$0xff] }
 0x156   :  { %3607 = vmatpush1.bf16.msra.mxu1 %v3606_v56  ;;  %3385 = vmatprep.subr.bf16.mxu0 %v3384_v57  ;;  %v513_v56 = vld [vmem:[#allocation5 + $0xa50] sm:$0xff]  ;;  %v3628_v57 = vpack.c.bf16 %v518_v50, %v514_v49  ;;  %v3406_v63 = vpack.c.bf16 %v515_v55, %v511_v54  ;;  %v3424_v49 = vpack.c.bf16 %v556_v44, %v552_v43  ;;  %v551_v50 = vld [vmem:[#allocation5 + $0xb80] sm:$0xff]  ;;  %v560_v55 = vld [vmem:[#allocation5 + $0xbc8] sm:$0xff] }
 0x157   :  { %3609 = vmatprep.subr.bf16.mxu1 %v3608_v61  ;;  %v522_v61 = vld [vmem:[#allocation5 + $0xa98] sm:$0xff]  ;;  %v3630_v0 = vpack.c.bf16 %v517_v58, %v513_v56  ;;  %v557_v54 = vld [vmem:[#allocation5 + $0xbb0] sm:$0xff]  ;;  %v564_v56 = vld [vmem:[#allocation5 + $0xbe8] sm:$0xff] }
 0x158   :  { %v566_v58 = vld [vmem:[#allocation5 + $0xbf8] sm:$0xff] }
 0x159   :  { %3387 = vmatpush1.bf16.msra.mxu0 %v3386_v3  ;;  %v523_v3 = vld [vmem:[#allocation5 + $0xaa0] sm:$0xff]  ;;  %v594_v43 = vld [vmem:[#allocation5 + $0xcd8] sm:$0xff] }
 0x15a   :  { %3611 = vmatpush1.bf16.msra.mxu1 %v3610_v4  ;;  %3389 = vmatprep.subr.bf16.mxu0 %v3388_v5  ;;  %v521_v4 = vld [vmem:[#allocation5 + $0xa90] sm:$0xff]  ;;  %v3632_v5 = vpack.c.bf16 %v526_v62, %v522_v61  ;;  %v3410_v11 = vpack.c.bf16 %v523_v3, %v519_v2  ;;  %v3428_v61 = vpack.c.bf16 %v564_v56, %v560_v55  ;;  %v559_v62 = vld [vmem:[#allocation5 + $0xbc0] sm:$0xff]  ;;  %v568_v3 = vld [vmem:[#allocation5 + $0xc08] sm:$0xff] }
 0x15b   :  { %3613 = vmatprep.subr.bf16.mxu1 %v3612_v9  ;;  %v530_v9 = vld [vmem:[#allocation5 + $0xad8] sm:$0xff]  ;;  %v3634_v12 = vpack.c.bf16 %v525_v6, %v521_v4  ;;  %v565_v2 = vld [vmem:[#allocation5 + $0xbf0] sm:$0xff]  ;;  %v572_v4 = vld [vmem:[#allocation5 + $0xc28] sm:$0xff] }
 0x15c   :  { %v574_v6 = vld [vmem:[#allocation5 + $0xc38] sm:$0xff] }
 0x15d   :  { %3391 = vmatpush1.bf16.msra.mxu0 %v3390_v15  ;;  %v531_v15 = vld [vmem:[#allocation5 + $0xae0] sm:$0xff]  ;;  %v598_v44 = vld [vmem:[#allocation5 + $0xcf8] sm:$0xff] }
 0x15e   :  { %3615 = vmatpush1.bf16.msra.mxu1 %v3614_v16  ;;  %3393 = vmatprep.subr.bf16.mxu0 %v3392_v17  ;;  %v529_v16 = vld [vmem:[#allocation5 + $0xad0] sm:$0xff]  ;;  %v3636_v17 = vpack.c.bf16 %v534_v10, %v530_v9  ;;  %v3414_v23 = vpack.c.bf16 %v531_v15, %v527_v14  ;;  %v3432_v9 = vpack.c.bf16 %v572_v4, %v568_v3  ;;  %v567_v10 = vld [vmem:[#allocation5 + $0xc00] sm:$0xff]  ;;  %v576_v15 = vld [vmem:[#allocation5 + $0xc48] sm:$0xff] }
 0x15f   :  { %3617 = vmatprep.subr.bf16.mxu1 %v3616_v21  ;;  %v538_v21 = vld [vmem:[#allocation5 + $0xb18] sm:$0xff]  ;;  %v3638_v24 = vpack.c.bf16 %v533_v18, %v529_v16  ;;  %v573_v14 = vld [vmem:[#allocation5 + $0xc30] sm:$0xff]  ;;  %v580_v16 = vld [vmem:[#allocation5 + $0xc68] sm:$0xff] }
 0x160   :  { %v582_v18 = vld [vmem:[#allocation5 + $0xc78] sm:$0xff] }
 0x161   :  { %3395 = vmatpush1.bf16.msra.mxu0 %v3394_v27  ;;  %v539_v27 = vld [vmem:[#allocation5 + $0xb20] sm:$0xff]  ;;  %v602_v55 = vld [vmem:[#allocation5 + $0xd18] sm:$0xff] }
 0x162   :  { %3619 = vmatpush1.bf16.msra.mxu1 %v3618_v28  ;;  %3397 = vmatprep.subr.bf16.mxu0 %v3396_v29  ;;  %v537_v28 = vld [vmem:[#allocation5 + $0xb10] sm:$0xff]  ;;  %v3640_v29 = vpack.c.bf16 %v542_v22, %v538_v21  ;;  %v3418_v35 = vpack.c.bf16 %v539_v27, %v535_v26  ;;  %v3436_v22 = vpack.c.bf16 %v580_v16, %v576_v15  ;;  %v606_v56 = vld [vmem:[#allocation5 + $0xd38] sm:$0xff] }
 0x163   :  { %3621 = vmatprep.subr.bf16.mxu1 %v3620_v33  ;;  %v546_v33 = vld [vmem:[#allocation5 + $0xb58] sm:$0xff]  ;;  %v3642_v36 = vpack.c.bf16 %v541_v30, %v537_v28  ;;  %v581_v27 = vld [vmem:[#allocation5 + $0xc70] sm:$0xff]  ;;  %v584_v28 = vld [vmem:[#allocation5 + $0xc88] sm:$0xff] }
 0x164   :  { %v586_v30 = vld [vmem:[#allocation5 + $0xc98] sm:$0xff] }
 0x165   :  { %3399 = vmatpush1.bf16.msra.mxu0 %v3398_v39  ;;  %v547_v39 = vld [vmem:[#allocation5 + $0xb60] sm:$0xff]  ;;  %v610_v3 = vld [vmem:[#allocation5 + $0xd58] sm:$0xff] }
 0x166   :  { %3623 = vmatpush1.bf16.msra.mxu1 %v3622_v40  ;;  %3401 = vmatprep.subr.bf16.mxu0 %v3400_v41  ;;  %v545_v40 = vld [vmem:[#allocation5 + $0xb50] sm:$0xff]  ;;  %v3644_v41 = vpack.c.bf16 %v550_v34, %v546_v33  ;;  %v3422_v47 = vpack.c.bf16 %v547_v39, %v543_v38  ;;  %v3664_v38 = vpack.c.bf16 %v590_v31, %v586_v30  ;;  %v614_v4 = vld [vmem:[#allocation5 + $0xd78] sm:$0xff] }
 0x167   :  { %3625 = vmatprep.subr.bf16.mxu1 %v3624_v45  ;;  %v554_v45 = vld [vmem:[#allocation5 + $0xb98] sm:$0xff]  ;;  %v3646_v48 = vpack.c.bf16 %v549_v42, %v545_v40  ;;  %v589_v39 = vld [vmem:[#allocation5 + $0xcb0] sm:$0xff]  ;;  %v592_v40 = vld [vmem:[#allocation5 + $0xcc8] sm:$0xff]  ;;  %v4874_v42 = vmov 0.0  }
 0x168   :  { %v618_v15 = vld [vmem:[#allocation5 + $0xd98] sm:$0xff] }
 0x169   :  { %3403 = vmatpush1.bf16.msra.mxu0 %v3402_v51  ;;  %v555_v51 = vld [vmem:[#allocation5 + $0xba0] sm:$0xff]  ;;  %v622_v16 = vld [vmem:[#allocation5 + $0xdb8] sm:$0xff] }
 0x16a   :  { %3627 = vmatpush1.bf16.msra.mxu1 %v3626_v52  ;;  %3405 = vmatprep.subr.bf16.mxu0 %v3404_v53  ;;  %v553_v52 = vld [vmem:[#allocation5 + $0xb90] sm:$0xff]  ;;  %v3648_v53 = vpack.c.bf16 %v558_v46, %v554_v45  ;;  %v3426_v59 = vpack.c.bf16 %v555_v51, %v551_v50  ;;  %v3668_v51 = vpack.c.bf16 %v598_v44, %v594_v43  ;;  %v1225_v44 = vld [vmem:[#allocation8] sm:$0xff] }
 0x16b   :  { %3629 = vmatprep.subr.bf16.mxu1 %v3628_v57  ;;  %v562_v57 = vld [vmem:[#allocation5 + $0xbd8] sm:$0xff]  ;;  %v3650_v60 = vpack.c.bf16 %v557_v54, %v553_v52  ;;  %v593_v50 = vld [vmem:[#allocation5 + $0xcd0] sm:$0xff]  ;;  %v604_v54 = vld [vmem:[#allocation5 + $0xd28] sm:$0xff] }
 0x16c   :  { %v597_v52 = vld [vmem:[#allocation5 + $0xcf0] sm:$0xff] }
 0x16d   :  { %3407 = vmatpush1.bf16.msra.mxu0 %v3406_v63  ;;  %v563_v63 = vld [vmem:[#allocation5 + $0xbe0] sm:$0xff] }
 0x16e   :  { %3631 = vmatpush1.bf16.msra.mxu1 %v3630_v0  ;;  %3409 = vmatprep.subr.bf16.mxu0 %v3408_v1  ;;  %v561_v0 = vld [vmem:[#allocation5 + $0xbd0] sm:$0xff]  ;;  %v3652_v1 = vpack.c.bf16 %v566_v58, %v562_v57  ;;  %v3430_v7 = vpack.c.bf16 %v563_v63, %v559_v62  ;;  %v3670_v58 = vpack.c.bf16 %v597_v52, %v593_v50  ;;  %v1240_v52 = vld [vmem:[#allocation8 + $0x78] sm:$0xff] }
 0x16f   :  { %3633 = vmatprep.subr.bf16.mxu1 %v3632_v5  ;;  %v570_v5 = vld [vmem:[#allocation5 + $0xc18] sm:$0xff]  ;;  %v3654_v8 = vpack.c.bf16 %v565_v2, %v561_v0  ;;  %v601_v62 = vld [vmem:[#allocation5 + $0xd10] sm:$0xff]  ;;  %v3672_v63 = vpack.c.bf16 %v606_v56, %v602_v55  ;;  %v612_v2 = vld [vmem:[#allocation5 + $0xd68] sm:$0xff] }
 0x170   :  { %v605_v0 = vld [vmem:[#allocation5 + $0xd30] sm:$0xff] }
 0x171   :  { %3411 = vmatpush1.bf16.msra.mxu0 %v3410_v11  ;;  %v571_v11 = vld [vmem:[#allocation5 + $0xc20] sm:$0xff]  ;;  %v1238_v50 = vld [vmem:[#allocation8 + $0x68] sm:$0xff] }
 0x172   :  { %3635 = vmatpush1.bf16.msra.mxu1 %v3634_v12  ;;  %3413 = vmatprep.subr.bf16.mxu0 %v3412_v13  ;;  %v569_v12 = vld [vmem:[#allocation5 + $0xc10] sm:$0xff]  ;;  %v3656_v13 = vpack.c.bf16 %v574_v6, %v570_v5  ;;  %v3434_v20 = vpack.c.bf16 %v571_v11, %v567_v10  ;;  %v3674_v6 = vpack.c.bf16 %v605_v0, %v601_v62  ;;  %v1244_v0 = vld [vmem:[#allocation8 + $0x98] sm:$0xff] }
 0x173   :  { %3637 = vmatprep.subr.bf16.mxu1 %v3636_v17  ;;  %v578_v17 = vld [vmem:[#allocation5 + $0xc58] sm:$0xff]  ;;  %v3658_v21 = vpack.c.bf16 %v573_v14, %v569_v12  ;;  %v609_v10 = vld [vmem:[#allocation5 + $0xd50] sm:$0xff]  ;;  %v3676_v11 = vpack.c.bf16 %v614_v4, %v610_v3  ;;  %v620_v14 = vld [vmem:[#allocation5 + $0xda8] sm:$0xff] }
 0x174   :  { %v3660_v26 = vpack.c.bf16 %v582_v18, %v578_v17  ;;  %v613_v12 = vld [vmem:[#allocation5 + $0xd70] sm:$0xff] }
 0x175   :  { %3415 = vmatpush1.bf16.msra.mxu0 %v3414_v23  ;;  %v575_v23 = vld [vmem:[#allocation5 + $0xc40] sm:$0xff]  ;;  %v3678_v18 = vpack.c.bf16 %v613_v12, %v609_v10  ;;  %v1242_v62 = vld [vmem:[#allocation8 + $0x88] sm:$0xff] }
 0x176   :  { %3639 = vmatpush1.bf16.msra.mxu1 %v3638_v24  ;;  %3417 = vmatprep.subr.bf16.mxu0 %v3416_v25  ;;  %v579_v24 = vld [vmem:[#allocation5 + $0xc60] sm:$0xff]  ;;  %v577_v25 = vld [vmem:[#allocation5 + $0xc50] sm:$0xff] }
 0x177   :  { %3641 = vmatprep.subr.bf16.mxu1 %v3640_v29  ;;  %v588_v29 = vld [vmem:[#allocation5 + $0xca8] sm:$0xff]  ;;  %v3438_v32 = vpack.c.bf16 %v579_v24, %v575_v23  ;;  %v3662_v33 = vpack.c.bf16 %v581_v27, %v577_v25  ;;  %v3680_v23 = vpack.c.bf16 %v622_v16, %v618_v15  ;;  %v621_v24 = vld [vmem:[#allocation5 + $0xdb0] sm:$0xff]  ;;  %v626_v27 = vld [vmem:[#allocation5 + $0xdd8] sm:$0xff] }
 0x178   :  { %v3440_v34 = vpack.c.bf16 %v588_v29, %v584_v28  ;;  %v624_v25 = vld [vmem:[#allocation5 + $0xdc8] sm:$0xff]  ;;  %v630_v28 = vld [vmem:[#allocation5 + $0xdf8] sm:$0xff] }
 0x179   :  { %3419 = vmatpush1.bf16.msra.mxu0 %v3418_v35  ;;  %v583_v35 = vld [vmem:[#allocation5 + $0xc80] sm:$0xff]  ;;  %v1250_v10 = vld [vmem:[#allocation8 + $0xc8] sm:$0xff] }
 0x17a   :  { %3643 = vmatpush1.bf16.msra.mxu1 %v3642_v36  ;;  %3421 = vmatprep.subr.bf16.mxu0 %v3420_v37  ;;  %v587_v36 = vld [vmem:[#allocation5 + $0xca0] sm:$0xff]  ;;  %v585_v37 = vld [vmem:[#allocation5 + $0xc90] sm:$0xff] }
 0x17b   :  { %3645 = vmatprep.subr.bf16.mxu1 %v3644_v41  ;;  %v596_v41 = vld [vmem:[#allocation5 + $0xce8] sm:$0xff]  ;;  %v3442_v45 = vpack.c.bf16 %v587_v36, %v583_v35  ;;  %v3666_v46 = vpack.c.bf16 %v589_v39, %v585_v37  ;;  %v3684_v35 = vpack.c.bf16 %v630_v28, %v626_v27  ;;  %v629_v36 = vld [vmem:[#allocation5 + $0xdf0] sm:$0xff]  ;;  %v1228_v39 = vld [vmem:[#allocation8 + $0x18] sm:$0xff] }
 0x17c   :  { %v1226_v37 = vld [vmem:[#allocation8 + $0x8] sm:$0xff]  ;;  %v1252_v12 = vld [vmem:[#allocation8 + $0xd8] sm:$0xff] }
 0x17d   :  { %3423 = vmatpush1.bf16.msra.mxu0 %v3422_v47  ;;  %v3444_v47 = vpack.c.bf16 %v596_v41, %v592_v40  ;;  %v1232_v40 = vld [vmem:[#allocation8 + $0x38] sm:$0xff] }
 0x17e   :  { %3647 = vmatpush1.bf16.msra.mxu1 %v3646_v48  ;;  %3425 = vmatprep.subr.bf16.mxu0 %v3424_v49  ;;  %v591_v48 = vld [vmem:[#allocation5 + $0xcc0] sm:$0xff] }
 0x17f   :  { %3649 = vmatprep.subr.bf16.mxu1 %v3648_v53  ;;  %v595_v49 = vld [vmem:[#allocation5 + $0xce0] sm:$0xff]  ;;  %v600_v53 = vld [vmem:[#allocation5 + $0xd08] sm:$0xff] }
 0x180   :  { %v3446_v57 = vpack.c.bf16 %v595_v49, %v591_v48  ;;  %v1231_v48 = vld [vmem:[#allocation8 + $0x30] sm:$0xff]  ;;  %v1234_v49 = vld [vmem:[#allocation8 + $0x48] sm:$0xff] }
 0x181   :  { %3427 = vmatpush1.bf16.msra.mxu0 %v3426_v59  ;;  %v3448_v59 = vpack.c.bf16 %v604_v54, %v600_v53  ;;  %v182_v53 = vld [vmem:[#allocation2 + $0x30] sm:$0xff]  ;;  %v3692_v56 = vpack.c.bf16 %v1238_v50, %v1234_v49 }
 0x182   :  { %3651 = vmatpush1.bf16.msra.mxu1 %v3650_v60  ;;  %3429 = vmatprep.subr.bf16.mxu0 %v3428_v61  ;;  %v599_v60 = vld [vmem:[#allocation5 + $0xd00] sm:$0xff] }
 0x183   :  { %3653 = vmatprep.subr.bf16.mxu1 %v3652_v1  ;;  %v603_v61 = vld [vmem:[#allocation5 + $0xd20] sm:$0xff]  ;;  %v608_v1 = vld [vmem:[#allocation5 + $0xd48] sm:$0xff] }
 0x184   :  { %v3450_v5 = vpack.c.bf16 %v603_v61, %v599_v60  ;;  %v1239_v61 = vld [vmem:[#allocation8 + $0x70] sm:$0xff]  ;;  %v1280_v49 = vld [vmem:[#allocation8 + $0x1b8] sm:$0xff] }
 0x185   :  { %3431 = vmatpush1.bf16.msra.mxu0 %v3430_v7  ;;  %v3452_v7 = vpack.c.bf16 %v612_v2, %v608_v1  ;;  %v1248_v1 = vld [vmem:[#allocation8 + $0xb8] sm:$0xff] }
 0x186   :  { %3655 = vmatpush1.bf16.msra.mxu1 %v3654_v8  ;;  %3433 = vmatprep.subr.bf16.mxu0 %v3432_v9  ;;  %v607_v8 = vld [vmem:[#allocation5 + $0xd40] sm:$0xff] }
 0x187   :  { %3657 = vmatprep.subr.bf16.mxu1 %v3656_v13  ;;  %v611_v9 = vld [vmem:[#allocation5 + $0xd60] sm:$0xff]  ;;  %v616_v13 = vld [vmem:[#allocation5 + $0xd88] sm:$0xff] }
 0x188   :  { %860 = vmatmul.mubr.f32.vlgmr.msra.gmra.mrb[0].mxu0 %v180_v19  ;;  %v3454_v17 = vpack.c.bf16 %v611_v9, %v607_v8  ;;  %v3824_v8 = vpack.c.bf16 %v1248_v1, %v1244_v0  ;;  %v1247_v9 = vld [vmem:[#allocation8 + $0xb0] sm:$0xff]  ;;  %v1281_v1 = vld [vmem:[#allocation8 + $0x1c0] sm:$0xff] }
 0x189   :  { %3435 = vmatpush1.bf16.msra.mxu0 %v3434_v20  ;;  %1144 = vmatmul.mubr.f32.vlgmr.msra.gmra.mrb[0].mxu1 %v180_v19  ;;  %v3456_v19 = vpack.c.bf16 %v620_v14, %v616_v13  ;;  %v615_v20 = vld [vmem:[#allocation5 + $0xd80] sm:$0xff] }
 0x18a   :  { %3659 = vmatpush1.bf16.msra.mxu1 %v3658_v21  ;;  %3437 = vmatprep.subr.bf16.mxu0 %v3436_v22  ;;  %v619_v21 = vld [vmem:[#allocation5 + $0xda0] sm:$0xff]  ;;  %v617_v22 = vld [vmem:[#allocation5 + $0xd90] sm:$0xff] }
 0x18b   :  { %3661 = vmatprep.subr.bf16.mxu1 %v3660_v26  ;;  %930 = vmatprep.mubr.f32.mxu0 %v4874_v42  ;;  %v628_v26 = vld [vmem:[#allocation5 + $0xde8] sm:$0xff]  ;;  %v3458_v29 = vpack.c.bf16 %v619_v21, %v615_v20  ;;  %v3682_v30 = vpack.c.bf16 %v621_v24, %v617_v22  ;;  %v1256_v13 = vld [vmem:[#allocation8 + $0xf8] sm:$0xff]  ;;  %v1255_v21 = vld [vmem:[#allocation8 + $0xf0] sm:$0xff] }
 0x18c   :  { %1214 = vmatprep.mubr.f32.mxu1 %v4874_v42  ;;  %v3460_v31 = vpack.c.bf16 %v628_v26, %v624_v25  ;;  %v3828_v20 = vpack.c.bf16 %v1256_v13, %v1252_v12  ;;  %v1258_v22 = vld [vmem:[#allocation8 + $0x108] sm:$0xff]  ;;  %v1260_v24 = vld [vmem:[#allocation8 + $0x118] sm:$0xff]  ;;  %v1289_v13 = vld [vmem:[#allocation8 + $0x200] sm:$0xff] }
 0x18d   :  { %3439 = vmatpush1.bf16.msra.mxu0 %v3438_v32  ;;  %v623_v32 = vld [vmem:[#allocation5 + $0xdc0] sm:$0xff] }
 0x18e   :  { %3663 = vmatpush1.bf16.msra.mxu1 %v3662_v33  ;;  %3441 = vmatprep.subr.bf16.mxu0 %v3440_v34  ;;  %v627_v33 = vld [vmem:[#allocation5 + $0xde0] sm:$0xff]  ;;  %v625_v34 = vld [vmem:[#allocation5 + $0xdd0] sm:$0xff] }
 0x18f   :  { %3665 = vmatprep.subr.bf16.mxu1 %v3664_v38  ;;  %v1230_v38 = vld [vmem:[#allocation8 + $0x28] sm:$0xff]  ;;  %v3462_v41 = vpack.c.bf16 %v627_v33, %v623_v32  ;;  %v3686_v42 = vpack.c.bf16 %v629_v36, %v625_v34  ;;  %v1264_v25 = vld [vmem:[#allocation8 + $0x138] sm:$0xff]  ;;  %v1263_v33 = vld [vmem:[#allocation8 + $0x130] sm:$0xff] }
 0x190   :  { %v3688_v43 = vpack.c.bf16 %v1230_v38, %v1226_v37  ;;  %v3832_v32 = vpack.c.bf16 %v1264_v25, %v1260_v24  ;;  %v1266_v34 = vld [vmem:[#allocation8 + $0x148] sm:$0xff]  ;;  %v1268_v36 = vld [vmem:[#allocation8 + $0x158] sm:$0xff]  ;;  %v1297_v25 = vld [vmem:[#allocation8 + $0x240] sm:$0xff] }
 0x191   :  { %3443 = vmatpush1.bf16.msra.mxu0 %v3442_v45  ;;  %v1229_v45 = vld [vmem:[#allocation8 + $0x20] sm:$0xff]  ;;  %v1272_v37 = vld [vmem:[#allocation8 + $0x178] sm:$0xff] }
 0x192   :  { %3667 = vmatpush1.bf16.msra.mxu1 %v3666_v46  ;;  %3445 = vmatprep.subr.bf16.mxu0 %v3444_v47  ;;  %v1227_v46 = vld [vmem:[#allocation8 + $0x10] sm:$0xff]  ;;  %v3816_v47 = vpack.c.bf16 %v1232_v40, %v1228_v39  ;;  %v3690_v54 = vpack.c.bf16 %v1229_v45, %v1225_v44  ;;  %v3836_v44 = vpack.c.bf16 %v1272_v37, %v1268_v36  ;;  %v1305_v37 = vld [vmem:[#allocation8 + $0x280] sm:$0xff] }
 0x193   :  { %3669 = vmatprep.subr.bf16.mxu1 %v3668_v51  ;;  %v1236_v51 = vld [vmem:[#allocation8 + $0x58] sm:$0xff]  ;;  %v3818_v55 = vpack.c.bf16 %v1231_v48, %v1227_v46  ;;  %v1271_v45 = vld [vmem:[#allocation8 + $0x170] sm:$0xff]  ;;  %v1274_v46 = vld [vmem:[#allocation8 + $0x188] sm:$0xff] }
 0x194   :  { %v3820_v60 = vpack.c.bf16 %v1240_v52, %v1236_v51  ;;  %v1276_v48 = vld [vmem:[#allocation8 + $0x198] sm:$0xff] }
 0x195   :  { %3447 = vmatpush1.bf16.msra.mxu0 %v3446_v57  ;;  %v1233_v57 = vld [vmem:[#allocation8 + $0x40] sm:$0xff] }
 0x196   :  { %3671 = vmatpush1.bf16.msra.mxu1 %v3670_v58  ;;  %3449 = vmatprep.subr.bf16.mxu0 %v3448_v59  ;;  %v1237_v58 = vld [vmem:[#allocation8 + $0x60] sm:$0xff]  ;;  %v1235_v59 = vld [vmem:[#allocation8 + $0x50] sm:$0xff] }
 0x197   :  { %3673 = vmatprep.subr.bf16.mxu1 %v3672_v63  ;;  %v1246_v63 = vld [vmem:[#allocation8 + $0xa8] sm:$0xff]  ;;  %v3694_v2 = vpack.c.bf16 %v1237_v58, %v1233_v57  ;;  %v3822_v3 = vpack.c.bf16 %v1239_v61, %v1235_v59  ;;  %v1279_v57 = vld [vmem:[#allocation8 + $0x1b0] sm:$0xff]  ;;  %v1288_v61 = vld [vmem:[#allocation8 + $0x1f8] sm:$0xff] }
 0x198   :  { %v3696_v4 = vpack.c.bf16 %v1246_v63, %v1242_v62  ;;  %v1282_v58 = vld [vmem:[#allocation8 + $0x1c8] sm:$0xff] }
 0x199   :  { %3451 = vmatpush1.bf16.msra.mxu0 %v3450_v5  ;;  %v1241_v5 = vld [vmem:[#allocation8 + $0x80] sm:$0xff]  ;;  %v1286_v59 = vld [vmem:[#allocation8 + $0x1e8] sm:$0xff] }
 0x19a   :  { %3675 = vmatpush1.bf16.msra.mxu1 %v3674_v6  ;;  %3453 = vmatprep.subr.bf16.mxu0 %v3452_v7  ;;  %v1245_v6 = vld [vmem:[#allocation8 + $0xa0] sm:$0xff]  ;;  %v1243_v7 = vld [vmem:[#allocation8 + $0x90] sm:$0xff]  ;;  %v3716_v0 = vpack.c.bf16 %v1286_v59, %v1282_v58 }
 0x19b   :  { %3677 = vmatprep.subr.bf16.mxu1 %v3676_v11  ;;  %v1254_v11 = vld [vmem:[#allocation8 + $0xe8] sm:$0xff]  ;;  %v3698_v14 = vpack.c.bf16 %v1245_v6, %v1241_v5  ;;  %v3826_v15 = vpack.c.bf16 %v1247_v9, %v1243_v7  ;;  %v1287_v5 = vld [vmem:[#allocation8 + $0x1f0] sm:$0xff]  ;;  %v1296_v9 = vld [vmem:[#allocation8 + $0x238] sm:$0xff] }
 0x19c   :  { %v3700_v16 = vpack.c.bf16 %v1254_v11, %v1250_v10  ;;  %v1290_v6 = vld [vmem:[#allocation8 + $0x208] sm:$0xff] }
 0x19d   :  { %3455 = vmatpush1.bf16.msra.mxu0 %v3454_v17  ;;  %v1249_v17 = vld [vmem:[#allocation8 + $0xc0] sm:$0xff]  ;;  %v1294_v7 = vld [vmem:[#allocation8 + $0x228] sm:$0xff] }
 0x19e   :  { %3679 = vmatpush1.bf16.msra.mxu1 %v3678_v18  ;;  %3457 = vmatprep.subr.bf16.mxu0 %v3456_v19  ;;  %v1253_v18 = vld [vmem:[#allocation8 + $0xe0] sm:$0xff]  ;;  %v1251_v19 = vld [vmem:[#allocation8 + $0xd0] sm:$0xff]  ;;  %v3720_v12 = vpack.c.bf16 %v1294_v7, %v1290_v6 }
 0x19f   :  { %3681 = vmatprep.subr.bf16.mxu1 %v3680_v23  ;;  %v1262_v23 = vld [vmem:[#allocation8 + $0x128] sm:$0xff]  ;;  %v3702_v26 = vpack.c.bf16 %v1253_v18, %v1249_v17  ;;  %v3830_v27 = vpack.c.bf16 %v1255_v21, %v1251_v19  ;;  %v1295_v17 = vld [vmem:[#allocation8 + $0x230] sm:$0xff]  ;;  %v1304_v21 = vld [vmem:[#allocation8 + $0x278] sm:$0xff] }
 0x1a0   :  { %v3704_v28 = vpack.c.bf16 %v1262_v23, %v1258_v22  ;;  %v1298_v18 = vld [vmem:[#allocation8 + $0x248] sm:$0xff] }
 0x1a1   :  { %3459 = vmatpush1.bf16.msra.mxu0 %v3458_v29  ;;  %v1257_v29 = vld [vmem:[#allocation8 + $0x100] sm:$0xff]  ;;  %v1302_v19 = vld [vmem:[#allocation8 + $0x268] sm:$0xff] }
 0x1a2   :  { %3683 = vmatpush1.bf16.msra.mxu1 %v3682_v30  ;;  %3461 = vmatprep.subr.bf16.mxu0 %v3460_v31  ;;  %v1261_v30 = vld [vmem:[#allocation8 + $0x120] sm:$0xff]  ;;  %v1259_v31 = vld [vmem:[#allocation8 + $0x110] sm:$0xff]  ;;  %v3724_v24 = vpack.c.bf16 %v1302_v19, %v1298_v18 }
 0x1a3   :  { %3685 = vmatprep.subr.bf16.mxu1 %v3684_v35  ;;  %v1270_v35 = vld [vmem:[#allocation8 + $0x168] sm:$0xff]  ;;  %v3706_v38 = vpack.c.bf16 %v1261_v30, %v1257_v29  ;;  %v3834_v39 = vpack.c.bf16 %v1263_v33, %v1259_v31  ;;  %v1303_v29 = vld [vmem:[#allocation8 + $0x270] sm:$0xff]  ;;  %v1312_v33 = vld [vmem:[#allocation8 + $0x2b8] sm:$0xff] }
 0x1a4   :  { %v3708_v40 = vpack.c.bf16 %v1270_v35, %v1266_v34  ;;  %v1306_v30 = vld [vmem:[#allocation8 + $0x288] sm:$0xff] }
 0x1a5   :  { %3463 = vmatpush1.bf16.msra.mxu0 %v3462_v41  ;;  %v1265_v41 = vld [vmem:[#allocation8 + $0x140] sm:$0xff]  ;;  %v1310_v31 = vld [vmem:[#allocation8 + $0x2a8] sm:$0xff] }
 0x1a6   :  { %3687 = vmatpush1.bf16.msra.mxu1 %v3686_v42  ;;  %3689 = vmatprep.subr.bf16.mxu0 %v3688_v43  ;;  %v1269_v42 = vld [vmem:[#allocation8 + $0x160] sm:$0xff]  ;;  %v1267_v43 = vld [vmem:[#allocation8 + $0x150] sm:$0xff]  ;;  %v3728_v36 = vpack.c.bf16 %v1310_v31, %v1306_v30  ;;  %v1348_v30 = vld [vmem:[#allocation8 + $0x3d8] sm:$0xff] }
 0x1a7   :  { %3817 = vmatprep.subr.bf16.mxu1 %v3816_v47  ;;  %v1278_v47 = vld [vmem:[#allocation8 + $0x1a8] sm:$0xff]  ;;  %v3710_v50 = vpack.c.bf16 %v1269_v42, %v1265_v41  ;;  %v3838_v51 = vpack.c.bf16 %v1271_v45, %v1267_v43  ;;  %v1311_v41 = vld [vmem:[#allocation8 + $0x2b0] sm:$0xff]  ;;  %v1320_v45 = vld [vmem:[#allocation8 + $0x2f8] sm:$0xff] }
 0x1a8   :  { %931 = vmatmul.mubr.f32.vlgmr.msra.gmra.mrb[0].mxu0 %v182_v53  ;;  %v3712_v52 = vpack.c.bf16 %v1278_v47, %v1274_v46  ;;  %v1314_v42 = vld [vmem:[#allocation8 + $0x2c8] sm:$0xff] }
 0x1a9   :  { %1215 = vmatmul.mubr.f32.vlgmr.msra.gmra.mrb[0].mxu1 %v182_v53  ;;  %3691 = vmatpush1.bf16.msra.mxu0 %v3690_v54  ;;  %v1273_v53 = vld [vmem:[#allocation8 + $0x180] sm:$0xff]  ;;  %v1318_v43 = vld [vmem:[#allocation8 + $0x2e8] sm:$0xff] }
 0x1aa   :  { %3819 = vmatpush1.bf16.msra.mxu1 %v3818_v55  ;;  %3693 = vmatprep.subr.bf16.mxu0 %v3692_v56  ;;  %v1277_v54 = vld [vmem:[#allocation8 + $0x1a0] sm:$0xff]  ;;  %v1275_v55 = vld [vmem:[#allocation8 + $0x190] sm:$0xff]  ;;  %v3840_v56 = vpack.c.bf16 %v1280_v49, %v1276_v48  ;;  %v3732_v48 = vpack.c.bf16 %v1318_v43, %v1314_v42  ;;  %v1356_v42 = vld [vmem:[#allocation8 + $0x418] sm:$0xff] }
 0x1ab   :  { %3821 = vmatprep.subr.bf16.mxu1 %v3820_v60  ;;  %v1284_v60 = vld [vmem:[#allocation8 + $0x1d8] sm:$0xff]  ;;  %v3714_v62 = vpack.c.bf16 %v1277_v54, %v1273_v53  ;;  %v3842_v63 = vpack.c.bf16 %v1279_v57, %v1275_v55  ;;  %v1313_v49 = vld [vmem:[#allocation8 + $0x2c0] sm:$0xff]  ;;  %v1319_v53 = vld [vmem:[#allocation8 + $0x2f0] sm:$0xff] }
 0x1ac   :  { %v1322_v54 = vld [vmem:[#allocation8 + $0x308] sm:$0xff]  ;;  %v1328_v57 = vld [vmem:[#allocation8 + $0x338] sm:$0xff] }
 0x1ad   :  { %3695 = vmatpush1.bf16.msra.mxu0 %v3694_v2  ;;  %v1285_v2 = vld [vmem:[#allocation8 + $0x1e0] sm:$0xff]  ;;  %v1326_v55 = vld [vmem:[#allocation8 + $0x328] sm:$0xff] }
 0x1ae   :  { %3823 = vmatpush1.bf16.msra.mxu1 %v3822_v3  ;;  %3697 = vmatprep.subr.bf16.mxu0 %v3696_v4  ;;  %v1283_v3 = vld [vmem:[#allocation8 + $0x1d0] sm:$0xff]  ;;  %v3844_v4 = vpack.c.bf16 %v1288_v61, %v1284_v60  ;;  %v3718_v10 = vpack.c.bf16 %v1285_v2, %v1281_v1  ;;  %v3736_v60 = vpack.c.bf16 %v1326_v55, %v1322_v54  ;;  %v1321_v61 = vld [vmem:[#allocation8 + $0x300] sm:$0xff]  ;;  %v1330_v2 = vld [vmem:[#allocation8 + $0x348] sm:$0xff] }
 0x1af   :  { %3825 = vmatprep.subr.bf16.mxu1 %v3824_v8  ;;  %v1292_v8 = vld [vmem:[#allocation8 + $0x218] sm:$0xff]  ;;  %v3846_v11 = vpack.c.bf16 %v1287_v5, %v1283_v3  ;;  %v1327_v1 = vld [vmem:[#allocation8 + $0x330] sm:$0xff]  ;;  %v1334_v3 = vld [vmem:[#allocation8 + $0x368] sm:$0xff] }
 0x1b0   :  { %v1336_v5 = vld [vmem:[#allocation8 + $0x378] sm:$0xff] }
 0x1b1   :  { %3699 = vmatpush1.bf16.msra.mxu0 %v3698_v14  ;;  %v1293_v14 = vld [vmem:[#allocation8 + $0x220] sm:$0xff] }
 0x1b2   :  { %3827 = vmatpush1.bf16.msra.mxu1 %v3826_v15  ;;  %3701 = vmatprep.subr.bf16.mxu0 %v3700_v16  ;;  %v1291_v15 = vld [vmem:[#allocation8 + $0x210] sm:$0xff]  ;;  %v3848_v16 = vpack.c.bf16 %v1296_v9, %v1292_v8  ;;  %v3722_v22 = vpack.c.bf16 %v1293_v14, %v1289_v13  ;;  %v3740_v8 = vpack.c.bf16 %v1334_v3, %v1330_v2  ;;  %v1329_v9 = vld [vmem:[#allocation8 + $0x340] sm:$0xff]  ;;  %v1338_v14 = vld [vmem:[#allocation8 + $0x388] sm:$0xff] }
 0x1b3   :  { %3829 = vmatprep.subr.bf16.mxu1 %v3828_v20  ;;  %v1300_v20 = vld [vmem:[#allocation8 + $0x258] sm:$0xff]  ;;  %v3850_v23 = vpack.c.bf16 %v1295_v17, %v1291_v15  ;;  %v1335_v13 = vld [vmem:[#allocation8 + $0x370] sm:$0xff]  ;;  %v1342_v15 = vld [vmem:[#allocation8 + $0x3a8] sm:$0xff] }
 0x1b4   :  { %v1344_v17 = vld [vmem:[#allocation8 + $0x3b8] sm:$0xff]  ;;  %v1366_v3 = vld [vmem:[#allocation8 + $0x468] sm:$0xff] }
 0x1b5   :  { %3703 = vmatpush1.bf16.msra.mxu0 %v3702_v26  ;;  %v1301_v26 = vld [vmem:[#allocation8 + $0x260] sm:$0xff] }
 0x1b6   :  { %3831 = vmatpush1.bf16.msra.mxu1 %v3830_v27  ;;  %3705 = vmatprep.subr.bf16.mxu0 %v3704_v28  ;;  %v1299_v27 = vld [vmem:[#allocation8 + $0x250] sm:$0xff]  ;;  %v3852_v28 = vpack.c.bf16 %v1304_v21, %v1300_v20  ;;  %v3726_v34 = vpack.c.bf16 %v1301_v26, %v1297_v25  ;;  %v3744_v20 = vpack.c.bf16 %v1342_v15, %v1338_v14  ;;  %v1337_v21 = vld [vmem:[#allocation8 + $0x380] sm:$0xff]  ;;  %v1370_v14 = vld [vmem:[#allocation8 + $0x488] sm:$0xff] }
 0x1b7   :  { %3833 = vmatprep.subr.bf16.mxu1 %v3832_v32  ;;  %v1308_v32 = vld [vmem:[#allocation8 + $0x298] sm:$0xff]  ;;  %v3854_v35 = vpack.c.bf16 %v1303_v29, %v1299_v27  ;;  %v1343_v25 = vld [vmem:[#allocation8 + $0x3b0] sm:$0xff]  ;;  %v1350_v29 = vld [vmem:[#allocation8 + $0x3e8] sm:$0xff] }
 0x1b9   :  { %3707 = vmatpush1.bf16.msra.mxu0 %v3706_v38  ;;  %v1309_v38 = vld [vmem:[#allocation8 + $0x2a0] sm:$0xff] }
 0x1ba   :  { %3835 = vmatpush1.bf16.msra.mxu1 %v3834_v39  ;;  %3709 = vmatprep.subr.bf16.mxu0 %v3708_v40  ;;  %v1307_v39 = vld [vmem:[#allocation8 + $0x290] sm:$0xff]  ;;  %v3856_v40 = vpack.c.bf16 %v1312_v33, %v1308_v32  ;;  %v3730_v46 = vpack.c.bf16 %v1309_v38, %v1305_v37  ;;  %v1352_v32 = vld [vmem:[#allocation8 + $0x3f8] sm:$0xff]  ;;  %v1345_v33 = vld [vmem:[#allocation8 + $0x3c0] sm:$0xff] }
 0x1bb   :  { %3837 = vmatprep.subr.bf16.mxu1 %v3836_v44  ;;  %v1316_v44 = vld [vmem:[#allocation8 + $0x2d8] sm:$0xff]  ;;  %v3858_v47 = vpack.c.bf16 %v1311_v41, %v1307_v39  ;;  %v1347_v37 = vld [vmem:[#allocation8 + $0x3d0] sm:$0xff]  ;;  %v1358_v41 = vld [vmem:[#allocation8 + $0x428] sm:$0xff] }
 0x1bc   :  { %v1351_v38 = vld [vmem:[#allocation8 + $0x3f0] sm:$0xff] }
 0x1bd   :  { %3711 = vmatpush1.bf16.msra.mxu0 %v3710_v50  ;;  %v1317_v50 = vld [vmem:[#allocation8 + $0x2e0] sm:$0xff]  ;;  %v3878_v39 = vpack.c.bf16 %v1351_v38, %v1347_v37 }
 0x1be   :  { %3839 = vmatpush1.bf16.msra.mxu1 %v3838_v51  ;;  %3713 = vmatprep.subr.bf16.mxu0 %v3712_v52  ;;  %v1315_v51 = vld [vmem:[#allocation8 + $0x2d0] sm:$0xff]  ;;  %v3860_v52 = vpack.c.bf16 %v1320_v45, %v1316_v44  ;;  %v3734_v58 = vpack.c.bf16 %v1317_v50, %v1313_v49  ;;  %v1360_v44 = vld [vmem:[#allocation8 + $0x438] sm:$0xff] }
 0x1bf   :  { %3841 = vmatprep.subr.bf16.mxu1 %v3840_v56  ;;  %v1324_v56 = vld [vmem:[#allocation8 + $0x318] sm:$0xff]  ;;  %v3862_v59 = vpack.c.bf16 %v1319_v53, %v1315_v51  ;;  %v3880_v45 = vpack.c.bf16 %v1360_v44, %v1356_v42  ;;  %v1390_v42 = vld [vmem:[#allocation8 + $0x528] sm:$0xff] }
 0x1c0   :  { %v5086_v49 = vld [vmem:[#allocation7] sm:$0xf] }
 0x1c1   :  { %3715 = vmatpush1.bf16.msra.mxu0 %v3714_v62  ;;  %v1325_v62 = vld [vmem:[#allocation8 + $0x320] sm:$0xff]  ;;  %v1392_v44 = vld [vmem:[#allocation8 + $0x538] sm:$0xff] }
 0x1c2   :  { %3843 = vmatpush1.bf16.msra.mxu1 %v3842_v63  ;;  %3717 = vmatprep.subr.bf16.mxu0 %v3716_v0  ;;  %v1323_v63 = vld [vmem:[#allocation8 + $0x310] sm:$0xff]  ;;  %v3864_v0 = vpack.c.bf16 %v1328_v57, %v1324_v56  ;;  %v3738_v6 = vpack.c.bf16 %v1325_v62, %v1321_v61  ;;  %v1353_v56 = vld [vmem:[#allocation8 + $0x400] sm:$0xff] }
 0x1c3   :  { %3845 = vmatprep.subr.bf16.mxu1 %v3844_v4  ;;  %v1332_v4 = vld [vmem:[#allocation8 + $0x358] sm:$0xff]  ;;  %v3866_v7 = vpack.c.bf16 %v1327_v1, %v1323_v63  ;;  %v1355_v61 = vld [vmem:[#allocation8 + $0x410] sm:$0xff]  ;;  %v1362_v1 = vld [vmem:[#allocation8 + $0x448] sm:$0xff] }
 0x1c4   :  { %v1359_v62 = vld [vmem:[#allocation8 + $0x430] sm:$0xff]  ;;  %v3756_v15 = vpack.c.bf16 %v1366_v3, %v1362_v1  ;;  %v1397_v3 = vld [vmem:[#allocation8 + $0x560] sm:$0xff] }
 0x1c5   :  { %3719 = vmatpush1.bf16.msra.mxu0 %v3718_v10  ;;  %v1333_v10 = vld [vmem:[#allocation8 + $0x360] sm:$0xff] }
 0x1c6   :  { %3847 = vmatpush1.bf16.msra.mxu1 %v3846_v11  ;;  %3721 = vmatprep.subr.bf16.mxu0 %v3720_v12  ;;  %v1331_v11 = vld [vmem:[#allocation8 + $0x350] sm:$0xff]  ;;  %v3868_v12 = vpack.c.bf16 %v1336_v5, %v1332_v4  ;;  %v3742_v18 = vpack.c.bf16 %v1333_v10, %v1329_v9  ;;  %v1364_v4 = vld [vmem:[#allocation8 + $0x458] sm:$0xff]  ;;  %v1361_v9 = vld [vmem:[#allocation8 + $0x440] sm:$0xff] }
 0x1c7   :  { %3849 = vmatprep.subr.bf16.mxu1 %v3848_v16  ;;  %v1340_v16 = vld [vmem:[#allocation8 + $0x398] sm:$0xff]  ;;  %v3870_v19 = vpack.c.bf16 %v1335_v13, %v1331_v11  ;;  %v1365_v10 = vld [vmem:[#allocation8 + $0x460] sm:$0xff]  ;;  %v1367_v13 = vld [vmem:[#allocation8 + $0x470] sm:$0xff] }
 0x1c8   :  { %v1368_v5 = vld [vmem:[#allocation8 + $0x478] sm:$0xff] }
 0x1c9   :  { %3723 = vmatpush1.bf16.msra.mxu0 %v3722_v22  ;;  %v1341_v22 = vld [vmem:[#allocation8 + $0x3a0] sm:$0xff] }
 0x1ca   :  { %3851 = vmatpush1.bf16.msra.mxu1 %v3850_v23  ;;  %3725 = vmatprep.subr.bf16.mxu0 %v3724_v24  ;;  %v3872_v23 = vpack.c.bf16 %v1344_v17, %v1340_v16  ;;  %v1339_v24 = vld [vmem:[#allocation8 + $0x390] sm:$0xff]  ;;  %v3746_v26 = vpack.c.bf16 %v1341_v22, %v1337_v21  ;;  %v3884_v16 = vpack.c.bf16 %v1368_v5, %v1364_v4  ;;  %v1374_v17 = vld [vmem:[#allocation8 + $0x4a8] sm:$0xff] }
 0x1cb   :  { %3853 = vmatprep.subr.bf16.mxu1 %v3852_v28  ;;  %v3874_v27 = vpack.c.bf16 %v1343_v25, %v1339_v24  ;;  %v1346_v28 = vld [vmem:[#allocation8 + $0x3c8] sm:$0xff]  ;;  %v3758_v21 = vpack.c.bf16 %v1365_v10, %v1361_v9  ;;  %v1373_v24 = vld [vmem:[#allocation8 + $0x4a0] sm:$0xff]  ;;  %v3760_v25 = vpack.c.bf16 %v1374_v17, %v1370_v14  ;;  %v1404_v10 = vld [vmem:[#allocation8 + $0x598] sm:$0xff] }
 0x1cc   :  { %v3748_v31 = vpack.c.bf16 %v1350_v29, %v1346_v28  ;;  %v1375_v28 = vld [vmem:[#allocation8 + $0x4b0] sm:$0xff]  ;;  %v1378_v29 = vld [vmem:[#allocation8 + $0x4c8] sm:$0xff]  ;;  %v1401_v14 = vld [vmem:[#allocation8 + $0x580] sm:$0xff] }
 0x1cd   :  { %3727 = vmatpush1.bf16.msra.mxu0 %v3726_v34  ;;  %v1349_v34 = vld [vmem:[#allocation8 + $0x3e0] sm:$0xff]  ;;  %v1406_v9 = vld [vmem:[#allocation8 + $0x5a8] sm:$0xff] }
 0x1ce   :  { %3855 = vmatpush1.bf16.msra.mxu1 %v3854_v35  ;;  %3729 = vmatprep.subr.bf16.mxu0 %v3728_v36  ;;  %v3876_v35 = vpack.c.bf16 %v1352_v32, %v1348_v30  ;;  %v3750_v36 = vpack.c.bf16 %v1349_v34, %v1345_v33  ;;  %v1382_v30 = vld [vmem:[#allocation8 + $0x4e8] sm:$0xff]  ;;  %v1384_v32 = vld [vmem:[#allocation8 + $0x4f8] sm:$0xff] }
 0x1cf   :  { %3857 = vmatprep.subr.bf16.mxu1 %v3856_v40  ;;  %v1354_v40 = vld [vmem:[#allocation8 + $0x408] sm:$0xff]  ;;  %v3764_v37 = vpack.c.bf16 %v1382_v30, %v1378_v29  ;;  %v1411_v30 = vld [vmem:[#allocation8 + $0x5d0] sm:$0xff] }
 0x1d0   :  { %v3752_v43 = vpack.c.bf16 %v1358_v41, %v1354_v40  ;;  %v1383_v40 = vld [vmem:[#allocation8 + $0x4f0] sm:$0xff]  ;;  %v1386_v41 = vld [vmem:[#allocation8 + $0x508] sm:$0xff] }
 0x1d1   :  { %3731 = vmatpush1.bf16.msra.mxu0 %v3730_v46  ;;  %v633_v46 = vlaneseq }
 0x1d2   :  { %3859 = vmatpush1.bf16.msra.mxu1 %v3858_v47  ;;  %3733 = vmatprep.subr.bf16.mxu0 %v3732_v48 }
 0x1d3   :  { %3861 = vmatprep.subr.bf16.mxu1 %v3860_v52  ;;  %v5081_v47 = vshrl.u32 %v633_v46, 7 }
 0x1d5   :  { %3735 = vmatpush1.bf16.msra.mxu0 %v3734_v58  ;;  %v5084_v48 = vsub.s32 0, %v5081_v47  ;;  %v5089_v50 = vsub.s32 1, %v5081_v47  ;;  %v5092_v51 = vsub.s32 3, %v5081_v47 }
 0x1d6   :  { %3863 = vmatpush1.bf16.msra.mxu1 %v3862_v59  ;;  %3737 = vmatprep.subr.bf16.mxu0 %v3736_v60  ;;  %v1357_v60 = vld [vmem:[#allocation8 + $0x420] sm:$0xff] }
 0x1d7   :  { %3865 = vmatprep.subr.bf16.mxu1 %v3864_v0  ;;  %v636_v52 = vrot.slane %v5086_v49, %v5084_v48  ;;  %v640_v53 = vrot.slane %v5086_v49, %v5089_v50  ;;  %v648_v54 = vrot.slane %v5086_v49, %v5092_v51 }
 0x1d9   :  { %3739 = vmatpush1.bf16.msra.mxu0 %v3738_v6 }
 0x1da   :  { %3867 = vmatpush1.bf16.msra.mxu1 %v3866_v7  ;;  %3741 = vmatprep.subr.bf16.mxu0 %v3740_v8  ;;  %v3754_v7 = vpack.c.bf16 %v1357_v60, %v1353_v56  ;;  %v3882_v8 = vpack.c.bf16 %v1359_v62, %v1355_v61  ;;  %v1394_v60 = vld [vmem:[#allocation8 + $0x548] sm:$0xff]  ;;  %v1396_v62 = vld [vmem:[#allocation8 + $0x558] sm:$0xff] }
 0x1db   :  { %3869 = vmatprep.subr.bf16.mxu1 %v3868_v12  ;;  %v1363_v12 = vld [vmem:[#allocation8 + $0x450] sm:$0xff]  ;;  %v1398_v61 = vld [vmem:[#allocation8 + $0x568] sm:$0xff] }
 0x1dc   :  { %v3886_v22 = vpack.c.bf16 %v1367_v13, %v1363_v12  ;;  %v3772_v4 = vpack.c.bf16 %v1398_v61, %v1394_v60  ;;  %v1427_v61 = vld [vmem:[#allocation8 + $0x650] sm:$0xff] }
 0x1dd   :  { %3743 = vmatpush1.bf16.msra.mxu0 %v3742_v18  ;;  %v1372_v18 = vld [vmem:[#allocation8 + $0x498] sm:$0xff] }
 0x1de   :  { %3871 = vmatpush1.bf16.msra.mxu1 %v3870_v19  ;;  %3745 = vmatprep.subr.bf16.mxu0 %v3744_v20  ;;  %v1376_v19 = vld [vmem:[#allocation8 + $0x4b8] sm:$0xff] }
 0x1df   :  { %3873 = vmatprep.subr.bf16.mxu1 %v3872_v23  ;;  %v1369_v23 = vld [vmem:[#allocation8 + $0x480] sm:$0xff] }
 0x1e0   :  { %v3762_v33 = vpack.c.bf16 %v1373_v24, %v1369_v23  ;;  %v1416_v23 = vld [vmem:[#allocation8 + $0x5f8] sm:$0xff] }
 0x1e1   :  { %3747 = vmatpush1.bf16.msra.mxu0 %v3746_v26  ;;  %v3888_v26 = vpack.c.bf16 %v1376_v19, %v1372_v18  ;;  %v1403_v18 = vld [vmem:[#allocation8 + $0x590] sm:$0xff] }
 0x1e2   :  { %3875 = vmatpush1.bf16.msra.mxu1 %v3874_v27  ;;  %3749 = vmatprep.subr.bf16.mxu0 %v3748_v31  ;;  %v1371_v27 = vld [vmem:[#allocation8 + $0x490] sm:$0xff]  ;;  %v1380_v31 = vld [vmem:[#allocation8 + $0x4d8] sm:$0xff] }
 0x1e3   :  { %3877 = vmatprep.subr.bf16.mxu1 %v3876_v35  ;;  %v3890_v34 = vpack.c.bf16 %v1375_v28, %v1371_v27  ;;  %v1377_v35 = vld [vmem:[#allocation8 + $0x4c0] sm:$0xff]  ;;  %v3892_v38 = vpack.c.bf16 %v1384_v32, %v1380_v31  ;;  %v1407_v19 = vld [vmem:[#allocation8 + $0x5b0] sm:$0xff]  ;;  %v1418_v32 = vld [vmem:[#allocation8 + $0x608] sm:$0xff] }
 0x1e4   :  { %v1413_v27 = vld [vmem:[#allocation8 + $0x5e0] sm:$0xff]  ;;  %v1415_v31 = vld [vmem:[#allocation8 + $0x5f0] sm:$0xff] }
 0x1e5   :  { %3751 = vmatpush1.bf16.msra.mxu0 %v3750_v36  ;;  %v1381_v36 = vld [vmem:[#allocation8 + $0x4e0] sm:$0xff] }
 0x1e6   :  { %3879 = vmatpush1.bf16.msra.mxu1 %v3878_v39  ;;  %3753 = vmatprep.subr.bf16.mxu0 %v3752_v43  ;;  %v1379_v39 = vld [vmem:[#allocation8 + $0x4d0] sm:$0xff]  ;;  %v1388_v43 = vld [vmem:[#allocation8 + $0x518] sm:$0xff] }
 0x1e7   :  { %3881 = vmatprep.subr.bf16.mxu1 %v3880_v45  ;;  %v3766_v45 = vpack.c.bf16 %v1381_v36, %v1377_v35  ;;  %v3896_v56 = vpack.c.bf16 %v1392_v44, %v1388_v43  ;;  %v1424_v35 = vld [vmem:[#allocation8 + $0x638] sm:$0xff]  ;;  %v1423_v43 = vld [vmem:[#allocation8 + $0x630] sm:$0xff]  ;;  %v1426_v44 = vld [vmem:[#allocation8 + $0x648] sm:$0xff] }
 0x27b   :  { %v932_v55 = vpop.f32.mrb[0].mxu0 }
 0x27c   :  { %v4520_v57 = vadd.f32 %v932_v55, %v636_v52  ;;  %v5100_v58 = vpop.f32.mrb[0].mxu1  ;;  %v934_v59 = vpop.f32.mrb[1].mxu0  ;;  %v3894_v52 = vpack.c.bf16 %v1383_v40, %v1379_v39  ;;  %v3768_v55 = vpack.c.bf16 %v1390_v42, %v1386_v41  ;;  %v1421_v39 = vld [vmem:[#allocation8 + $0x620] sm:$0xff]  ;;  %v1419_v42 = vld [vmem:[#allocation8 + $0x610] sm:$0xff] }
 0x27d   :  { %v4521_v63 = vadd.f32 %v934_v59, %v640_v53  ;;  %v1218_v0 = vpop.f32.mrb[1].mxu1  ;;  %v1385_v53 = vld [vmem:[#allocation8 + $0x500] sm:$0xff]  ;;  %v1391_v59 = vld [vmem:[#allocation8 + $0x530] sm:$0xff] }
 0x27e   :  { %v4523_v2 = vadd.f32 %v1218_v0, %v648_v54  ;;  %v1221_v11 = vmax.f32 %v4520_v57, 0.0  ;;  %v1389_v54 = vld [vmem:[#allocation8 + $0x520] sm:$0xff]  ;;  %v1387_v57 = vld [vmem:[#allocation8 + $0x510] sm:$0xff] }
 0x27f   :  { %v1222_v6 = vmax.f32 %v4521_v63, 0.0  ;;  %v1400_v63 = vld [vmem:[#allocation8 + $0x578] sm:$0xff]  ;;  %v3770_v0 = vpack.c.bf16 %v1389_v54, %v1385_v53  ;;  %v3898_v1 = vpack.c.bf16 %v1391_v59, %v1387_v57  ;;  %v1429_v57 = vld [vmem:[#allocation8 + $0x660] sm:$0xff] }
 0x280   :  { %v1224_v20 = vmax.f32 %v4523_v2, 0.0  ;;  %v1393_v2 = vld [vmem:[#allocation8 + $0x540] sm:$0xff]  ;;  %v3900_v5 = vpack.c.bf16 %v1400_v63, %v1396_v62  ;;  %v1432_v53 = vld [vmem:[#allocation8 + $0x678] sm:$0xff]  ;;  %v1431_v62 = vld [vmem:[#allocation8 + $0x670] sm:$0xff] }
 0x281   :  { %1567 = vmatprep.mubr.f32.mxu0 %v1222_v6  ;;  %1709 = vmatprep.mubr.f32.mxu1 %v1222_v6  ;;  %v1395_v6 = vld [vmem:[#allocation8 + $0x550] sm:$0xff]  ;;  %v3774_v12 = vpack.c.bf16 %v1397_v3, %v1393_v2  ;;  %v1434_v63 = vld [vmem:[#allocation8 + $0x688] sm:$0xff]  ;;  %v1440_v2 = vld [vmem:[#allocation8 + $0x6b8] sm:$0xff] }
 0x282   :  { %1568 = vmatmul.mubr.f32.vlgmr.msra.gmra.mrb[2].mxu0 %v1221_v11  ;;  %1710 = vmatmul.mubr.f32.vlgmr.msra.gmra.mrb[2].mxu1 %v1221_v11  ;;  %v1408_v11 = vld [vmem:[#allocation8 + $0x5b8] sm:$0xff] }
 0x283   :  { %3755 = vmatpush1.bf16.msra.mxu0 %v3754_v7  ;;  %3883 = vmatpush1.bf16.msra.mxu1 %v3882_v8  ;;  %v1399_v7 = vld [vmem:[#allocation8 + $0x570] sm:$0xff]  ;;  %v1402_v8 = vld [vmem:[#allocation8 + $0x588] sm:$0xff]  ;;  %v3904_v17 = vpack.c.bf16 %v1408_v11, %v1404_v10 }
 0x284   :  { %1638 = vmatprep.mubr.f32.mxu0 %v1224_v20  ;;  %1780 = vmatprep.mubr.f32.mxu1 %v1224_v20  ;;  %v3902_v13 = vpack.c.bf16 %v1399_v7, %v1395_v6  ;;  %v1410_v20 = vld [vmem:[#allocation8 + $0x5c8] sm:$0xff]  ;;  %v1437_v6 = vld [vmem:[#allocation8 + $0x6a0] sm:$0xff]  ;;  %v1439_v10 = vld [vmem:[#allocation8 + $0x6b0] sm:$0xff] }
 0x285   :  { %3757 = vmatprep.subr.bf16.mxu0 %v3756_v15  ;;  %3885 = vmatprep.subr.bf16.mxu1 %v3884_v16  ;;  %v1405_v15 = vld [vmem:[#allocation8 + $0x5a0] sm:$0xff]  ;;  %v3776_v16 = vpack.c.bf16 %v1406_v9, %v1402_v8  ;;  %v1435_v9 = vld [vmem:[#allocation8 + $0x690] sm:$0xff]  ;;  %v1442_v11 = vld [vmem:[#allocation8 + $0x6c8] sm:$0xff] }
 0x286   :  { %v3778_v24 = vpack.c.bf16 %v1405_v15, %v1401_v14  ;;  %v1448_v14 = vld [vmem:[#allocation8 + $0x6f8] sm:$0xff] }
 0x287   :  { %3759 = vmatpush1.bf16.msra.mxu0 %v3758_v21  ;;  %3887 = vmatpush1.bf16.msra.mxu1 %v3886_v22  ;;  %v1414_v21 = vld [vmem:[#allocation8 + $0x5e8] sm:$0xff]  ;;  %v1412_v22 = vld [vmem:[#allocation8 + $0x5d8] sm:$0xff] }
 0x288   :  { %3761 = vmatprep.subr.bf16.mxu0 %v3760_v25  ;;  %3889 = vmatprep.subr.bf16.mxu1 %v3888_v26  ;;  %v3906_v25 = vpack.c.bf16 %v1407_v19, %v1403_v18  ;;  %v1409_v26 = vld [vmem:[#allocation8 + $0x5c0] sm:$0xff]  ;;  %v3780_v28 = vpack.c.bf16 %v1414_v21, %v1410_v20  ;;  %v3908_v29 = vpack.c.bf16 %v1416_v23, %v1412_v22  ;;  %v1443_v21 = vld [vmem:[#allocation8 + $0x6d0] sm:$0xff]  ;;  %v1450_v23 = vld [vmem:[#allocation8 + $0x708] sm:$0xff] }
 0x289   :  { %v3782_v36 = vpack.c.bf16 %v1413_v27, %v1409_v26  ;;  %v1445_v18 = vld [vmem:[#allocation8 + $0x6e0] sm:$0xff]  ;;  %v1447_v22 = vld [vmem:[#allocation8 + $0x6f0] sm:$0xff]  ;;  %v1456_v26 = vld [vmem:[#allocation8 + $0x738] sm:$0xff] }
 0x28b   :  { %3763 = vmatpush1.bf16.msra.mxu0 %v3762_v33  ;;  %3891 = vmatpush1.bf16.msra.mxu1 %v3890_v34  ;;  %v1422_v33 = vld [vmem:[#allocation8 + $0x628] sm:$0xff]  ;;  %v1420_v34 = vld [vmem:[#allocation8 + $0x618] sm:$0xff] }
 0x28c   :  { %3765 = vmatprep.subr.bf16.mxu0 %v3764_v37  ;;  %3893 = vmatprep.subr.bf16.mxu1 %v3892_v38  ;;  %v3910_v37 = vpack.c.bf16 %v1415_v31, %v1411_v30  ;;  %v1417_v38 = vld [vmem:[#allocation8 + $0x600] sm:$0xff]  ;;  %v3784_v40 = vpack.c.bf16 %v1422_v33, %v1418_v32  ;;  %v3912_v41 = vpack.c.bf16 %v1424_v35, %v1420_v34  ;;  %v1451_v33 = vld [vmem:[#allocation8 + $0x710] sm:$0xff]  ;;  %v1458_v35 = vld [vmem:[#allocation8 + $0x748] sm:$0xff] }
 0x28d   :  { %v3786_v54 = vpack.c.bf16 %v1421_v39, %v1417_v38  ;;  %v1453_v30 = vld [vmem:[#allocation8 + $0x720] sm:$0xff]  ;;  %v1455_v34 = vld [vmem:[#allocation8 + $0x730] sm:$0xff]  ;;  %v1464_v38 = vld [vmem:[#allocation8 + $0x778] sm:$0xff] }
 0x28f   :  { %3767 = vmatpush1.bf16.msra.mxu0 %v3766_v45  ;;  %3895 = vmatpush1.bf16.msra.mxu1 %v3894_v52  ;;  %v1430_v45 = vld [vmem:[#allocation8 + $0x668] sm:$0xff]  ;;  %v1428_v52 = vld [vmem:[#allocation8 + $0x658] sm:$0xff] }
 0x290   :  { %3769 = vmatprep.subr.bf16.mxu0 %v3768_v55  ;;  %3897 = vmatprep.subr.bf16.mxu1 %v3896_v56  ;;  %v3914_v55 = vpack.c.bf16 %v1423_v43, %v1419_v42  ;;  %v1425_v56 = vld [vmem:[#allocation8 + $0x640] sm:$0xff]  ;;  %v3788_v59 = vpack.c.bf16 %v1430_v45, %v1426_v44  ;;  %v3916_v60 = vpack.c.bf16 %v1432_v53, %v1428_v52  ;;  %v1459_v45 = vld [vmem:[#allocation8 + $0x750] sm:$0xff]  ;;  %v1466_v53 = vld [vmem:[#allocation8 + $0x788] sm:$0xff] }
 0x291   :  { %v3790_v3 = vpack.c.bf16 %v1429_v57, %v1425_v56  ;;  %v1461_v42 = vld [vmem:[#allocation8 + $0x760] sm:$0xff]  ;;  %v1463_v52 = vld [vmem:[#allocation8 + $0x770] sm:$0xff]  ;;  %v1472_v56 = vld [vmem:[#allocation8 + $0x7b8] sm:$0xff] }
 0x293   :  { %3771 = vmatpush1.bf16.msra.mxu0 %v3770_v0  ;;  %3899 = vmatpush1.bf16.msra.mxu1 %v3898_v1  ;;  %v1438_v0 = vld [vmem:[#allocation8 + $0x6a8] sm:$0xff]  ;;  %v1436_v1 = vld [vmem:[#allocation8 + $0x698] sm:$0xff] }
 0x294   :  { %3773 = vmatprep.subr.bf16.mxu0 %v3772_v4  ;;  %3901 = vmatprep.subr.bf16.mxu1 %v3900_v5  ;;  %v3918_v4 = vpack.c.bf16 %v1431_v62, %v1427_v61  ;;  %v1433_v5 = vld [vmem:[#allocation8 + $0x680] sm:$0xff]  ;;  %v3792_v7 = vpack.c.bf16 %v1438_v0, %v1434_v63  ;;  %v3920_v8 = vpack.c.bf16 %v1440_v2, %v1436_v1  ;;  %v5103_v62 = vsub.s32 2, %v5081_v47  ;;  %v1467_v1 = vld [vmem:[#allocation8 + $0x790] sm:$0xff] }
 0x295   :  { %v3794_v15 = vpack.c.bf16 %v1437_v6, %v1433_v5  ;;  %v1469_v61 = vld [vmem:[#allocation8 + $0x7a0] sm:$0xff]  ;;  %v1471_v2 = vld [vmem:[#allocation8 + $0x7b0] sm:$0xff]  ;;  %v1476_v5 = vld [vmem:[#allocation8 + $0x7d8] sm:$0xff] }
 0x296   :  { %v1480_v6 = vld [vmem:[#allocation8 + $0x7f8] sm:$0xff]  ;;  %v644_v47 = vrot.slane %v5086_v49, %v5103_v62 }
 0x297   :  { %3775 = vmatpush1.bf16.msra.mxu0 %v3774_v12  ;;  %3903 = vmatpush1.bf16.msra.mxu1 %v3902_v13  ;;  %v1446_v12 = vld [vmem:[#allocation8 + $0x6e8] sm:$0xff]  ;;  %v1444_v13 = vld [vmem:[#allocation8 + $0x6d8] sm:$0xff] }
 0x298   :  { %3777 = vmatprep.subr.bf16.mxu0 %v3776_v16  ;;  %3905 = vmatprep.subr.bf16.mxu1 %v3904_v17  ;;  %v3922_v16 = vpack.c.bf16 %v1439_v10, %v1435_v9  ;;  %v1441_v17 = vld [vmem:[#allocation8 + $0x6c0] sm:$0xff]  ;;  %v3796_v19 = vpack.c.bf16 %v1446_v12, %v1442_v11  ;;  %v3924_v20 = vpack.c.bf16 %v1448_v14, %v1444_v13  ;;  %v1475_v13 = vld [vmem:[#allocation8 + $0x7d0] sm:$0xff] }
 0x299   :  { %v3798_v27 = vpack.c.bf16 %v1445_v18, %v1441_v17  ;;  %v1473_v9 = vld [vmem:[#allocation8 + $0x7c0] sm:$0xff]  ;;  %v3940_v12 = vpack.c.bf16 %v1480_v6, %v1476_v5  ;;  %v1479_v14 = vld [vmem:[#allocation8 + $0x7f0] sm:$0xff] }
 0x29a   :  { %v1477_v10 = vld [vmem:[#allocation8 + $0x7e0] sm:$0xff]  ;;  %v1817_v5 = vld [vmem:[#allocation11 + $0xd0] sm:$0xff] }
 0x29b   :  { %3779 = vmatpush1.bf16.msra.mxu0 %v3778_v24  ;;  %3907 = vmatpush1.bf16.msra.mxu1 %v3906_v25  ;;  %v1454_v24 = vld [vmem:[#allocation8 + $0x728] sm:$0xff]  ;;  %v1452_v25 = vld [vmem:[#allocation8 + $0x718] sm:$0xff] }
 0x29c   :  { %3781 = vmatprep.subr.bf16.mxu0 %v3780_v28  ;;  %3909 = vmatprep.subr.bf16.mxu1 %v3908_v29  ;;  %v3926_v28 = vpack.c.bf16 %v1447_v22, %v1443_v21  ;;  %v1449_v29 = vld [vmem:[#allocation8 + $0x700] sm:$0xff]  ;;  %v3800_v31 = vpack.c.bf16 %v1454_v24, %v1450_v23  ;;  %v3928_v32 = vpack.c.bf16 %v1456_v26, %v1452_v25  ;;  %v1793_v25 = vld [vmem:[#allocation11 + $0x10] sm:$0xff] }
 0x29d   :  { %v3802_v39 = vpack.c.bf16 %v1453_v30, %v1449_v29  ;;  %v1794_v17 = vld [vmem:[#allocation11 + $0x18] sm:$0xff]  ;;  %v1791_v21 = vld [vmem:[#allocation11] sm:$0xff]  ;;  %v4522_v23 = vadd.f32 %v5100_v58, %v644_v47  ;;  %v1797_v26 = vld [vmem:[#allocation11 + $0x30] sm:$0xff] }
 0x29e   :  { %v1798_v18 = vld [vmem:[#allocation11 + $0x38] sm:$0xff]  ;;  %v1795_v22 = vld [vmem:[#allocation11 + $0x20] sm:$0xff]  ;;  %v1821_v6 = vld [vmem:[#allocation11 + $0xf0] sm:$0xff] }
 0x29f   :  { %3783 = vmatpush1.bf16.msra.mxu0 %v3782_v36  ;;  %3911 = vmatpush1.bf16.msra.mxu1 %v3910_v37  ;;  %v1462_v36 = vld [vmem:[#allocation8 + $0x768] sm:$0xff]  ;;  %v1460_v37 = vld [vmem:[#allocation8 + $0x758] sm:$0xff]  ;;  %v4072_v24 = vpack.c.bf16 %v1798_v18, %v1794_v17 }
 0x2a0   :  { %3785 = vmatprep.subr.bf16.mxu0 %v3784_v40  ;;  %3913 = vmatprep.subr.bf16.mxu1 %v3912_v41  ;;  %v3930_v40 = vpack.c.bf16 %v1455_v34, %v1451_v33  ;;  %v1457_v41 = vld [vmem:[#allocation8 + $0x740] sm:$0xff]  ;;  %v3804_v43 = vpack.c.bf16 %v1462_v36, %v1458_v35  ;;  %v3932_v44 = vpack.c.bf16 %v1464_v38, %v1460_v37  ;;  %v1223_v35 = vmax.f32 %v4522_v23, 0.0  ;;  %v1801_v37 = vld [vmem:[#allocation11 + $0x50] sm:$0xff]  ;;  %v1832_v18 = vld [vmem:[#allocation11 + $0x148] sm:$0xff] }
 0x2a1   :  { %v3806_v57 = vpack.c.bf16 %v1461_v42, %v1457_v41  ;;  %v1802_v29 = vld [vmem:[#allocation11 + $0x58] sm:$0xff]  ;;  %v1799_v33 = vld [vmem:[#allocation11 + $0x40] sm:$0xff]  ;;  %v1805_v38 = vld [vmem:[#allocation11 + $0x70] sm:$0xff] }
 0x2a2   :  { %v1806_v30 = vld [vmem:[#allocation11 + $0x78] sm:$0xff]  ;;  %v1803_v34 = vld [vmem:[#allocation11 + $0x60] sm:$0xff]  ;;  %v1829_v17 = vld [vmem:[#allocation11 + $0x130] sm:$0xff] }
 0x2a3   :  { %3787 = vmatpush1.bf16.msra.mxu0 %v3786_v54  ;;  %3915 = vmatpush1.bf16.msra.mxu1 %v3914_v55  ;;  %v1470_v54 = vld [vmem:[#allocation8 + $0x7a8] sm:$0xff]  ;;  %v1468_v55 = vld [vmem:[#allocation8 + $0x798] sm:$0xff]  ;;  %v4076_v36 = vpack.c.bf16 %v1806_v30, %v1802_v29 }
 0x2a4   :  { %3789 = vmatprep.subr.bf16.mxu0 %v3788_v59  ;;  %3917 = vmatprep.subr.bf16.mxu1 %v3916_v60  ;;  %v3934_v59 = vpack.c.bf16 %v1463_v52, %v1459_v45  ;;  %v1465_v60 = vld [vmem:[#allocation8 + $0x780] sm:$0xff]  ;;  %v3808_v63 = vpack.c.bf16 %v1470_v54, %v1466_v53  ;;  %v3936_v0 = vpack.c.bf16 %v1472_v56, %v1468_v55  ;;  %v1809_v55 = vld [vmem:[#allocation11 + $0x90] sm:$0xff]  ;;  %v1840_v29 = vld [vmem:[#allocation11 + $0x188] sm:$0xff] }
 0x2a5   :  { %v1810_v41 = vld [vmem:[#allocation11 + $0x98] sm:$0xff]  ;;  %v1807_v45 = vld [vmem:[#allocation11 + $0x80] sm:$0xff]  ;;  %v1813_v56 = vld [vmem:[#allocation11 + $0xb0] sm:$0xff] }
 0x2a6   :  { %v1814_v42 = vld [vmem:[#allocation11 + $0xb8] sm:$0xff]  ;;  %v1811_v52 = vld [vmem:[#allocation11 + $0xa0] sm:$0xff]  ;;  %v1844_v30 = vld [vmem:[#allocation11 + $0x1a8] sm:$0xff] }
 0x2a7   :  { %3791 = vmatpush1.bf16.msra.mxu0 %v3790_v3  ;;  %3919 = vmatpush1.bf16.msra.mxu1 %v3918_v4  ;;  %v1474_v3 = vld [vmem:[#allocation8 + $0x7c8] sm:$0xff]  ;;  %v4080_v54 = vpack.c.bf16 %v1814_v42, %v1810_v41  ;;  %v1850_v42 = vld [vmem:[#allocation11 + $0x1d8] sm:$0xff] }
 0x2a8   :  { %3793 = vmatprep.subr.bf16.mxu0 %v3792_v7  ;;  %3921 = vmatprep.subr.bf16.mxu1 %v3920_v8  ;;  %v1478_v4 = vld [vmem:[#allocation8 + $0x7e8] sm:$0xff]  ;;  %v3810_v7 = vpack.c.bf16 %v1469_v61, %v1465_v60  ;;  %v3938_v8 = vpack.c.bf16 %v1471_v2, %v1467_v1  ;;  %v1818_v60 = vld [vmem:[#allocation11 + $0xd8] sm:$0xff] }
 0x2a9   :  { %v3812_v11 = vpack.c.bf16 %v1478_v4, %v1474_v3  ;;  %v1822_v61 = vld [vmem:[#allocation11 + $0xf8] sm:$0xff]  ;;  %v1815_v1 = vld [vmem:[#allocation11 + $0xc0] sm:$0xff]  ;;  %v1852_v41 = vld [vmem:[#allocation11 + $0x1e8] sm:$0xff] }
 0x2aa   :  { %v1819_v2 = vld [vmem:[#allocation11 + $0xe0] sm:$0xff]  ;;  %v4084_v4 = vpack.c.bf16 %v1822_v61, %v1818_v60  ;;  %v1860_v60 = vld [vmem:[#allocation11 + $0x228] sm:$0xff]  ;;  %v1858_v61 = vld [vmem:[#allocation11 + $0x218] sm:$0xff] }
 0x2ab   :  { %3795 = vmatpush1.bf16.msra.mxu0 %v3794_v15  ;;  %3923 = vmatpush1.bf16.msra.mxu1 %v3922_v16  ;;  %v1792_v15 = vld [vmem:[#allocation11 + $0x8] sm:$0xff]  ;;  %v3958_v47 = vpack.c.bf16 %v1819_v2, %v1815_v1  ;;  %v1855_v2 = vld [vmem:[#allocation11 + $0x200] sm:$0xff] }
 0x2ac   :  { %3797 = vmatprep.subr.bf16.mxu0 %v3796_v19  ;;  %3925 = vmatprep.subr.bf16.mxu1 %v3924_v20  ;;  %v1796_v16 = vld [vmem:[#allocation11 + $0x28] sm:$0xff]  ;;  %v3814_v19 = vpack.c.bf16 %v1477_v10, %v1473_v9  ;;  %v3942_v20 = vpack.c.bf16 %v1479_v14, %v1475_v13  ;;  %v1826_v9 = vld [vmem:[#allocation11 + $0x118] sm:$0xff]  ;;  %v1827_v13 = vld [vmem:[#allocation11 + $0x120] sm:$0xff] }
 0x2ad   :  { %v3944_v49 = vpack.c.bf16 %v1796_v16, %v1792_v15  ;;  %v1830_v10 = vld [vmem:[#allocation11 + $0x138] sm:$0xff]  ;;  %v1825_v16 = vld [vmem:[#allocation11 + $0x110] sm:$0xff] }
 0x2ae   :  { %v4088_v15 = vpack.c.bf16 %v1830_v10, %v1826_v9  ;;  %v4090_v23 = vpack.c.bf16 %v1829_v17, %v1825_v16  ;;  %v1868_v9 = vld [vmem:[#allocation11 + $0x268] sm:$0xff]  ;;  %v1866_v10 = vld [vmem:[#allocation11 + $0x258] sm:$0xff]  ;;  %v1865_v17 = vld [vmem:[#allocation11 + $0x250] sm:$0xff] }
 0x2af   :  { %3799 = vmatpush1.bf16.msra.mxu0 %v3798_v27  ;;  %3927 = vmatpush1.bf16.msra.mxu1 %v3926_v28  ;;  %v1800_v27 = vld [vmem:[#allocation11 + $0x48] sm:$0xff] }
 0x2b0   :  { %3801 = vmatprep.subr.bf16.mxu0 %v3800_v31  ;;  %3929 = vmatprep.subr.bf16.mxu1 %v3928_v32  ;;  %v1804_v28 = vld [vmem:[#allocation11 + $0x68] sm:$0xff]  ;;  %v3946_v31 = vpack.c.bf16 %v1795_v22, %v1791_v21  ;;  %v4074_v32 = vpack.c.bf16 %v1797_v26, %v1793_v25  ;;  %v1838_v21 = vld [vmem:[#allocation11 + $0x178] sm:$0xff] }
 0x2b1   :  { %v3948_v58 = vpack.c.bf16 %v1804_v28, %v1800_v27  ;;  %v1833_v27 = vld [vmem:[#allocation11 + $0x150] sm:$0xff] }
 0x2b2   :  { %v1837_v28 = vld [vmem:[#allocation11 + $0x170] sm:$0xff] }
 0x2b3   :  { %3803 = vmatpush1.bf16.msra.mxu0 %v3802_v39  ;;  %3931 = vmatpush1.bf16.msra.mxu1 %v3930_v40  ;;  %v1808_v39 = vld [vmem:[#allocation11 + $0x88] sm:$0xff] }
 0x2b4   :  { %3805 = vmatprep.subr.bf16.mxu0 %v3804_v43  ;;  %3933 = vmatprep.subr.bf16.mxu1 %v3932_v44  ;;  %v1812_v40 = vld [vmem:[#allocation11 + $0xa8] sm:$0xff]  ;;  %v3950_v43 = vpack.c.bf16 %v1803_v34, %v1799_v33  ;;  %v4078_v44 = vpack.c.bf16 %v1805_v38, %v1801_v37  ;;  %v4094_v34 = vpack.c.bf16 %v1837_v28, %v1833_v27  ;;  %v1841_v38 = vld [vmem:[#allocation11 + $0x190] sm:$0xff] }
 0x2b5   :  { %v3952_v53 = vpack.c.bf16 %v1812_v40, %v1808_v39  ;;  %v1845_v39 = vld [vmem:[#allocation11 + $0x1b0] sm:$0xff]  ;;  %v1848_v40 = vld [vmem:[#allocation11 + $0x1c8] sm:$0xff] }
 0x2b6   :  { %v1873_v28 = vld [vmem:[#allocation11 + $0x290] sm:$0xff] }
 0x2b7   :  { %3807 = vmatpush1.bf16.msra.mxu0 %v3806_v57  ;;  %3935 = vmatpush1.bf16.msra.mxu1 %v3934_v59  ;;  %v1816_v57 = vld [vmem:[#allocation11 + $0xc8] sm:$0xff] }
 0x2b8   :  { %3809 = vmatprep.subr.bf16.mxu0 %v3808_v63  ;;  %3937 = vmatprep.subr.bf16.mxu1 %v3936_v0  ;;  %v1820_v59 = vld [vmem:[#allocation11 + $0xe8] sm:$0xff]  ;;  %v3954_v63 = vpack.c.bf16 %v1811_v52, %v1807_v45  ;;  %v4082_v0 = vpack.c.bf16 %v1813_v56, %v1809_v55  ;;  %v4098_v45 = vpack.c.bf16 %v1845_v39, %v1841_v38  ;;  %v1847_v52 = vld [vmem:[#allocation11 + $0x1c0] sm:$0xff]  ;;  %v1849_v56 = vld [vmem:[#allocation11 + $0x1d0] sm:$0xff] }
 0x2b9   :  { %v3956_v3 = vpack.c.bf16 %v1820_v59, %v1816_v57  ;;  %v1853_v57 = vld [vmem:[#allocation11 + $0x1f0] sm:$0xff]  ;;  %v1856_v59 = vld [vmem:[#allocation11 + $0x208] sm:$0xff] }
 0x2ba   :  { %v4102_v1 = vpack.c.bf16 %v1853_v57, %v1849_v56  ;;  %v1881_v39 = vld [vmem:[#allocation11 + $0x2d0] sm:$0xff] }
 0x2bb   :  { %3811 = vmatpush1.bf16.msra.mxu0 %v3810_v7  ;;  %3939 = vmatpush1.bf16.msra.mxu1 %v3938_v8  ;;  %v1824_v7 = vld [vmem:[#allocation11 + $0x108] sm:$0xff]  ;;  %v1889_v57 = vld [vmem:[#allocation11 + $0x310] sm:$0xff] }
 0x2bc   :  { %3813 = vmatprep.subr.bf16.mxu0 %v3812_v11  ;;  %3941 = vmatprep.subr.bf16.mxu1 %v3940_v12  ;;  %v1828_v8 = vld [vmem:[#allocation11 + $0x128] sm:$0xff]  ;;  %v4086_v11 = vpack.c.bf16 %v1821_v6, %v1817_v5  ;;  %v1823_v12 = vld [vmem:[#allocation11 + $0x100] sm:$0xff]  ;;  %v1857_v6 = vld [vmem:[#allocation11 + $0x210] sm:$0xff] }
 0x2bd   :  { %v3960_v14 = vpack.c.bf16 %v1828_v8, %v1824_v7  ;;  %v3962_v22 = vpack.c.bf16 %v1827_v13, %v1823_v12  ;;  %v1861_v7 = vld [vmem:[#allocation11 + $0x230] sm:$0xff]  ;;  %v1864_v8 = vld [vmem:[#allocation11 + $0x248] sm:$0xff]  ;;  %v1863_v13 = vld [vmem:[#allocation11 + $0x240] sm:$0xff] }
 0x2be   :  { %v4106_v12 = vpack.c.bf16 %v1861_v7, %v1857_v6  ;;  %v1897_v7 = vld [vmem:[#allocation11 + $0x350] sm:$0xff] }
 0x2bf   :  { %3815 = vmatpush1.bf16.msra.mxu0 %v3814_v19  ;;  %3943 = vmatpush1.bf16.msra.mxu1 %v3942_v20  ;;  %v1836_v19 = vld [vmem:[#allocation11 + $0x168] sm:$0xff]  ;;  %v1834_v20 = vld [vmem:[#allocation11 + $0x158] sm:$0xff] }
 0x2c0   :  { %3945 = vmatprep.subr.bf16.mxu0 %v3944_v49  ;;  %4073 = vmatprep.subr.bf16.mxu1 %v4072_v24  ;;  %v1831_v49 = vld [vmem:[#allocation11 + $0x140] sm:$0xff]  ;;  %v3964_v25 = vpack.c.bf16 %v1836_v19, %v1832_v18  ;;  %v4092_v26 = vpack.c.bf16 %v1838_v21, %v1834_v20  ;;  %v1869_v18 = vld [vmem:[#allocation11 + $0x270] sm:$0xff]  ;;  %v1872_v19 = vld [vmem:[#allocation11 + $0x288] sm:$0xff] }
 0x2c1   :  { %v1835_v24 = vld [vmem:[#allocation11 + $0x160] sm:$0xff]  ;;  %v1876_v20 = vld [vmem:[#allocation11 + $0x2a8] sm:$0xff]  ;;  %v1874_v21 = vld [vmem:[#allocation11 + $0x298] sm:$0xff] }
 0x2c2   :  { %1639 = vmatmul.mubr.f32.vlgmr.msra.gmra.mrb[2].mxu0 %v1223_v35  ;;  %1781 = vmatmul.mubr.f32.vlgmr.msra.gmra.mrb[2].mxu1 %v1223_v35  ;;  %v3966_v33 = vpack.c.bf16 %v1835_v24, %v1831_v49  ;;  %v1839_v35 = vld [vmem:[#allocation11 + $0x180] sm:$0xff]  ;;  %v4110_v49 = vpack.c.bf16 %v1869_v18, %v1865_v17  ;;  %v1905_v18 = vld [vmem:[#allocation11 + $0x390] sm:$0xff] }
 0x2c3   :  { %3947 = vmatpush1.bf16.msra.mxu0 %v3946_v31  ;;  %4075 = vmatpush1.bf16.msra.mxu1 %v4074_v32  ;;  %v1842_v31 = vld [vmem:[#allocation11 + $0x198] sm:$0xff]  ;;  %v1871_v24 = vld [vmem:[#allocation11 + $0x280] sm:$0xff] }
 0x2c4   :  { %3949 = vmatprep.subr.bf16.mxu0 %v3948_v58  ;;  %4077 = vmatprep.subr.bf16.mxu1 %v4076_v36  ;;  %v1846_v32 = vld [vmem:[#allocation11 + $0x1b8] sm:$0xff]  ;;  %v1843_v58 = vld [vmem:[#allocation11 + $0x1a0] sm:$0xff]  ;;  %v3968_v36 = vpack.c.bf16 %v1844_v30, %v1840_v29  ;;  %v1877_v29 = vld [vmem:[#allocation11 + $0x2b0] sm:$0xff] }
 0x2c5   :  { %v4096_v37 = vpack.c.bf16 %v1846_v32, %v1842_v31  ;;  %v1880_v30 = vld [vmem:[#allocation11 + $0x2c8] sm:$0xff]  ;;  %v1882_v32 = vld [vmem:[#allocation11 + $0x2d8] sm:$0xff]  ;;  %v1907_v17 = vld [vmem:[#allocation11 + $0x3a0] sm:$0xff] }
 0x2c6   :  { %v1884_v31 = vld [vmem:[#allocation11 + $0x2e8] sm:$0xff] }
 0x2c7   :  { %3951 = vmatpush1.bf16.msra.mxu0 %v3950_v43  ;;  %4079 = vmatpush1.bf16.msra.mxu1 %v4078_v44  ;;  %v1854_v43 = vld [vmem:[#allocation11 + $0x1f8] sm:$0xff]  ;;  %v3970_v44 = vpack.c.bf16 %v1843_v58, %v1839_v35  ;;  %v4114_v35 = vpack.c.bf16 %v1877_v29, %v1873_v28  ;;  %v1879_v58 = vld [vmem:[#allocation11 + $0x2c0] sm:$0xff] }
 0x2c8   :  { %3953 = vmatprep.subr.bf16.mxu0 %v3952_v53  ;;  %4081 = vmatprep.subr.bf16.mxu1 %v4080_v54  ;;  %v1851_v53 = vld [vmem:[#allocation11 + $0x1e0] sm:$0xff]  ;;  %v3972_v54 = vpack.c.bf16 %v1852_v41, %v1848_v40  ;;  %v4100_v55 = vpack.c.bf16 %v1854_v43, %v1850_v42  ;;  %v1885_v40 = vld [vmem:[#allocation11 + $0x2f0] sm:$0xff]  ;;  %v1888_v41 = vld [vmem:[#allocation11 + $0x308] sm:$0xff] }
 0x2c9   :  { %v1892_v42 = vld [vmem:[#allocation11 + $0x328] sm:$0xff]  ;;  %v1890_v43 = vld [vmem:[#allocation11 + $0x318] sm:$0xff] }
 0x2cb   :  { %3955 = vmatpush1.bf16.msra.mxu0 %v3954_v63  ;;  %4083 = vmatpush1.bf16.msra.mxu1 %v4082_v0  ;;  %v1862_v63 = vld [vmem:[#allocation11 + $0x238] sm:$0xff]  ;;  %v3974_v0 = vpack.c.bf16 %v1851_v53, %v1847_v52  ;;  %v4118_v52 = vpack.c.bf16 %v1885_v40, %v1881_v39  ;;  %v1887_v53 = vld [vmem:[#allocation11 + $0x300] sm:$0xff] }
 0x2cc   :  { %3957 = vmatprep.subr.bf16.mxu0 %v3956_v3  ;;  %4085 = vmatprep.subr.bf16.mxu1 %v4084_v4  ;;  %v1859_v3 = vld [vmem:[#allocation11 + $0x220] sm:$0xff]  ;;  %v3976_v4 = vpack.c.bf16 %v1860_v60, %v1856_v59  ;;  %v4104_v5 = vpack.c.bf16 %v1862_v63, %v1858_v61  ;;  %v1893_v59 = vld [vmem:[#allocation11 + $0x330] sm:$0xff]  ;;  %v1896_v60 = vld [vmem:[#allocation11 + $0x348] sm:$0xff] }
 0x2cd   :  { %v1900_v61 = vld [vmem:[#allocation11 + $0x368] sm:$0xff]  ;;  %v1898_v63 = vld [vmem:[#allocation11 + $0x358] sm:$0xff] }
 0x2cf   :  { %3959 = vmatpush1.bf16.msra.mxu0 %v3958_v47  ;;  %4087 = vmatpush1.bf16.msra.mxu1 %v4086_v11  ;;  %v1870_v47 = vld [vmem:[#allocation11 + $0x278] sm:$0xff]  ;;  %v3978_v11 = vpack.c.bf16 %v1859_v3, %v1855_v2  ;;  %v4122_v2 = vpack.c.bf16 %v1893_v59, %v1889_v57  ;;  %v1895_v3 = vld [vmem:[#allocation11 + $0x340] sm:$0xff]  ;;  %v1928_v59 = vld [vmem:[#allocation11 + $0x448] sm:$0xff] }
 0x2d0   :  { %3961 = vmatprep.subr.bf16.mxu0 %v3960_v14  ;;  %4089 = vmatprep.subr.bf16.mxu1 %v4088_v15  ;;  %v1867_v14 = vld [vmem:[#allocation11 + $0x260] sm:$0xff]  ;;  %v3980_v15 = vpack.c.bf16 %v1868_v9, %v1864_v8  ;;  %v4108_v16 = vpack.c.bf16 %v1870_v47, %v1866_v10  ;;  %v1901_v8 = vld [vmem:[#allocation11 + $0x370] sm:$0xff]  ;;  %v1904_v9 = vld [vmem:[#allocation11 + $0x388] sm:$0xff] }
 0x2d1   :  { %v1908_v10 = vld [vmem:[#allocation11 + $0x3a8] sm:$0xff]  ;;  %v1906_v47 = vld [vmem:[#allocation11 + $0x398] sm:$0xff] }
 0x2d3   :  { %3963 = vmatpush1.bf16.msra.mxu0 %v3962_v22  ;;  %4091 = vmatpush1.bf16.msra.mxu1 %v4090_v23  ;;  %v1878_v22 = vld [vmem:[#allocation11 + $0x2b8] sm:$0xff]  ;;  %v3982_v23 = vpack.c.bf16 %v1867_v14, %v1863_v13  ;;  %v4126_v13 = vpack.c.bf16 %v1901_v8, %v1897_v7  ;;  %v1903_v14 = vld [vmem:[#allocation11 + $0x380] sm:$0xff]  ;;  %v1929_v7 = vld [vmem:[#allocation11 + $0x450] sm:$0xff] }
 0x2d4   :  { %3965 = vmatprep.subr.bf16.mxu0 %v3964_v25  ;;  %4093 = vmatprep.subr.bf16.mxu1 %v4092_v26  ;;  %v1875_v25 = vld [vmem:[#allocation11 + $0x2a0] sm:$0xff]  ;;  %v3984_v26 = vpack.c.bf16 %v1876_v20, %v1872_v19  ;;  %v4112_v27 = vpack.c.bf16 %v1878_v22, %v1874_v21  ;;  %v1909_v19 = vld [vmem:[#allocation11 + $0x3b0] sm:$0xff]  ;;  %v4002_v20 = vpack.c.bf16 %v1907_v17, %v1903_v14  ;;  %v1912_v22 = vld [vmem:[#allocation11 + $0x3c8] sm:$0xff] }
 0x2d5   :  { %v4130_v21 = vpack.c.bf16 %v1909_v19, %v1905_v18  ;;  %v1933_v8 = vld [vmem:[#allocation11 + $0x470] sm:$0xff]  ;;  %v1935_v17 = vld [vmem:[#allocation11 + $0x480] sm:$0xff] }
 0x2d6   :  { %v1939_v18 = vld [vmem:[#allocation11 + $0x4a0] sm:$0xff] }
 0x2d7   :  { %3967 = vmatpush1.bf16.msra.mxu0 %v3966_v33  ;;  %4095 = vmatpush1.bf16.msra.mxu1 %v4094_v34  ;;  %v1886_v33 = vld [vmem:[#allocation11 + $0x2f8] sm:$0xff]  ;;  %v3986_v34 = vpack.c.bf16 %v1875_v25, %v1871_v24 }
 0x2d8   :  { %3969 = vmatprep.subr.bf16.mxu0 %v3968_v36  ;;  %4097 = vmatprep.subr.bf16.mxu1 %v4096_v37  ;;  %v1883_v36 = vld [vmem:[#allocation11 + $0x2e0] sm:$0xff]  ;;  %v3988_v37 = vpack.c.bf16 %v1884_v31, %v1880_v30  ;;  %v4116_v38 = vpack.c.bf16 %v1886_v33, %v1882_v32  ;;  %v1918_v25 = vld [vmem:[#allocation11 + $0x3f8] sm:$0xff]  ;;  %v1913_v30 = vld [vmem:[#allocation11 + $0x3d0] sm:$0xff] }
 0x2d9   :  { %v1917_v31 = vld [vmem:[#allocation11 + $0x3f0] sm:$0xff]  ;;  %v1920_v33 = vld [vmem:[#allocation11 + $0x408] sm:$0xff] }
 0x2da   :  { %v4134_v32 = vpack.c.bf16 %v1917_v31, %v1913_v30 }
 0x2db   :  { %3971 = vmatpush1.bf16.msra.mxu0 %v3970_v44  ;;  %4099 = vmatpush1.bf16.msra.mxu1 %v4098_v45  ;;  %v1894_v44 = vld [vmem:[#allocation11 + $0x338] sm:$0xff]  ;;  %v3990_v45 = vpack.c.bf16 %v1883_v36, %v1879_v58 }
 0x2dc   :  { %3973 = vmatprep.subr.bf16.mxu0 %v3972_v54  ;;  %4101 = vmatprep.subr.bf16.mxu1 %v4100_v55  ;;  %v1891_v54 = vld [vmem:[#allocation11 + $0x320] sm:$0xff]  ;;  %v3992_v55 = vpack.c.bf16 %v1892_v42, %v1888_v41  ;;  %v4120_v56 = vpack.c.bf16 %v1894_v44, %v1890_v43  ;;  %v1926_v36 = vld [vmem:[#allocation11 + $0x438] sm:$0xff] }
 0x2dd   :  { %v1919_v44 = vld [vmem:[#allocation11 + $0x400] sm:$0xff] }
 0x2df   :  { %3975 = vmatpush1.bf16.msra.mxu0 %v3974_v0  ;;  %4103 = vmatpush1.bf16.msra.mxu1 %v4102_v1  ;;  %v1902_v0 = vld [vmem:[#allocation11 + $0x378] sm:$0xff]  ;;  %v3994_v1 = vpack.c.bf16 %v1891_v54, %v1887_v53  ;;  %v1923_v54 = vld [vmem:[#allocation11 + $0x420] sm:$0xff] }
 0x2e0   :  { %3977 = vmatprep.subr.bf16.mxu0 %v3976_v4  ;;  %4105 = vmatprep.subr.bf16.mxu1 %v4104_v5  ;;  %v1899_v4 = vld [vmem:[#allocation11 + $0x360] sm:$0xff]  ;;  %v3996_v5 = vpack.c.bf16 %v1900_v61, %v1896_v60  ;;  %v4124_v6 = vpack.c.bf16 %v1902_v0, %v1898_v63  ;;  %v1932_v61 = vld [vmem:[#allocation11 + $0x468] sm:$0xff]  ;;  %v1930_v63 = vld [vmem:[#allocation11 + $0x458] sm:$0xff] }
 0x2e1   :  { %v1934_v0 = vld [vmem:[#allocation11 + $0x478] sm:$0xff] }
 0x2e3   :  { %3979 = vmatpush1.bf16.msra.mxu0 %v3978_v11  ;;  %4107 = vmatpush1.bf16.msra.mxu1 %v4106_v12  ;;  %v1910_v11 = vld [vmem:[#allocation11 + $0x3b8] sm:$0xff]  ;;  %v3998_v12 = vpack.c.bf16 %v1899_v4, %v1895_v3  ;;  %v1927_v4 = vld [vmem:[#allocation11 + $0x440] sm:$0xff] }
 0x2e4   :  { %3981 = vmatprep.subr.bf16.mxu0 %v3980_v15  ;;  %4109 = vmatprep.subr.bf16.mxu1 %v4108_v16  ;;  %v4000_v15 = vpack.c.bf16 %v1908_v10, %v1904_v9  ;;  %v4128_v16 = vpack.c.bf16 %v1910_v11, %v1906_v47  ;;  %v1936_v9 = vld [vmem:[#allocation11 + $0x488] sm:$0xff]  ;;  %v4012_v10 = vpack.c.bf16 %v1932_v61, %v1928_v59  ;;  %v1963_v61 = vld [vmem:[#allocation11 + $0x560] sm:$0xff] }
 0x2e5   :  { %v4140_v47 = vpack.c.bf16 %v1934_v0, %v1930_v63  ;;  %v1940_v11 = vld [vmem:[#allocation11 + $0x4a8] sm:$0xff] }
 0x2e6   :  { %v4016_v19 = vpack.c.bf16 %v1940_v11, %v1936_v9  ;;  %v1967_v9 = vld [vmem:[#allocation11 + $0x580] sm:$0xff] }
 0x2e7   :  { %3983 = vmatpush1.bf16.msra.mxu0 %v3982_v23  ;;  %4111 = vmatpush1.bf16.msra.mxu1 %v4110_v49  ;;  %v1916_v23 = vld [vmem:[#allocation11 + $0x3e8] sm:$0xff]  ;;  %v1914_v49 = vld [vmem:[#allocation11 + $0x3d8] sm:$0xff] }
 0x2e8   :  { %3985 = vmatprep.subr.bf16.mxu0 %v3984_v26  ;;  %4113 = vmatprep.subr.bf16.mxu1 %v4112_v27  ;;  %v4004_v24 = vpack.c.bf16 %v1916_v23, %v1912_v22  ;;  %v1911_v26 = vld [vmem:[#allocation11 + $0x3c0] sm:$0xff]  ;;  %v4132_v28 = vpack.c.bf16 %v1918_v25, %v1914_v49  ;;  %v1941_v22 = vld [vmem:[#allocation11 + $0x4b0] sm:$0xff]  ;;  %v1944_v23 = vld [vmem:[#allocation11 + $0x4c8] sm:$0xff] }
 0x2e9   :  { %v1915_v27 = vld [vmem:[#allocation11 + $0x3e0] sm:$0xff]  ;;  %v1948_v49 = vld [vmem:[#allocation11 + $0x4e8] sm:$0xff]  ;;  %v1950_v25 = vld [vmem:[#allocation11 + $0x4f8] sm:$0xff] }
 0x2ea   :  { %v4006_v29 = vpack.c.bf16 %v1915_v27, %v1911_v26  ;;  %v4018_v26 = vpack.c.bf16 %v1939_v18, %v1935_v17  ;;  %v4020_v30 = vpack.c.bf16 %v1948_v49, %v1944_v23  ;;  %v1982_v17 = vld [vmem:[#allocation11 + $0x5f8] sm:$0xff]  ;;  %v1977_v49 = vld [vmem:[#allocation11 + $0x5d0] sm:$0xff] }
 0x2eb   :  { %3987 = vmatpush1.bf16.msra.mxu0 %v3986_v34  ;;  %4115 = vmatpush1.bf16.msra.mxu1 %v4114_v35  ;;  %v1924_v34 = vld [vmem:[#allocation11 + $0x428] sm:$0xff]  ;;  %v1922_v35 = vld [vmem:[#allocation11 + $0x418] sm:$0xff] }
 0x2ec   :  { %3989 = vmatprep.subr.bf16.mxu0 %v3988_v37  ;;  %4117 = vmatprep.subr.bf16.mxu1 %v4116_v38  ;;  %v4008_v58 = vpack.c.bf16 %v1924_v34, %v1920_v33  ;;  %v4136_v37 = vpack.c.bf16 %v1926_v36, %v1922_v35  ;;  %v5108_v38 = vld [vmem:[#allocation10] sm:$0xf]  ;;  %v1949_v33 = vld [vmem:[#allocation11 + $0x4f0] sm:$0xff]  ;;  %v1952_v34 = vld [vmem:[#allocation11 + $0x508] sm:$0xff] }
 0x2ed   :  { %v1486_v39 = vrot.slane %v5108_v38, %v5084_v48  ;;  %v1490_v40 = vrot.slane %v5108_v38, %v5089_v50  ;;  %v1498_v41 = vrot.slane %v5108_v38, %v5092_v51  ;;  %v1956_v35 = vld [vmem:[#allocation11 + $0x528] sm:$0xff]  ;;  %v1958_v36 = vld [vmem:[#allocation11 + $0x538] sm:$0xff] }
 0x2ef   :  { %3991 = vmatpush1.bf16.msra.mxu0 %v3990_v45  ;;  %4119 = vmatpush1.bf16.msra.mxu1 %v4118_v52 }
 0x2f0   :  { %3993 = vmatprep.subr.bf16.mxu0 %v3992_v55  ;;  %4121 = vmatprep.subr.bf16.mxu1 %v4120_v56  ;;  %v1921_v55 = vld [vmem:[#allocation11 + $0x410] sm:$0xff] }
 0x2f1   :  { %v1925_v56 = vld [vmem:[#allocation11 + $0x430] sm:$0xff] }
 0x2f2   :  { %v4138_v3 = vpack.c.bf16 %v1925_v56, %v1921_v55  ;;  %v1962_v55 = vld [vmem:[#allocation11 + $0x558] sm:$0xff] }
 0x2f3   :  { %3995 = vmatpush1.bf16.msra.mxu0 %v3994_v1  ;;  %4123 = vmatpush1.bf16.msra.mxu1 %v4122_v2  ;;  %v4010_v2 = vpack.c.bf16 %v1923_v54, %v1919_v44  ;;  %v1964_v54 = vld [vmem:[#allocation11 + $0x568] sm:$0xff]  ;;  %v1966_v56 = vld [vmem:[#allocation11 + $0x578] sm:$0xff] }
 0x2f4   :  { %3997 = vmatprep.subr.bf16.mxu0 %v3996_v5  ;;  %4125 = vmatprep.subr.bf16.mxu1 %v4124_v6  ;;  %v1931_v5 = vld [vmem:[#allocation11 + $0x460] sm:$0xff]  ;;  %v4156_v0 = vpack.c.bf16 %v1966_v56, %v1962_v55  ;;  %v1997_v55 = vld [vmem:[#allocation11 + $0x670] sm:$0xff]  ;;  %v2000_v56 = vld [vmem:[#allocation11 + $0x688] sm:$0xff] }
 0x2f7   :  { %3999 = vmatpush1.bf16.msra.mxu0 %v3998_v12  ;;  %4127 = vmatpush1.bf16.msra.mxu1 %v4126_v13  ;;  %v1938_v12 = vld [vmem:[#allocation11 + $0x498] sm:$0xff] }
 0x2f8   :  { %4001 = vmatprep.subr.bf16.mxu0 %v4000_v15  ;;  %4129 = vmatprep.subr.bf16.mxu1 %v4128_v16  ;;  %v1942_v13 = vld [vmem:[#allocation11 + $0x4b8] sm:$0xff]  ;;  %v4014_v15 = vpack.c.bf16 %v1931_v5, %v1927_v4  ;;  %v4142_v16 = vpack.c.bf16 %v1933_v8, %v1929_v7  ;;  %v1972_v4 = vld [vmem:[#allocation11 + $0x5a8] sm:$0xff] }
 0x2f9   :  { %v1970_v5 = vld [vmem:[#allocation11 + $0x598] sm:$0xff] }
 0x2fb   :  { %4003 = vmatpush1.bf16.msra.mxu0 %v4002_v20  ;;  %4131 = vmatpush1.bf16.msra.mxu1 %v4130_v21  ;;  %v4144_v20 = vpack.c.bf16 %v1942_v13, %v1938_v12  ;;  %v1937_v21 = vld [vmem:[#allocation11 + $0x490] sm:$0xff] }
 0x2fc   :  { %4005 = vmatprep.subr.bf16.mxu0 %v4004_v24  ;;  %4133 = vmatprep.subr.bf16.mxu1 %v4132_v28  ;;  %v1946_v24 = vld [vmem:[#allocation11 + $0x4d8] sm:$0xff]  ;;  %v4146_v27 = vpack.c.bf16 %v1941_v22, %v1937_v21  ;;  %v1943_v28 = vld [vmem:[#allocation11 + $0x4c0] sm:$0xff]  ;;  %v1969_v12 = vld [vmem:[#allocation11 + $0x590] sm:$0xff] }
 0x2fd   :  { %v4148_v31 = vpack.c.bf16 %v1950_v25, %v1946_v24  ;;  %v1973_v13 = vld [vmem:[#allocation11 + $0x5b0] sm:$0xff]  ;;  %v1979_v21 = vld [vmem:[#allocation11 + $0x5e0] sm:$0xff]  ;;  %v1984_v25 = vld [vmem:[#allocation11 + $0x608] sm:$0xff] }
 0x2fe   :  { %v1981_v24 = vld [vmem:[#allocation11 + $0x5f0] sm:$0xff] }
 0x2ff   :  { %4007 = vmatpush1.bf16.msra.mxu0 %v4006_v29  ;;  %4135 = vmatpush1.bf16.msra.mxu1 %v4134_v32  ;;  %v1947_v29 = vld [vmem:[#allocation11 + $0x4e0] sm:$0xff]  ;;  %v1945_v32 = vld [vmem:[#allocation11 + $0x4d0] sm:$0xff] }
 0x300   :  { %4009 = vmatprep.subr.bf16.mxu0 %v4008_v58  ;;  %4137 = vmatprep.subr.bf16.mxu1 %v4136_v37  ;;  %v1954_v58 = vld [vmem:[#allocation11 + $0x518] sm:$0xff]  ;;  %v4022_v37 = vpack.c.bf16 %v1947_v29, %v1943_v28 }
 0x301   :  { %v4152_v44 = vpack.c.bf16 %v1958_v36, %v1954_v58  ;;  %v1990_v28 = vld [vmem:[#allocation11 + $0x638] sm:$0xff]  ;;  %v1989_v58 = vld [vmem:[#allocation11 + $0x630] sm:$0xff]  ;;  %v1992_v36 = vld [vmem:[#allocation11 + $0x648] sm:$0xff] }
 0x395   :  { %v1640_v42 = vpop.f32.mrb[2].mxu0  ;;  %v5116_v43 = vpop.f32.mrb[2].mxu1 }
 0x396   :  { %v4524_v45 = vadd.f32 %v1640_v42, %v1486_v39  ;;  %v1642_v52 = vpop.f32.mrb[3].mxu0  ;;  %v1784_v53 = vpop.f32.mrb[3].mxu1  ;;  %v4150_v39 = vpack.c.bf16 %v1949_v33, %v1945_v32  ;;  %v4024_v42 = vpack.c.bf16 %v1956_v35, %v1952_v34  ;;  %v1987_v32 = vld [vmem:[#allocation11 + $0x620] sm:$0xff]  ;;  %v1985_v35 = vld [vmem:[#allocation11 + $0x610] sm:$0xff] }
 0x397   :  { %v4525_v57 = vadd.f32 %v1642_v52, %v1490_v40  ;;  %v4527_v60 = vadd.f32 %v1784_v53, %v1498_v41  ;;  %v1951_v40 = vld [vmem:[#allocation11 + $0x500] sm:$0xff]  ;;  %v1957_v52 = vld [vmem:[#allocation11 + $0x530] sm:$0xff]  ;;  %v1960_v53 = vld [vmem:[#allocation11 + $0x548] sm:$0xff] }
 0x398   :  { %v1787_v6 = vmax.f32 %v4524_v45, 0.0  ;;  %v1955_v41 = vld [vmem:[#allocation11 + $0x520] sm:$0xff]  ;;  %v1953_v45 = vld [vmem:[#allocation11 + $0x510] sm:$0xff]  ;;  %v4028_v63 = vpack.c.bf16 %v1964_v54, %v1960_v53 }
 0x399   :  { %v1788_v1 = vmax.f32 %v4525_v57, 0.0  ;;  %v1790_v14 = vmax.f32 %v4527_v60, 0.0  ;;  %v4026_v57 = vpack.c.bf16 %v1955_v41, %v1951_v40  ;;  %v4154_v59 = vpack.c.bf16 %v1957_v52, %v1953_v45  ;;  %v1959_v60 = vld [vmem:[#allocation11 + $0x540] sm:$0xff]  ;;  %v1998_v40 = vld [vmem:[#allocation11 + $0x678] sm:$0xff]  ;;  %v1993_v54 = vld [vmem:[#allocation11 + $0x650] sm:$0xff] }
 0x39a   :  { %v4030_v7 = vpack.c.bf16 %v1963_v61, %v1959_v60  ;;  %v1995_v45 = vld [vmem:[#allocation11 + $0x660] sm:$0xff]  ;;  %v2006_v60 = vld [vmem:[#allocation11 + $0x6b8] sm:$0xff] }
 0x39b   :  { %2133 = vmatprep.mubr.f32.mxu0 %v1788_v1  ;;  %2275 = vmatprep.mubr.f32.mxu1 %v1788_v1  ;;  %v1961_v1 = vld [vmem:[#allocation11 + $0x550] sm:$0xff] }
 0x39c   :  { %2134 = vmatmul.mubr.f32.vlgmr.msra.gmra.mrb[4].mxu0 %v1787_v6  ;;  %2276 = vmatmul.mubr.f32.vlgmr.msra.gmra.mrb[4].mxu1 %v1787_v6  ;;  %v1974_v6 = vld [vmem:[#allocation11 + $0x5b8] sm:$0xff] }
 0x39d   :  { %4011 = vmatpush1.bf16.msra.mxu0 %v4010_v2  ;;  %4139 = vmatpush1.bf16.msra.mxu1 %v4138_v3  ;;  %v1965_v2 = vld [vmem:[#allocation11 + $0x570] sm:$0xff]  ;;  %v1968_v3 = vld [vmem:[#allocation11 + $0x588] sm:$0xff]  ;;  %v4160_v11 = vpack.c.bf16 %v1974_v6, %v1970_v5 }
 0x39e   :  { %2204 = vmatprep.mubr.f32.mxu0 %v1790_v14  ;;  %2346 = vmatprep.mubr.f32.mxu1 %v1790_v14  ;;  %v4158_v8 = vpack.c.bf16 %v1965_v2, %v1961_v1  ;;  %v1976_v14 = vld [vmem:[#allocation11 + $0x5c8] sm:$0xff]  ;;  %v2003_v1 = vld [vmem:[#allocation11 + $0x6a0] sm:$0xff]  ;;  %v2005_v5 = vld [vmem:[#allocation11 + $0x6b0] sm:$0xff] }
 0x39f   :  { %4013 = vmatprep.subr.bf16.mxu0 %v4012_v10  ;;  %4141 = vmatprep.subr.bf16.mxu1 %v4140_v47  ;;  %v1971_v10 = vld [vmem:[#allocation11 + $0x5a0] sm:$0xff]  ;;  %v4032_v47 = vpack.c.bf16 %v1972_v4, %v1968_v3  ;;  %v2001_v4 = vld [vmem:[#allocation11 + $0x690] sm:$0xff]  ;;  %v2008_v6 = vld [vmem:[#allocation11 + $0x6c8] sm:$0xff] }
 0x3a0   :  { %v4034_v18 = vpack.c.bf16 %v1971_v10, %v1967_v9  ;;  %v2014_v9 = vld [vmem:[#allocation11 + $0x6f8] sm:$0xff] }
 0x3a1   :  { %4015 = vmatpush1.bf16.msra.mxu0 %v4014_v15  ;;  %4143 = vmatpush1.bf16.msra.mxu1 %v4142_v16  ;;  %v1980_v15 = vld [vmem:[#allocation11 + $0x5e8] sm:$0xff]  ;;  %v1978_v16 = vld [vmem:[#allocation11 + $0x5d8] sm:$0xff] }
 0x3a2   :  { %4017 = vmatprep.subr.bf16.mxu0 %v4016_v19  ;;  %4145 = vmatprep.subr.bf16.mxu1 %v4144_v20  ;;  %v4162_v19 = vpack.c.bf16 %v1973_v13, %v1969_v12  ;;  %v1975_v20 = vld [vmem:[#allocation11 + $0x5c0] sm:$0xff]  ;;  %v4036_v22 = vpack.c.bf16 %v1980_v15, %v1976_v14  ;;  %v4164_v23 = vpack.c.bf16 %v1982_v17, %v1978_v16  ;;  %v2009_v15 = vld [vmem:[#allocation11 + $0x6d0] sm:$0xff]  ;;  %v2016_v17 = vld [vmem:[#allocation11 + $0x708] sm:$0xff] }
 0x3a3   :  { %v4038_v29 = vpack.c.bf16 %v1979_v21, %v1975_v20  ;;  %v2011_v12 = vld [vmem:[#allocation11 + $0x6e0] sm:$0xff]  ;;  %v2013_v16 = vld [vmem:[#allocation11 + $0x6f0] sm:$0xff]  ;;  %v2022_v20 = vld [vmem:[#allocation11 + $0x738] sm:$0xff] }
 0x3a5   :  { %4019 = vmatpush1.bf16.msra.mxu0 %v4018_v26  ;;  %4147 = vmatpush1.bf16.msra.mxu1 %v4146_v27  ;;  %v1988_v26 = vld [vmem:[#allocation11 + $0x628] sm:$0xff]  ;;  %v1986_v27 = vld [vmem:[#allocation11 + $0x618] sm:$0xff] }
 0x3a6   :  { %4021 = vmatprep.subr.bf16.mxu0 %v4020_v30  ;;  %4149 = vmatprep.subr.bf16.mxu1 %v4148_v31  ;;  %v4166_v30 = vpack.c.bf16 %v1981_v24, %v1977_v49  ;;  %v1983_v31 = vld [vmem:[#allocation11 + $0x600] sm:$0xff]  ;;  %v4040_v33 = vpack.c.bf16 %v1988_v26, %v1984_v25  ;;  %v4168_v34 = vpack.c.bf16 %v1990_v28, %v1986_v27  ;;  %v2017_v26 = vld [vmem:[#allocation11 + $0x710] sm:$0xff]  ;;  %v2024_v28 = vld [vmem:[#allocation11 + $0x748] sm:$0xff] }
 0x3a7   :  { %v4042_v41 = vpack.c.bf16 %v1987_v32, %v1983_v31  ;;  %v2019_v49 = vld [vmem:[#allocation11 + $0x720] sm:$0xff]  ;;  %v2021_v27 = vld [vmem:[#allocation11 + $0x730] sm:$0xff]  ;;  %v2030_v31 = vld [vmem:[#allocation11 + $0x778] sm:$0xff] }
 0x3a9   :  { %4023 = vmatpush1.bf16.msra.mxu0 %v4022_v37  ;;  %4151 = vmatpush1.bf16.msra.mxu1 %v4150_v39  ;;  %v1996_v37 = vld [vmem:[#allocation11 + $0x668] sm:$0xff]  ;;  %v1994_v39 = vld [vmem:[#allocation11 + $0x658] sm:$0xff] }
 0x3aa   :  { %4025 = vmatprep.subr.bf16.mxu0 %v4024_v42  ;;  %4153 = vmatprep.subr.bf16.mxu1 %v4152_v44  ;;  %v4170_v42 = vpack.c.bf16 %v1989_v58, %v1985_v35  ;;  %v1991_v44 = vld [vmem:[#allocation11 + $0x640] sm:$0xff]  ;;  %v4044_v52 = vpack.c.bf16 %v1996_v37, %v1992_v36  ;;  %v4172_v53 = vpack.c.bf16 %v1998_v40, %v1994_v39  ;;  %v2025_v37 = vld [vmem:[#allocation11 + $0x750] sm:$0xff]  ;;  %v2032_v40 = vld [vmem:[#allocation11 + $0x788] sm:$0xff] }
 0x3ab   :  { %v4046_v61 = vpack.c.bf16 %v1995_v45, %v1991_v44  ;;  %v2027_v35 = vld [vmem:[#allocation11 + $0x760] sm:$0xff]  ;;  %v2029_v39 = vld [vmem:[#allocation11 + $0x770] sm:$0xff]  ;;  %v2038_v44 = vld [vmem:[#allocation11 + $0x7b8] sm:$0xff] }
 0x3ad   :  { %4027 = vmatpush1.bf16.msra.mxu0 %v4026_v57  ;;  %4155 = vmatpush1.bf16.msra.mxu1 %v4154_v59  ;;  %v2004_v57 = vld [vmem:[#allocation11 + $0x6a8] sm:$0xff]  ;;  %v2002_v59 = vld [vmem:[#allocation11 + $0x698] sm:$0xff] }
 0x3ae   :  { %4029 = vmatprep.subr.bf16.mxu0 %v4028_v63  ;;  %4157 = vmatprep.subr.bf16.mxu1 %v4156_v0  ;;  %v4174_v63 = vpack.c.bf16 %v1997_v55, %v1993_v54  ;;  %v1999_v0 = vld [vmem:[#allocation11 + $0x680] sm:$0xff]  ;;  %v4048_v2 = vpack.c.bf16 %v2004_v57, %v2000_v56  ;;  %v4176_v3 = vpack.c.bf16 %v2006_v60, %v2002_v59  ;;  %v2033_v57 = vld [vmem:[#allocation11 + $0x790] sm:$0xff]  ;;  %v2040_v60 = vld [vmem:[#allocation11 + $0x7c8] sm:$0xff] }
 0x3af   :  { %v4050_v10 = vpack.c.bf16 %v2003_v1, %v1999_v0  ;;  %v2035_v54 = vld [vmem:[#allocation11 + $0x7a0] sm:$0xff]  ;;  %v2037_v59 = vld [vmem:[#allocation11 + $0x7b0] sm:$0xff]  ;;  %v2046_v0 = vld [vmem:[#allocation11 + $0x7f8] sm:$0xff] }
 0x3b1   :  { %4031 = vmatpush1.bf16.msra.mxu0 %v4030_v7  ;;  %4159 = vmatpush1.bf16.msra.mxu1 %v4158_v8  ;;  %v2012_v7 = vld [vmem:[#allocation11 + $0x6e8] sm:$0xff]  ;;  %v2010_v8 = vld [vmem:[#allocation11 + $0x6d8] sm:$0xff] }
 0x3b2   :  { %4033 = vmatprep.subr.bf16.mxu0 %v4032_v47  ;;  %4161 = vmatprep.subr.bf16.mxu1 %v4160_v11  ;;  %v4178_v47 = vpack.c.bf16 %v2005_v5, %v2001_v4  ;;  %v2007_v11 = vld [vmem:[#allocation11 + $0x6c0] sm:$0xff]  ;;  %v4052_v13 = vpack.c.bf16 %v2012_v7, %v2008_v6  ;;  %v4180_v14 = vpack.c.bf16 %v2014_v9, %v2010_v8  ;;  %v2041_v8 = vld [vmem:[#allocation11 + $0x7d0] sm:$0xff] }
 0x3b3   :  { %v4054_v21 = vpack.c.bf16 %v2011_v12, %v2007_v11  ;;  %v2043_v4 = vld [vmem:[#allocation11 + $0x7e0] sm:$0xff]  ;;  %v1494_v5 = vrot.slane %v5108_v38, %v5103_v62  ;;  %v2045_v9 = vld [vmem:[#allocation11 + $0x7f0] sm:$0xff] }
 0x3b4   :  { %v2360_v11 = vld [vmem:[#allocation14 + $0x18] sm:$0xff] }
 0x3b5   :  { %4035 = vmatpush1.bf16.msra.mxu0 %v4034_v18  ;;  %4163 = vmatpush1.bf16.msra.mxu1 %v4162_v19  ;;  %v2020_v18 = vld [vmem:[#allocation11 + $0x728] sm:$0xff]  ;;  %v2018_v19 = vld [vmem:[#allocation11 + $0x718] sm:$0xff] }
 0x3b6   :  { %4037 = vmatprep.subr.bf16.mxu0 %v4036_v22  ;;  %4165 = vmatprep.subr.bf16.mxu1 %v4164_v23  ;;  %v4182_v22 = vpack.c.bf16 %v2013_v16, %v2009_v15  ;;  %v2015_v23 = vld [vmem:[#allocation11 + $0x700] sm:$0xff]  ;;  %v4056_v24 = vpack.c.bf16 %v2020_v18, %v2016_v17  ;;  %v4184_v25 = vpack.c.bf16 %v2022_v20, %v2018_v19  ;;  %v2359_v19 = vld [vmem:[#allocation14 + $0x10] sm:$0xff] }
 0x3b7   :  { %v4058_v32 = vpack.c.bf16 %v2019_v49, %v2015_v23  ;;  %v2364_v12 = vld [vmem:[#allocation14 + $0x38] sm:$0xff]  ;;  %v2357_v15 = vld [vmem:[#allocation14] sm:$0xff]  ;;  %v4526_v17 = vadd.f32 %v5116_v43, %v1494_v5  ;;  %v2363_v20 = vld [vmem:[#allocation14 + $0x30] sm:$0xff] }
 0x3b8   :  { %v2361_v16 = vld [vmem:[#allocation14 + $0x20] sm:$0xff]  ;;  %v4328_v18 = vpack.c.bf16 %v2364_v12, %v2360_v11  ;;  %v2368_v23 = vld [vmem:[#allocation14 + $0x58] sm:$0xff]  ;;  %v2395_v11 = vld [vmem:[#allocation14 + $0x130] sm:$0xff] }
 0x3b9   :  { %4039 = vmatpush1.bf16.msra.mxu0 %v4038_v29  ;;  %4167 = vmatpush1.bf16.msra.mxu1 %v4166_v30  ;;  %v2028_v29 = vld [vmem:[#allocation11 + $0x768] sm:$0xff]  ;;  %v2026_v30 = vld [vmem:[#allocation11 + $0x758] sm:$0xff] }
 0x3ba   :  { %4041 = vmatprep.subr.bf16.mxu0 %v4040_v33  ;;  %4169 = vmatprep.subr.bf16.mxu1 %v4168_v34  ;;  %v4186_v33 = vpack.c.bf16 %v2021_v27, %v2017_v26  ;;  %v2023_v34 = vld [vmem:[#allocation11 + $0x740] sm:$0xff]  ;;  %v4060_v58 = vpack.c.bf16 %v2028_v29, %v2024_v28  ;;  %v4188_v36 = vpack.c.bf16 %v2030_v31, %v2026_v30  ;;  %v1789_v28 = vmax.f32 %v4526_v17, 0.0  ;;  %v2367_v30 = vld [vmem:[#allocation14 + $0x50] sm:$0xff]  ;;  %v2398_v12 = vld [vmem:[#allocation14 + $0x148] sm:$0xff] }
 0x3bb   :  { %v4062_v45 = vpack.c.bf16 %v2027_v35, %v2023_v34  ;;  %v2372_v49 = vld [vmem:[#allocation14 + $0x78] sm:$0xff]  ;;  %v2365_v26 = vld [vmem:[#allocation14 + $0x40] sm:$0xff]  ;;  %v2371_v31 = vld [vmem:[#allocation14 + $0x70] sm:$0xff] }
 0x3bc   :  { %v2369_v27 = vld [vmem:[#allocation14 + $0x60] sm:$0xff]  ;;  %v4332_v29 = vpack.c.bf16 %v2372_v49, %v2368_v23  ;;  %v2376_v34 = vld [vmem:[#allocation14 + $0x98] sm:$0xff]  ;;  %v2406_v23 = vld [vmem:[#allocation14 + $0x188] sm:$0xff] }
 0x3bd   :  { %4043 = vmatpush1.bf16.msra.mxu0 %v4042_v41  ;;  %4171 = vmatpush1.bf16.msra.mxu1 %v4170_v42  ;;  %v2036_v41 = vld [vmem:[#allocation11 + $0x7a8] sm:$0xff]  ;;  %v2034_v42 = vld [vmem:[#allocation11 + $0x798] sm:$0xff] }
 0x3be   :  { %4045 = vmatprep.subr.bf16.mxu0 %v4044_v52  ;;  %4173 = vmatprep.subr.bf16.mxu1 %v4172_v53  ;;  %v4190_v52 = vpack.c.bf16 %v2029_v39, %v2025_v37  ;;  %v2031_v53 = vld [vmem:[#allocation11 + $0x780] sm:$0xff]  ;;  %v4064_v55 = vpack.c.bf16 %v2036_v41, %v2032_v40  ;;  %v4192_v56 = vpack.c.bf16 %v2038_v44, %v2034_v42  ;;  %v2375_v42 = vld [vmem:[#allocation14 + $0x90] sm:$0xff]  ;;  %v2410_v49 = vld [vmem:[#allocation14 + $0x1a8] sm:$0xff] }
 0x3bf   :  { %v4066_v1 = vpack.c.bf16 %v2035_v54, %v2031_v53  ;;  %v2380_v35 = vld [vmem:[#allocation14 + $0xb8] sm:$0xff]  ;;  %v2373_v37 = vld [vmem:[#allocation14 + $0x80] sm:$0xff]  ;;  %v2379_v44 = vld [vmem:[#allocation14 + $0xb0] sm:$0xff] }
 0x3c0   :  { %v2377_v39 = vld [vmem:[#allocation14 + $0xa0] sm:$0xff]  ;;  %v4336_v41 = vpack.c.bf16 %v2380_v35, %v2376_v34  ;;  %v2384_v53 = vld [vmem:[#allocation14 + $0xd8] sm:$0xff]  ;;  %v2418_v34 = vld [vmem:[#allocation14 + $0x1e8] sm:$0xff] }
 0x3c1   :  { %4047 = vmatpush1.bf16.msra.mxu0 %v4046_v61  ;;  %4175 = vmatpush1.bf16.msra.mxu1 %v4174_v63  ;;  %v2044_v61 = vld [vmem:[#allocation11 + $0x7e8] sm:$0xff]  ;;  %v2042_v63 = vld [vmem:[#allocation11 + $0x7d8] sm:$0xff] }
 0x3c2   :  { %4049 = vmatprep.subr.bf16.mxu0 %v4048_v2  ;;  %4177 = vmatprep.subr.bf16.mxu1 %v4176_v3  ;;  %v4194_v2 = vpack.c.bf16 %v2037_v59, %v2033_v57  ;;  %v2039_v3 = vld [vmem:[#allocation11 + $0x7c0] sm:$0xff]  ;;  %v4068_v6 = vpack.c.bf16 %v2044_v61, %v2040_v60  ;;  %v4196_v7 = vpack.c.bf16 %v2046_v0, %v2042_v63  ;;  %v2383_v63 = vld [vmem:[#allocation14 + $0xd0] sm:$0xff] }
 0x3c3   :  { %v2388_v54 = vld [vmem:[#allocation14 + $0xf8] sm:$0xff]  ;;  %v2381_v57 = vld [vmem:[#allocation14 + $0xc0] sm:$0xff]  ;;  %v2387_v0 = vld [vmem:[#allocation14 + $0xf0] sm:$0xff] }
 0x3c4   :  { %v2385_v59 = vld [vmem:[#allocation14 + $0xe0] sm:$0xff]  ;;  %v4340_v61 = vpack.c.bf16 %v2388_v54, %v2384_v53  ;;  %v2416_v35 = vld [vmem:[#allocation14 + $0x1d8] sm:$0xff]  ;;  %v2426_v53 = vld [vmem:[#allocation14 + $0x228] sm:$0xff] }
 0x3c5   :  { %4051 = vmatpush1.bf16.msra.mxu0 %v4050_v10  ;;  %4179 = vmatpush1.bf16.msra.mxu1 %v4178_v47  ;;  %v2358_v10 = vld [vmem:[#allocation14 + $0x8] sm:$0xff]  ;;  %v4214_v5 = vpack.c.bf16 %v2385_v59, %v2381_v57  ;;  %v2424_v54 = vld [vmem:[#allocation14 + $0x218] sm:$0xff]  ;;  %v2421_v59 = vld [vmem:[#allocation14 + $0x200] sm:$0xff] }
 0x3c6   :  { %4053 = vmatprep.subr.bf16.mxu0 %v4052_v13  ;;  %4181 = vmatprep.subr.bf16.mxu1 %v4180_v14  ;;  %v2362_v47 = vld [vmem:[#allocation14 + $0x28] sm:$0xff]  ;;  %v4070_v13 = vpack.c.bf16 %v2043_v4, %v2039_v3  ;;  %v4198_v14 = vpack.c.bf16 %v2045_v9, %v2041_v8  ;;  %v2392_v3 = vld [vmem:[#allocation14 + $0x118] sm:$0xff]  ;;  %v2393_v8 = vld [vmem:[#allocation14 + $0x120] sm:$0xff] }
 0x3c7   :  { %v4200_v38 = vpack.c.bf16 %v2362_v47, %v2358_v10  ;;  %v2396_v4 = vld [vmem:[#allocation14 + $0x138] sm:$0xff]  ;;  %v2391_v47 = vld [vmem:[#allocation14 + $0x110] sm:$0xff] }
 0x3c8   :  { %v4344_v10 = vpack.c.bf16 %v2396_v4, %v2392_v3  ;;  %v4346_v17 = vpack.c.bf16 %v2395_v11, %v2391_v47  ;;  %v2434_v3 = vld [vmem:[#allocation14 + $0x268] sm:$0xff]  ;;  %v2432_v4 = vld [vmem:[#allocation14 + $0x258] sm:$0xff]  ;;  %v2431_v11 = vld [vmem:[#allocation14 + $0x250] sm:$0xff] }
 0x3c9   :  { %4055 = vmatpush1.bf16.msra.mxu0 %v4054_v21  ;;  %4183 = vmatpush1.bf16.msra.mxu1 %v4182_v22  ;;  %v2366_v21 = vld [vmem:[#allocation14 + $0x48] sm:$0xff] }
 0x3ca   :  { %4057 = vmatprep.subr.bf16.mxu0 %v4056_v24  ;;  %4185 = vmatprep.subr.bf16.mxu1 %v4184_v25  ;;  %v2370_v22 = vld [vmem:[#allocation14 + $0x68] sm:$0xff]  ;;  %v4202_v24 = vpack.c.bf16 %v2361_v16, %v2357_v15  ;;  %v4330_v25 = vpack.c.bf16 %v2363_v20, %v2359_v19  ;;  %v2404_v15 = vld [vmem:[#allocation14 + $0x178] sm:$0xff] }
 0x3cb   :  { %v4204_v43 = vpack.c.bf16 %v2370_v22, %v2366_v21  ;;  %v2399_v21 = vld [vmem:[#allocation14 + $0x150] sm:$0xff] }
 0x3cc   :  { %v2403_v22 = vld [vmem:[#allocation14 + $0x170] sm:$0xff] }
 0x3cd   :  { %4059 = vmatpush1.bf16.msra.mxu0 %v4058_v32  ;;  %4187 = vmatpush1.bf16.msra.mxu1 %v4186_v33  ;;  %v2374_v32 = vld [vmem:[#allocation14 + $0x88] sm:$0xff] }
 0x3ce   :  { %4061 = vmatprep.subr.bf16.mxu0 %v4060_v58  ;;  %4189 = vmatprep.subr.bf16.mxu1 %v4188_v36  ;;  %v2378_v33 = vld [vmem:[#allocation14 + $0xa8] sm:$0xff]  ;;  %v4206_v58 = vpack.c.bf16 %v2369_v27, %v2365_v26  ;;  %v4334_v36 = vpack.c.bf16 %v2371_v31, %v2367_v30  ;;  %v4350_v27 = vpack.c.bf16 %v2403_v22, %v2399_v21  ;;  %v2407_v31 = vld [vmem:[#allocation14 + $0x190] sm:$0xff] }
 0x3cf   :  { %v4208_v40 = vpack.c.bf16 %v2378_v33, %v2374_v32  ;;  %v2411_v32 = vld [vmem:[#allocation14 + $0x1b0] sm:$0xff]  ;;  %v2414_v33 = vld [vmem:[#allocation14 + $0x1c8] sm:$0xff] }
 0x3d0   :  { %v2439_v22 = vld [vmem:[#allocation14 + $0x290] sm:$0xff] }
 0x3d1   :  { %4063 = vmatpush1.bf16.msra.mxu0 %v4062_v45  ;;  %4191 = vmatpush1.bf16.msra.mxu1 %v4190_v52  ;;  %v2382_v45 = vld [vmem:[#allocation14 + $0xc8] sm:$0xff] }
 0x3d2   :  { %4065 = vmatprep.subr.bf16.mxu0 %v4064_v55  ;;  %4193 = vmatprep.subr.bf16.mxu1 %v4192_v56  ;;  %v2386_v52 = vld [vmem:[#allocation14 + $0xe8] sm:$0xff]  ;;  %v4210_v55 = vpack.c.bf16 %v2377_v39, %v2373_v37  ;;  %v4338_v56 = vpack.c.bf16 %v2379_v44, %v2375_v42  ;;  %v4354_v37 = vpack.c.bf16 %v2411_v32, %v2407_v31  ;;  %v2413_v39 = vld [vmem:[#allocation14 + $0x1c0] sm:$0xff]  ;;  %v2415_v44 = vld [vmem:[#allocation14 + $0x1d0] sm:$0xff] }
 0x3d3   :  { %v4212_v60 = vpack.c.bf16 %v2386_v52, %v2382_v45  ;;  %v2419_v45 = vld [vmem:[#allocation14 + $0x1f0] sm:$0xff]  ;;  %v2422_v52 = vld [vmem:[#allocation14 + $0x208] sm:$0xff] }
 0x3d4   :  { %v4358_v57 = vpack.c.bf16 %v2419_v45, %v2415_v44  ;;  %v2447_v32 = vld [vmem:[#allocation14 + $0x2d0] sm:$0xff] }
 0x3d5   :  { %4067 = vmatpush1.bf16.msra.mxu0 %v4066_v1  ;;  %4195 = vmatpush1.bf16.msra.mxu1 %v4194_v2  ;;  %v2390_v1 = vld [vmem:[#allocation14 + $0x108] sm:$0xff]  ;;  %v2455_v45 = vld [vmem:[#allocation14 + $0x310] sm:$0xff] }
 0x3d6   :  { %4069 = vmatprep.subr.bf16.mxu0 %v4068_v6  ;;  %4197 = vmatprep.subr.bf16.mxu1 %v4196_v7  ;;  %v2394_v2 = vld [vmem:[#allocation14 + $0x128] sm:$0xff]  ;;  %v4342_v6 = vpack.c.bf16 %v2387_v0, %v2383_v63  ;;  %v2389_v7 = vld [vmem:[#allocation14 + $0x100] sm:$0xff]  ;;  %v2423_v0 = vld [vmem:[#allocation14 + $0x210] sm:$0xff] }
 0x3d7   :  { %v4216_v9 = vpack.c.bf16 %v2394_v2, %v2390_v1  ;;  %v4218_v16 = vpack.c.bf16 %v2393_v8, %v2389_v7  ;;  %v2427_v1 = vld [vmem:[#allocation14 + $0x230] sm:$0xff]  ;;  %v2430_v2 = vld [vmem:[#allocation14 + $0x248] sm:$0xff]  ;;  %v2429_v8 = vld [vmem:[#allocation14 + $0x240] sm:$0xff] }
 0x3d8   :  { %v4362_v7 = vpack.c.bf16 %v2427_v1, %v2423_v0  ;;  %v2463_v1 = vld [vmem:[#allocation14 + $0x350] sm:$0xff] }
 0x3d9   :  { %4071 = vmatpush1.bf16.msra.mxu0 %v4070_v13  ;;  %4199 = vmatpush1.bf16.msra.mxu1 %v4198_v14  ;;  %v2402_v13 = vld [vmem:[#allocation14 + $0x168] sm:$0xff]  ;;  %v2400_v14 = vld [vmem:[#allocation14 + $0x158] sm:$0xff] }
 0x3da   :  { %4201 = vmatprep.subr.bf16.mxu0 %v4200_v38  ;;  %4329 = vmatprep.subr.bf16.mxu1 %v4328_v18  ;;  %v2397_v38 = vld [vmem:[#allocation14 + $0x140] sm:$0xff]  ;;  %v4220_v19 = vpack.c.bf16 %v2402_v13, %v2398_v12  ;;  %v4348_v20 = vpack.c.bf16 %v2404_v15, %v2400_v14  ;;  %v2435_v12 = vld [vmem:[#allocation14 + $0x270] sm:$0xff]  ;;  %v2438_v13 = vld [vmem:[#allocation14 + $0x288] sm:$0xff] }
 0x3db   :  { %v2401_v18 = vld [vmem:[#allocation14 + $0x160] sm:$0xff]  ;;  %v2442_v14 = vld [vmem:[#allocation14 + $0x2a8] sm:$0xff]  ;;  %v2440_v15 = vld [vmem:[#allocation14 + $0x298] sm:$0xff] }
 0x3dc   :  { %2205 = vmatmul.mubr.f32.vlgmr.msra.gmra.mrb[4].mxu0 %v1789_v28  ;;  %2347 = vmatmul.mubr.f32.vlgmr.msra.gmra.mrb[4].mxu1 %v1789_v28  ;;  %v4222_v26 = vpack.c.bf16 %v2401_v18, %v2397_v38  ;;  %v2405_v28 = vld [vmem:[#allocation14 + $0x180] sm:$0xff]  ;;  %v4366_v38 = vpack.c.bf16 %v2435_v12, %v2431_v11  ;;  %v2471_v12 = vld [vmem:[#allocation14 + $0x390] sm:$0xff] }
 0x3dd   :  { %4203 = vmatpush1.bf16.msra.mxu0 %v4202_v24  ;;  %4331 = vmatpush1.bf16.msra.mxu1 %v4330_v25  ;;  %v2408_v24 = vld [vmem:[#allocation14 + $0x198] sm:$0xff]  ;;  %v2437_v18 = vld [vmem:[#allocation14 + $0x280] sm:$0xff] }
 0x3de   :  { %4205 = vmatprep.subr.bf16.mxu0 %v4204_v43  ;;  %4333 = vmatprep.subr.bf16.mxu1 %v4332_v29  ;;  %v2412_v25 = vld [vmem:[#allocation14 + $0x1b8] sm:$0xff]  ;;  %v2409_v43 = vld [vmem:[#allocation14 + $0x1a0] sm:$0xff]  ;;  %v4224_v29 = vpack.c.bf16 %v2410_v49, %v2406_v23  ;;  %v2443_v23 = vld [vmem:[#allocation14 + $0x2b0] sm:$0xff] }
 0x3df   :  { %v4352_v30 = vpack.c.bf16 %v2412_v25, %v2408_v24  ;;  %v2446_v49 = vld [vmem:[#allocation14 + $0x2c8] sm:$0xff]  ;;  %v2448_v25 = vld [vmem:[#allocation14 + $0x2d8] sm:$0xff]  ;;  %v2473_v11 = vld [vmem:[#allocation14 + $0x3a0] sm:$0xff] }
 0x3e0   :  { %v2450_v24 = vld [vmem:[#allocation14 + $0x2e8] sm:$0xff] }
 0x3e1   :  { %4207 = vmatpush1.bf16.msra.mxu0 %v4206_v58  ;;  %4335 = vmatpush1.bf16.msra.mxu1 %v4334_v36  ;;  %v2420_v58 = vld [vmem:[#allocation14 + $0x1f8] sm:$0xff]  ;;  %v4226_v36 = vpack.c.bf16 %v2409_v43, %v2405_v28  ;;  %v4370_v28 = vpack.c.bf16 %v2443_v23, %v2439_v22  ;;  %v2445_v43 = vld [vmem:[#allocation14 + $0x2c0] sm:$0xff] }
 0x3e2   :  { %4209 = vmatprep.subr.bf16.mxu0 %v4208_v40  ;;  %4337 = vmatprep.subr.bf16.mxu1 %v4336_v41  ;;  %v2417_v40 = vld [vmem:[#allocation14 + $0x1e0] sm:$0xff]  ;;  %v4228_v41 = vpack.c.bf16 %v2418_v34, %v2414_v33  ;;  %v4356_v42 = vpack.c.bf16 %v2420_v58, %v2416_v35  ;;  %v2451_v33 = vld [vmem:[#allocation14 + $0x2f0] sm:$0xff]  ;;  %v2454_v34 = vld [vmem:[#allocation14 + $0x308] sm:$0xff] }
 0x3e3   :  { %v2458_v35 = vld [vmem:[#allocation14 + $0x328] sm:$0xff]  ;;  %v2456_v58 = vld [vmem:[#allocation14 + $0x318] sm:$0xff] }
 0x3e5   :  { %4211 = vmatpush1.bf16.msra.mxu0 %v4210_v55  ;;  %4339 = vmatpush1.bf16.msra.mxu1 %v4338_v56  ;;  %v2428_v55 = vld [vmem:[#allocation14 + $0x238] sm:$0xff]  ;;  %v4230_v56 = vpack.c.bf16 %v2417_v40, %v2413_v39  ;;  %v4374_v39 = vpack.c.bf16 %v2451_v33, %v2447_v32  ;;  %v2453_v40 = vld [vmem:[#allocation14 + $0x300] sm:$0xff] }
 0x3e6   :  { %4213 = vmatprep.subr.bf16.mxu0 %v4212_v60  ;;  %4341 = vmatprep.subr.bf16.mxu1 %v4340_v61  ;;  %v2425_v60 = vld [vmem:[#allocation14 + $0x220] sm:$0xff]  ;;  %v4232_v61 = vpack.c.bf16 %v2426_v53, %v2422_v52  ;;  %v4360_v63 = vpack.c.bf16 %v2428_v55, %v2424_v54  ;;  %v2459_v52 = vld [vmem:[#allocation14 + $0x330] sm:$0xff]  ;;  %v2462_v53 = vld [vmem:[#allocation14 + $0x348] sm:$0xff] }
 0x3e7   :  { %v2466_v54 = vld [vmem:[#allocation14 + $0x368] sm:$0xff]  ;;  %v2464_v55 = vld [vmem:[#allocation14 + $0x358] sm:$0xff] }
 0x3e9   :  { %4215 = vmatpush1.bf16.msra.mxu0 %v4214_v5  ;;  %4343 = vmatpush1.bf16.msra.mxu1 %v4342_v6  ;;  %v2436_v5 = vld [vmem:[#allocation14 + $0x278] sm:$0xff]  ;;  %v4234_v6 = vpack.c.bf16 %v2425_v60, %v2421_v59  ;;  %v4378_v59 = vpack.c.bf16 %v2459_v52, %v2455_v45  ;;  %v2461_v60 = vld [vmem:[#allocation14 + $0x340] sm:$0xff]  ;;  %v2494_v52 = vld [vmem:[#allocation14 + $0x448] sm:$0xff] }
 0x3ea   :  { %4217 = vmatprep.subr.bf16.mxu0 %v4216_v9  ;;  %4345 = vmatprep.subr.bf16.mxu1 %v4344_v10  ;;  %v2433_v9 = vld [vmem:[#allocation14 + $0x260] sm:$0xff]  ;;  %v4236_v10 = vpack.c.bf16 %v2434_v3, %v2430_v2  ;;  %v4364_v47 = vpack.c.bf16 %v2436_v5, %v2432_v4  ;;  %v2467_v2 = vld [vmem:[#allocation14 + $0x370] sm:$0xff]  ;;  %v2470_v3 = vld [vmem:[#allocation14 + $0x388] sm:$0xff] }
 0x3eb   :  { %v2474_v4 = vld [vmem:[#allocation14 + $0x3a8] sm:$0xff]  ;;  %v2472_v5 = vld [vmem:[#allocation14 + $0x398] sm:$0xff] }
 0x3ed   :  { %4219 = vmatpush1.bf16.msra.mxu0 %v4218_v16  ;;  %4347 = vmatpush1.bf16.msra.mxu1 %v4346_v17  ;;  %v2444_v16 = vld [vmem:[#allocation14 + $0x2b8] sm:$0xff]  ;;  %v4238_v17 = vpack.c.bf16 %v2433_v9, %v2429_v8  ;;  %v4382_v8 = vpack.c.bf16 %v2467_v2, %v2463_v1  ;;  %v2469_v9 = vld [vmem:[#allocation14 + $0x380] sm:$0xff]  ;;  %v2495_v1 = vld [vmem:[#allocation14 + $0x450] sm:$0xff] }
 0x3ee   :  { %4221 = vmatprep.subr.bf16.mxu0 %v4220_v19  ;;  %4349 = vmatprep.subr.bf16.mxu1 %v4348_v20  ;;  %v2441_v19 = vld [vmem:[#allocation14 + $0x2a0] sm:$0xff]  ;;  %v4240_v20 = vpack.c.bf16 %v2442_v14, %v2438_v13  ;;  %v4368_v21 = vpack.c.bf16 %v2444_v16, %v2440_v15  ;;  %v2475_v13 = vld [vmem:[#allocation14 + $0x3b0] sm:$0xff]  ;;  %v4258_v14 = vpack.c.bf16 %v2473_v11, %v2469_v9  ;;  %v2478_v16 = vld [vmem:[#allocation14 + $0x3c8] sm:$0xff] }
 0x3ef   :  { %v4386_v15 = vpack.c.bf16 %v2475_v13, %v2471_v12  ;;  %v2499_v2 = vld [vmem:[#allocation14 + $0x470] sm:$0xff]  ;;  %v2501_v11 = vld [vmem:[#allocation14 + $0x480] sm:$0xff] }
 0x3f0   :  { %v2505_v12 = vld [vmem:[#allocation14 + $0x4a0] sm:$0xff] }
 0x3f1   :  { %4223 = vmatpush1.bf16.msra.mxu0 %v4222_v26  ;;  %4351 = vmatpush1.bf16.msra.mxu1 %v4350_v27  ;;  %v2452_v26 = vld [vmem:[#allocation14 + $0x2f8] sm:$0xff]  ;;  %v4242_v27 = vpack.c.bf16 %v2441_v19, %v2437_v18 }
 0x3f2   :  { %4225 = vmatprep.subr.bf16.mxu0 %v4224_v29  ;;  %4353 = vmatprep.subr.bf16.mxu1 %v4352_v30  ;;  %v2449_v29 = vld [vmem:[#allocation14 + $0x2e0] sm:$0xff]  ;;  %v4244_v30 = vpack.c.bf16 %v2450_v24, %v2446_v49  ;;  %v4372_v31 = vpack.c.bf16 %v2452_v26, %v2448_v25  ;;  %v2484_v19 = vld [vmem:[#allocation14 + $0x3f8] sm:$0xff]  ;;  %v2479_v49 = vld [vmem:[#allocation14 + $0x3d0] sm:$0xff] }
 0x3f3   :  { %v2483_v24 = vld [vmem:[#allocation14 + $0x3f0] sm:$0xff]  ;;  %v2486_v26 = vld [vmem:[#allocation14 + $0x408] sm:$0xff] }
 0x3f4   :  { %v4390_v25 = vpack.c.bf16 %v2483_v24, %v2479_v49 }
 0x3f5   :  { %4227 = vmatpush1.bf16.msra.mxu0 %v4226_v36  ;;  %4355 = vmatpush1.bf16.msra.mxu1 %v4354_v37  ;;  %v2460_v36 = vld [vmem:[#allocation14 + $0x338] sm:$0xff]  ;;  %v4246_v37 = vpack.c.bf16 %v2449_v29, %v2445_v43 }
 0x3f6   :  { %4229 = vmatprep.subr.bf16.mxu0 %v4228_v41  ;;  %4357 = vmatprep.subr.bf16.mxu1 %v4356_v42  ;;  %v2457_v41 = vld [vmem:[#allocation14 + $0x320] sm:$0xff]  ;;  %v4248_v42 = vpack.c.bf16 %v2458_v35, %v2454_v34  ;;  %v4376_v44 = vpack.c.bf16 %v2460_v36, %v2456_v58  ;;  %v2492_v29 = vld [vmem:[#allocation14 + $0x438] sm:$0xff] }
 0x3f7   :  { %v2485_v36 = vld [vmem:[#allocation14 + $0x400] sm:$0xff] }
 0x3f9   :  { %4231 = vmatpush1.bf16.msra.mxu0 %v4230_v56  ;;  %4359 = vmatpush1.bf16.msra.mxu1 %v4358_v57  ;;  %v2468_v56 = vld [vmem:[#allocation14 + $0x378] sm:$0xff]  ;;  %v4250_v57 = vpack.c.bf16 %v2457_v41, %v2453_v40  ;;  %v2489_v41 = vld [vmem:[#allocation14 + $0x420] sm:$0xff] }
 0x3fa   :  { %4233 = vmatprep.subr.bf16.mxu0 %v4232_v61  ;;  %4361 = vmatprep.subr.bf16.mxu1 %v4360_v63  ;;  %v2465_v61 = vld [vmem:[#allocation14 + $0x360] sm:$0xff]  ;;  %v4252_v63 = vpack.c.bf16 %v2466_v54, %v2462_v53  ;;  %v4380_v0 = vpack.c.bf16 %v2468_v56, %v2464_v55  ;;  %v2498_v54 = vld [vmem:[#allocation14 + $0x468] sm:$0xff]  ;;  %v2496_v55 = vld [vmem:[#allocation14 + $0x458] sm:$0xff] }
 0x3fb   :  { %v2500_v56 = vld [vmem:[#allocation14 + $0x478] sm:$0xff] }
 0x3fd   :  { %4235 = vmatpush1.bf16.msra.mxu0 %v4234_v6  ;;  %4363 = vmatpush1.bf16.msra.mxu1 %v4362_v7  ;;  %v2476_v6 = vld [vmem:[#allocation14 + $0x3b8] sm:$0xff]  ;;  %v4254_v7 = vpack.c.bf16 %v2465_v61, %v2461_v60  ;;  %v2493_v61 = vld [vmem:[#allocation14 + $0x440] sm:$0xff] }
 0x3fe   :  { %4237 = vmatprep.subr.bf16.mxu0 %v4236_v10  ;;  %4365 = vmatprep.subr.bf16.mxu1 %v4364_v47  ;;  %v4256_v10 = vpack.c.bf16 %v2474_v4, %v2470_v3  ;;  %v4384_v47 = vpack.c.bf16 %v2476_v6, %v2472_v5  ;;  %v2502_v3 = vld [vmem:[#allocation14 + $0x488] sm:$0xff]  ;;  %v4268_v4 = vpack.c.bf16 %v2498_v54, %v2494_v52  ;;  %v2529_v54 = vld [vmem:[#allocation14 + $0x560] sm:$0xff] }
 0x3ff   :  { %v4396_v5 = vpack.c.bf16 %v2500_v56, %v2496_v55  ;;  %v2506_v6 = vld [vmem:[#allocation14 + $0x4a8] sm:$0xff] }
 0x400   :  { %v4272_v13 = vpack.c.bf16 %v2506_v6, %v2502_v3  ;;  %v2533_v3 = vld [vmem:[#allocation14 + $0x580] sm:$0xff] }
 0x401   :  { %4239 = vmatpush1.bf16.msra.mxu0 %v4238_v17  ;;  %4367 = vmatpush1.bf16.msra.mxu1 %v4366_v38  ;;  %v2482_v17 = vld [vmem:[#allocation14 + $0x3e8] sm:$0xff]  ;;  %v2480_v38 = vld [vmem:[#allocation14 + $0x3d8] sm:$0xff] }
 0x402   :  { %4241 = vmatprep.subr.bf16.mxu0 %v4240_v20  ;;  %4369 = vmatprep.subr.bf16.mxu1 %v4368_v21  ;;  %v4260_v18 = vpack.c.bf16 %v2482_v17, %v2478_v16  ;;  %v2477_v20 = vld [vmem:[#allocation14 + $0x3c0] sm:$0xff]  ;;  %v4388_v22 = vpack.c.bf16 %v2484_v19, %v2480_v38  ;;  %v2507_v16 = vld [vmem:[#allocation14 + $0x4b0] sm:$0xff]  ;;  %v2510_v17 = vld [vmem:[#allocation14 + $0x4c8] sm:$0xff] }
 0x403   :  { %v2481_v21 = vld [vmem:[#allocation14 + $0x3e0] sm:$0xff]  ;;  %v2514_v38 = vld [vmem:[#allocation14 + $0x4e8] sm:$0xff]  ;;  %v2516_v19 = vld [vmem:[#allocation14 + $0x4f8] sm:$0xff] }
 0x404   :  { %v4262_v23 = vpack.c.bf16 %v2481_v21, %v2477_v20  ;;  %v4274_v20 = vpack.c.bf16 %v2505_v12, %v2501_v11  ;;  %v4276_v49 = vpack.c.bf16 %v2514_v38, %v2510_v17  ;;  %v2548_v11 = vld [vmem:[#allocation14 + $0x5f8] sm:$0xff]  ;;  %v2543_v38 = vld [vmem:[#allocation14 + $0x5d0] sm:$0xff] }
 0x405   :  { %4243 = vmatpush1.bf16.msra.mxu0 %v4242_v27  ;;  %4371 = vmatpush1.bf16.msra.mxu1 %v4370_v28  ;;  %v2490_v27 = vld [vmem:[#allocation14 + $0x428] sm:$0xff]  ;;  %v2488_v28 = vld [vmem:[#allocation14 + $0x418] sm:$0xff] }
 0x406   :  { %4245 = vmatprep.subr.bf16.mxu0 %v4244_v30  ;;  %4373 = vmatprep.subr.bf16.mxu1 %v4372_v31  ;;  %v4264_v43 = vpack.c.bf16 %v2490_v27, %v2486_v26  ;;  %v4392_v30 = vpack.c.bf16 %v2492_v29, %v2488_v28  ;;  %v5121_v31 = vld [vmem:[#allocation13] sm:$0xf]  ;;  %v2515_v26 = vld [vmem:[#allocation14 + $0x4f0] sm:$0xff]  ;;  %v2518_v27 = vld [vmem:[#allocation14 + $0x508] sm:$0xff] }
 0x407   :  { %v2052_v32 = vrot.slane %v5121_v31, %v5084_v48  ;;  %v2056_v33 = vrot.slane %v5121_v31, %v5089_v50  ;;  %v2064_v34 = vrot.slane %v5121_v31, %v5092_v51  ;;  %v2522_v28 = vld [vmem:[#allocation14 + $0x528] sm:$0xff]  ;;  %v2524_v29 = vld [vmem:[#allocation14 + $0x538] sm:$0xff] }
 0x409   :  { %4247 = vmatpush1.bf16.msra.mxu0 %v4246_v37  ;;  %4375 = vmatpush1.bf16.msra.mxu1 %v4374_v39 }
 0x40a   :  { %4249 = vmatprep.subr.bf16.mxu0 %v4248_v42  ;;  %4377 = vmatprep.subr.bf16.mxu1 %v4376_v44  ;;  %v2487_v42 = vld [vmem:[#allocation14 + $0x410] sm:$0xff] }
 0x40b   :  { %v2491_v44 = vld [vmem:[#allocation14 + $0x430] sm:$0xff] }
 0x40c   :  { %v4394_v60 = vpack.c.bf16 %v2491_v44, %v2487_v42  ;;  %v2528_v42 = vld [vmem:[#allocation14 + $0x558] sm:$0xff] }
 0x40d   :  { %4251 = vmatpush1.bf16.msra.mxu0 %v4250_v57  ;;  %4379 = vmatpush1.bf16.msra.mxu1 %v4378_v59  ;;  %v4266_v59 = vpack.c.bf16 %v2489_v41, %v2485_v36  ;;  %v2530_v41 = vld [vmem:[#allocation14 + $0x568] sm:$0xff]  ;;  %v2532_v44 = vld [vmem:[#allocation14 + $0x578] sm:$0xff] }
 0x40e   :  { %4253 = vmatprep.subr.bf16.mxu0 %v4252_v63  ;;  %4381 = vmatprep.subr.bf16.mxu1 %v4380_v0  ;;  %v2497_v63 = vld [vmem:[#allocation14 + $0x460] sm:$0xff]  ;;  %v4412_v56 = vpack.c.bf16 %v2532_v44, %v2528_v42  ;;  %v2563_v42 = vld [vmem:[#allocation14 + $0x670] sm:$0xff]  ;;  %v2566_v44 = vld [vmem:[#allocation14 + $0x688] sm:$0xff] }
 0x411   :  { %4255 = vmatpush1.bf16.msra.mxu0 %v4254_v7  ;;  %4383 = vmatpush1.bf16.msra.mxu1 %v4382_v8  ;;  %v2504_v7 = vld [vmem:[#allocation14 + $0x498] sm:$0xff] }
 0x412   :  { %4257 = vmatprep.subr.bf16.mxu0 %v4256_v10  ;;  %4385 = vmatprep.subr.bf16.mxu1 %v4384_v47  ;;  %v2508_v8 = vld [vmem:[#allocation14 + $0x4b8] sm:$0xff]  ;;  %v4270_v10 = vpack.c.bf16 %v2497_v63, %v2493_v61  ;;  %v4398_v47 = vpack.c.bf16 %v2499_v2, %v2495_v1  ;;  %v2538_v61 = vld [vmem:[#allocation14 + $0x5a8] sm:$0xff] }
 0x413   :  { %v2536_v63 = vld [vmem:[#allocation14 + $0x598] sm:$0xff] }
 0x415   :  { %4259 = vmatpush1.bf16.msra.mxu0 %v4258_v14  ;;  %4387 = vmatpush1.bf16.msra.mxu1 %v4386_v15  ;;  %v4400_v14 = vpack.c.bf16 %v2508_v8, %v2504_v7  ;;  %v2503_v15 = vld [vmem:[#allocation14 + $0x490] sm:$0xff] }
 0x416   :  { %4261 = vmatprep.subr.bf16.mxu0 %v4260_v18  ;;  %4389 = vmatprep.subr.bf16.mxu1 %v4388_v22  ;;  %v2512_v18 = vld [vmem:[#allocation14 + $0x4d8] sm:$0xff]  ;;  %v4402_v21 = vpack.c.bf16 %v2507_v16, %v2503_v15  ;;  %v2509_v22 = vld [vmem:[#allocation14 + $0x4c0] sm:$0xff]  ;;  %v2535_v7 = vld [vmem:[#allocation14 + $0x590] sm:$0xff] }
 0x417   :  { %v4404_v24 = vpack.c.bf16 %v2516_v19, %v2512_v18  ;;  %v2539_v8 = vld [vmem:[#allocation14 + $0x5b0] sm:$0xff]  ;;  %v2545_v15 = vld [vmem:[#allocation14 + $0x5e0] sm:$0xff]  ;;  %v2550_v19 = vld [vmem:[#allocation14 + $0x608] sm:$0xff] }
 0x418   :  { %v2547_v18 = vld [vmem:[#allocation14 + $0x5f0] sm:$0xff] }
 0x419   :  { %4263 = vmatpush1.bf16.msra.mxu0 %v4262_v23  ;;  %4391 = vmatpush1.bf16.msra.mxu1 %v4390_v25  ;;  %v2513_v23 = vld [vmem:[#allocation14 + $0x4e0] sm:$0xff]  ;;  %v2511_v25 = vld [vmem:[#allocation14 + $0x4d0] sm:$0xff] }
 0x41a   :  { %4265 = vmatprep.subr.bf16.mxu0 %v4264_v43  ;;  %4393 = vmatprep.subr.bf16.mxu1 %v4392_v30  ;;  %v2520_v43 = vld [vmem:[#allocation14 + $0x518] sm:$0xff]  ;;  %v4278_v30 = vpack.c.bf16 %v2513_v23, %v2509_v22 }
 0x41b   :  { %v4408_v36 = vpack.c.bf16 %v2524_v29, %v2520_v43  ;;  %v2556_v22 = vld [vmem:[#allocation14 + $0x638] sm:$0xff]  ;;  %v2555_v43 = vld [vmem:[#allocation14 + $0x630] sm:$0xff]  ;;  %v2558_v29 = vld [vmem:[#allocation14 + $0x648] sm:$0xff] }
 0x4af   :  { %v2206_v35 = vpop.f32.mrb[4].mxu0  ;;  %v5129_v58 = vpop.f32.mrb[4].mxu1 }
 0x4b0   :  { %v4528_v37 = vadd.f32 %v2206_v35, %v2052_v32  ;;  %v2208_v39 = vpop.f32.mrb[5].mxu0  ;;  %v2350_v40 = vpop.f32.mrb[5].mxu1  ;;  %v4406_v32 = vpack.c.bf16 %v2515_v26, %v2511_v25  ;;  %v4280_v35 = vpack.c.bf16 %v2522_v28, %v2518_v27  ;;  %v2553_v25 = vld [vmem:[#allocation14 + $0x620] sm:$0xff]  ;;  %v2551_v28 = vld [vmem:[#allocation14 + $0x610] sm:$0xff] }
 0x4b1   :  { %v4529_v45 = vadd.f32 %v2208_v39, %v2056_v33  ;;  %v4531_v53 = vadd.f32 %v2350_v40, %v2064_v34  ;;  %v2517_v33 = vld [vmem:[#allocation14 + $0x500] sm:$0xff]  ;;  %v2523_v39 = vld [vmem:[#allocation14 + $0x530] sm:$0xff]  ;;  %v2526_v40 = vld [vmem:[#allocation14 + $0x548] sm:$0xff] }
 0x4b2   :  { %v2353_v0 = vmax.f32 %v4528_v37, 0.0  ;;  %v2521_v34 = vld [vmem:[#allocation14 + $0x520] sm:$0xff]  ;;  %v2519_v37 = vld [vmem:[#allocation14 + $0x510] sm:$0xff]  ;;  %v4284_v55 = vpack.c.bf16 %v2530_v41, %v2526_v40 }
 0x4b3   :  { %v2354_v57 = vmax.f32 %v4529_v45, 0.0  ;;  %v2356_v9 = vmax.f32 %v4531_v53, 0.0  ;;  %v4282_v45 = vpack.c.bf16 %v2521_v34, %v2517_v33  ;;  %v4410_v52 = vpack.c.bf16 %v2523_v39, %v2519_v37  ;;  %v2525_v53 = vld [vmem:[#allocation14 + $0x540] sm:$0xff]  ;;  %v2564_v33 = vld [vmem:[#allocation14 + $0x678] sm:$0xff]  ;;  %v2559_v41 = vld [vmem:[#allocation14 + $0x650] sm:$0xff] }
 0x4b4   :  { %v4286_v1 = vpack.c.bf16 %v2529_v54, %v2525_v53  ;;  %v2561_v37 = vld [vmem:[#allocation14 + $0x660] sm:$0xff]  ;;  %v2572_v53 = vld [vmem:[#allocation14 + $0x6b8] sm:$0xff] }
 0x4b5   :  { %2699 = vmatprep.mubr.f32.mxu0 %v2354_v57  ;;  %2841 = vmatprep.mubr.f32.mxu1 %v2354_v57  ;;  %v2527_v57 = vld [vmem:[#allocation14 + $0x550] sm:$0xff] }
 0x4b6   :  { %2700 = vmatmul.mubr.f32.vlgmr.msra.gmra.mrb[6].mxu0 %v2353_v0  ;;  %2842 = vmatmul.mubr.f32.vlgmr.msra.gmra.mrb[6].mxu1 %v2353_v0  ;;  %v2540_v0 = vld [vmem:[#allocation14 + $0x5b8] sm:$0xff] }
 0x4b7   :  { %4267 = vmatpush1.bf16.msra.mxu0 %v4266_v59  ;;  %4395 = vmatpush1.bf16.msra.mxu1 %v4394_v60  ;;  %v2531_v59 = vld [vmem:[#allocation14 + $0x570] sm:$0xff]  ;;  %v2534_v60 = vld [vmem:[#allocation14 + $0x588] sm:$0xff]  ;;  %v4416_v6 = vpack.c.bf16 %v2540_v0, %v2536_v63 }
 0x4b8   :  { %2770 = vmatprep.mubr.f32.mxu0 %v2356_v9  ;;  %2912 = vmatprep.mubr.f32.mxu1 %v2356_v9  ;;  %v4414_v2 = vpack.c.bf16 %v2531_v59, %v2527_v57  ;;  %v2542_v9 = vld [vmem:[#allocation14 + $0x5c8] sm:$0xff]  ;;  %v2569_v57 = vld [vmem:[#allocation14 + $0x6a0] sm:$0xff]  ;;  %v2571_v63 = vld [vmem:[#allocation14 + $0x6b0] sm:$0xff] }
 0x4b9   :  { %4269 = vmatprep.subr.bf16.mxu0 %v4268_v4  ;;  %4397 = vmatprep.subr.bf16.mxu1 %v4396_v5  ;;  %v2537_v4 = vld [vmem:[#allocation14 + $0x5a0] sm:$0xff]  ;;  %v4288_v5 = vpack.c.bf16 %v2538_v61, %v2534_v60  ;;  %v2567_v61 = vld [vmem:[#allocation14 + $0x690] sm:$0xff]  ;;  %v2574_v0 = vld [vmem:[#allocation14 + $0x6c8] sm:$0xff] }
 0x4ba   :  { %v4290_v12 = vpack.c.bf16 %v2537_v4, %v2533_v3  ;;  %v2580_v3 = vld [vmem:[#allocation14 + $0x6f8] sm:$0xff] }
 0x4bb   :  { %4271 = vmatpush1.bf16.msra.mxu0 %v4270_v10  ;;  %4399 = vmatpush1.bf16.msra.mxu1 %v4398_v47  ;;  %v2546_v10 = vld [vmem:[#allocation14 + $0x5e8] sm:$0xff]  ;;  %v2544_v47 = vld [vmem:[#allocation14 + $0x5d8] sm:$0xff] }
 0x4bc   :  { %4273 = vmatprep.subr.bf16.mxu0 %v4272_v13  ;;  %4401 = vmatprep.subr.bf16.mxu1 %v4400_v14  ;;  %v4418_v13 = vpack.c.bf16 %v2539_v8, %v2535_v7  ;;  %v2541_v14 = vld [vmem:[#allocation14 + $0x5c0] sm:$0xff]  ;;  %v4292_v16 = vpack.c.bf16 %v2546_v10, %v2542_v9  ;;  %v4420_v17 = vpack.c.bf16 %v2548_v11, %v2544_v47  ;;  %v2575_v10 = vld [vmem:[#allocation14 + $0x6d0] sm:$0xff]  ;;  %v2582_v11 = vld [vmem:[#allocation14 + $0x708] sm:$0xff] }
 0x4bd   :  { %v4294_v23 = vpack.c.bf16 %v2545_v15, %v2541_v14  ;;  %v2577_v7 = vld [vmem:[#allocation14 + $0x6e0] sm:$0xff]  ;;  %v2579_v47 = vld [vmem:[#allocation14 + $0x6f0] sm:$0xff]  ;;  %v2588_v14 = vld [vmem:[#allocation14 + $0x738] sm:$0xff] }
 0x4bf   :  { %4275 = vmatpush1.bf16.msra.mxu0 %v4274_v20  ;;  %4403 = vmatpush1.bf16.msra.mxu1 %v4402_v21  ;;  %v2554_v20 = vld [vmem:[#allocation14 + $0x628] sm:$0xff]  ;;  %v2552_v21 = vld [vmem:[#allocation14 + $0x618] sm:$0xff] }
 0x4c0   :  { %4277 = vmatprep.subr.bf16.mxu0 %v4276_v49  ;;  %4405 = vmatprep.subr.bf16.mxu1 %v4404_v24  ;;  %v4422_v49 = vpack.c.bf16 %v2547_v18, %v2543_v38  ;;  %v2549_v24 = vld [vmem:[#allocation14 + $0x600] sm:$0xff]  ;;  %v4296_v26 = vpack.c.bf16 %v2554_v20, %v2550_v19  ;;  %v4424_v27 = vpack.c.bf16 %v2556_v22, %v2552_v21  ;;  %v2583_v20 = vld [vmem:[#allocation14 + $0x710] sm:$0xff]  ;;  %v2590_v22 = vld [vmem:[#allocation14 + $0x748] sm:$0xff] }
 0x4c1   :  { %v4298_v34 = vpack.c.bf16 %v2553_v25, %v2549_v24  ;;  %v2585_v38 = vld [vmem:[#allocation14 + $0x720] sm:$0xff]  ;;  %v2587_v21 = vld [vmem:[#allocation14 + $0x730] sm:$0xff]  ;;  %v2596_v24 = vld [vmem:[#allocation14 + $0x778] sm:$0xff] }
 0x4c3   :  { %4279 = vmatpush1.bf16.msra.mxu0 %v4278_v30  ;;  %4407 = vmatpush1.bf16.msra.mxu1 %v4406_v32  ;;  %v2562_v30 = vld [vmem:[#allocation14 + $0x668] sm:$0xff]  ;;  %v2560_v32 = vld [vmem:[#allocation14 + $0x658] sm:$0xff] }
 0x4c4   :  { %4281 = vmatprep.subr.bf16.mxu0 %v4280_v35  ;;  %4409 = vmatprep.subr.bf16.mxu1 %v4408_v36  ;;  %v4426_v35 = vpack.c.bf16 %v2555_v43, %v2551_v28  ;;  %v2557_v36 = vld [vmem:[#allocation14 + $0x640] sm:$0xff]  ;;  %v4300_v39 = vpack.c.bf16 %v2562_v30, %v2558_v29  ;;  %v4428_v40 = vpack.c.bf16 %v2564_v33, %v2560_v32  ;;  %v2591_v30 = vld [vmem:[#allocation14 + $0x750] sm:$0xff]  ;;  %v2598_v33 = vld [vmem:[#allocation14 + $0x788] sm:$0xff] }
 0x4c5   :  { %v4302_v54 = vpack.c.bf16 %v2561_v37, %v2557_v36  ;;  %v2593_v28 = vld [vmem:[#allocation14 + $0x760] sm:$0xff]  ;;  %v2595_v32 = vld [vmem:[#allocation14 + $0x770] sm:$0xff]  ;;  %v2604_v36 = vld [vmem:[#allocation14 + $0x7b8] sm:$0xff] }
 0x4c7   :  { %4283 = vmatpush1.bf16.msra.mxu0 %v4282_v45  ;;  %4411 = vmatpush1.bf16.msra.mxu1 %v4410_v52  ;;  %v2570_v45 = vld [vmem:[#allocation14 + $0x6a8] sm:$0xff]  ;;  %v2568_v52 = vld [vmem:[#allocation14 + $0x698] sm:$0xff] }
 0x4c8   :  { %4285 = vmatprep.subr.bf16.mxu0 %v4284_v55  ;;  %4413 = vmatprep.subr.bf16.mxu1 %v4412_v56  ;;  %v4430_v55 = vpack.c.bf16 %v2563_v42, %v2559_v41  ;;  %v2565_v56 = vld [vmem:[#allocation14 + $0x680] sm:$0xff]  ;;  %v4304_v59 = vpack.c.bf16 %v2570_v45, %v2566_v44  ;;  %v4432_v60 = vpack.c.bf16 %v2572_v53, %v2568_v52  ;;  %v2599_v45 = vld [vmem:[#allocation14 + $0x790] sm:$0xff]  ;;  %v2606_v53 = vld [vmem:[#allocation14 + $0x7c8] sm:$0xff] }
 0x4c9   :  { %v4306_v4 = vpack.c.bf16 %v2569_v57, %v2565_v56  ;;  %v2601_v41 = vld [vmem:[#allocation14 + $0x7a0] sm:$0xff]  ;;  %v2603_v52 = vld [vmem:[#allocation14 + $0x7b0] sm:$0xff]  ;;  %v2612_v56 = vld [vmem:[#allocation14 + $0x7f8] sm:$0xff] }
 0x4cb   :  { %4287 = vmatpush1.bf16.msra.mxu0 %v4286_v1  ;;  %4415 = vmatpush1.bf16.msra.mxu1 %v4414_v2  ;;  %v2578_v1 = vld [vmem:[#allocation14 + $0x6e8] sm:$0xff]  ;;  %v2576_v2 = vld [vmem:[#allocation14 + $0x6d8] sm:$0xff] }
 0x4cc   :  { %4289 = vmatprep.subr.bf16.mxu0 %v4288_v5  ;;  %4417 = vmatprep.subr.bf16.mxu1 %v4416_v6  ;;  %v4434_v5 = vpack.c.bf16 %v2571_v63, %v2567_v61  ;;  %v2573_v6 = vld [vmem:[#allocation14 + $0x6c0] sm:$0xff]  ;;  %v4308_v8 = vpack.c.bf16 %v2578_v1, %v2574_v0  ;;  %v4436_v9 = vpack.c.bf16 %v2580_v3, %v2576_v2  ;;  %v2607_v2 = vld [vmem:[#allocation14 + $0x7d0] sm:$0xff] }
 0x4cd   :  { %v4310_v15 = vpack.c.bf16 %v2577_v7, %v2573_v6  ;;  %v2609_v61 = vld [vmem:[#allocation14 + $0x7e0] sm:$0xff]  ;;  %v2060_v63 = vrot.slane %v5121_v31, %v5103_v62  ;;  %v2611_v3 = vld [vmem:[#allocation14 + $0x7f0] sm:$0xff] }
 0x4ce   :  { %v2971_v6 = vld [vmem:[#allocation17 + $0x180] sm:$0xff]  ;;  %v2972_v7 = vld [vmem:[#allocation17 + $0x188] sm:$0xff] }
 0x4cf   :  { %4291 = vmatpush1.bf16.msra.mxu0 %v4290_v12  ;;  %4419 = vmatpush1.bf16.msra.mxu1 %v4418_v13  ;;  %v2586_v12 = vld [vmem:[#allocation14 + $0x728] sm:$0xff]  ;;  %v2584_v13 = vld [vmem:[#allocation14 + $0x718] sm:$0xff] }
 0x4d0   :  { %4293 = vmatprep.subr.bf16.mxu0 %v4292_v16  ;;  %4421 = vmatprep.subr.bf16.mxu1 %v4420_v17  ;;  %v4438_v16 = vpack.c.bf16 %v2579_v47, %v2575_v10  ;;  %v2581_v17 = vld [vmem:[#allocation14 + $0x700] sm:$0xff]  ;;  %v4312_v18 = vpack.c.bf16 %v2586_v12, %v2582_v11  ;;  %v4440_v19 = vpack.c.bf16 %v2588_v14, %v2584_v13  ;;  %v2924_v47 = vld [vmem:[#allocation17 + $0x8] sm:$0xff] }
 0x4d1   :  { %v4314_v25 = vpack.c.bf16 %v2585_v38, %v2581_v17  ;;  %v2923_v10 = vld [vmem:[#allocation17] sm:$0xff]  ;;  %v4530_v11 = vadd.f32 %v5129_v58, %v2060_v63  ;;  %v4488_v12 = vpack.c.bf16 %v2972_v7, %v2971_v6  ;;  %v2956_v14 = vld [vmem:[#allocation17 + $0x108] sm:$0xff]  ;;  %v2973_v17 = vld [vmem:[#allocation17 + $0x190] sm:$0xff] }
 0x4d2   :  { %v2955_v13 = vld [vmem:[#allocation17 + $0x100] sm:$0xff]  ;;  %v2974_v38 = vld [vmem:[#allocation17 + $0x198] sm:$0xff]  ;;  %v2964_v6 = vld [vmem:[#allocation17 + $0x148] sm:$0xff] }
 0x4d3   :  { %4295 = vmatpush1.bf16.msra.mxu0 %v4294_v23  ;;  %4423 = vmatpush1.bf16.msra.mxu1 %v4422_v49  ;;  %v2594_v23 = vld [vmem:[#allocation14 + $0x768] sm:$0xff]  ;;  %v2592_v49 = vld [vmem:[#allocation14 + $0x758] sm:$0xff] }
 0x4d4   :  { %4297 = vmatprep.subr.bf16.mxu0 %v4296_v26  ;;  %4425 = vmatprep.subr.bf16.mxu1 %v4424_v27  ;;  %v4442_v26 = vpack.c.bf16 %v2587_v21, %v2583_v20  ;;  %v2589_v27 = vld [vmem:[#allocation14 + $0x740] sm:$0xff]  ;;  %v4316_v43 = vpack.c.bf16 %v2594_v23, %v2590_v22  ;;  %v4444_v29 = vpack.c.bf16 %v2596_v24, %v2592_v49  ;;  %v2925_v20 = vld [vmem:[#allocation17 + $0x10] sm:$0xff]  ;;  %v2355_v22 = vmax.f32 %v4530_v11, 0.0 }
 0x4d5   :  { %v4318_v37 = vpack.c.bf16 %v2593_v28, %v2589_v27  ;;  %v2926_v21 = vld [vmem:[#allocation17 + $0x18] sm:$0xff]  ;;  %v4492_v23 = vpack.c.bf16 %v2974_v38, %v2973_v17  ;;  %v2957_v49 = vld [vmem:[#allocation17 + $0x110] sm:$0xff]  ;;  %v2975_v27 = vld [vmem:[#allocation17 + $0x1a0] sm:$0xff] }
 0x4d6   :  { %v2958_v24 = vld [vmem:[#allocation17 + $0x118] sm:$0xff]  ;;  %v2976_v28 = vld [vmem:[#allocation17 + $0x1a8] sm:$0xff]  ;;  %v2949_v7 = vld [vmem:[#allocation17 + $0xd0] sm:$0xff] }
 0x4d7   :  { %4299 = vmatpush1.bf16.msra.mxu0 %v4298_v34  ;;  %4427 = vmatpush1.bf16.msra.mxu1 %v4426_v35  ;;  %v2602_v34 = vld [vmem:[#allocation14 + $0x7a8] sm:$0xff]  ;;  %v2600_v35 = vld [vmem:[#allocation14 + $0x798] sm:$0xff] }
 0x4d8   :  { %4301 = vmatprep.subr.bf16.mxu0 %v4300_v39  ;;  %4429 = vmatprep.subr.bf16.mxu1 %v4428_v40  ;;  %v4446_v39 = vpack.c.bf16 %v2595_v32, %v2591_v30  ;;  %v2597_v40 = vld [vmem:[#allocation14 + $0x780] sm:$0xff]  ;;  %v4320_v42 = vpack.c.bf16 %v2602_v34, %v2598_v33  ;;  %v4448_v44 = vpack.c.bf16 %v2604_v36, %v2600_v35  ;;  %v2928_v32 = vld [vmem:[#allocation17 + $0x28] sm:$0xff] }
 0x4d9   :  { %v4322_v57 = vpack.c.bf16 %v2601_v41, %v2597_v40  ;;  %v2927_v30 = vld [vmem:[#allocation17 + $0x20] sm:$0xff]  ;;  %v4496_v34 = vpack.c.bf16 %v2976_v28, %v2975_v27  ;;  %v2960_v36 = vld [vmem:[#allocation17 + $0x128] sm:$0xff]  ;;  %v2977_v40 = vld [vmem:[#allocation17 + $0x1b0] sm:$0xff] }
 0x4da   :  { %v2959_v35 = vld [vmem:[#allocation17 + $0x120] sm:$0xff]  ;;  %v2978_v41 = vld [vmem:[#allocation17 + $0x1b8] sm:$0xff]  ;;  %v2952_v38 = vld [vmem:[#allocation17 + $0xe8] sm:$0xff] }
 0x4db   :  { %4303 = vmatpush1.bf16.msra.mxu0 %v4302_v54  ;;  %4431 = vmatpush1.bf16.msra.mxu1 %v4430_v55  ;;  %v2610_v54 = vld [vmem:[#allocation14 + $0x7e8] sm:$0xff]  ;;  %v2608_v55 = vld [vmem:[#allocation14 + $0x7d8] sm:$0xff] }
 0x4dc   :  { %4305 = vmatprep.subr.bf16.mxu0 %v4304_v59  ;;  %4433 = vmatprep.subr.bf16.mxu1 %v4432_v60  ;;  %v4450_v59 = vpack.c.bf16 %v2603_v52, %v2599_v45  ;;  %v2605_v60 = vld [vmem:[#allocation14 + $0x7c0] sm:$0xff]  ;;  %v4324_v0 = vpack.c.bf16 %v2610_v54, %v2606_v53  ;;  %v4452_v1 = vpack.c.bf16 %v2612_v56, %v2608_v55  ;;  %v2929_v45 = vld [vmem:[#allocation17 + $0x30] sm:$0xff] }
 0x4dd   :  { %v2930_v52 = vld [vmem:[#allocation17 + $0x38] sm:$0xff]  ;;  %v4500_v54 = vpack.c.bf16 %v2978_v41, %v2977_v40  ;;  %v2961_v55 = vld [vmem:[#allocation17 + $0x130] sm:$0xff]  ;;  %v2951_v17 = vld [vmem:[#allocation17 + $0xe0] sm:$0xff] }
 0x4de   :  { %v2962_v56 = vld [vmem:[#allocation17 + $0x138] sm:$0xff]  ;;  %v4470_v63 = vpack.c.bf16 %v2930_v52, %v2929_v45  ;;  %v2953_v28 = vld [vmem:[#allocation17 + $0xf0] sm:$0xff] }
 0x4df   :  { %4307 = vmatpush1.bf16.msra.mxu0 %v4306_v4  ;;  %4435 = vmatpush1.bf16.msra.mxu1 %v4434_v5  ;;  %v2939_v4 = vld [vmem:[#allocation17 + $0x80] sm:$0xff]  ;;  %v2940_v5 = vld [vmem:[#allocation17 + $0x88] sm:$0xff]  ;;  %v2613_v41 = vld [vmem:[#allocation16] sm:$0xf] }
 0x4e0   :  { %4309 = vmatprep.subr.bf16.mxu0 %v4308_v8  ;;  %4437 = vmatprep.subr.bf16.mxu1 %v4436_v9  ;;  %v4326_v8 = vpack.c.bf16 %v2609_v61, %v2605_v60  ;;  %v4454_v9 = vpack.c.bf16 %v2611_v3, %v2607_v2  ;;  %v4456_v31 = vpack.c.bf16 %v2940_v5, %v2939_v4  ;;  %v2979_v60 = vld [vmem:[#allocation17 + $0x1c0] sm:$0xff]  ;;  %v2980_v61 = vld [vmem:[#allocation17 + $0x1c8] sm:$0xff] }
 0x4e1   :  { %v2932_v2 = vld [vmem:[#allocation17 + $0x48] sm:$0xff]  ;;  %v4504_v4 = vpack.c.bf16 %v2980_v61, %v2979_v60  ;;  %v2963_v5 = vld [vmem:[#allocation17 + $0x140] sm:$0xff]  ;;  %v2622_v45 = vrot.slane %v2613_v41, %v5089_v50  ;;  %v2630_v52 = vrot.slane %v2613_v41, %v5092_v51 }
 0x4e2   :  { %v4506_v11 = vpack.c.bf16 %v2964_v6, %v2963_v5 }
 0x4e3   :  { %4311 = vmatpush1.bf16.msra.mxu0 %v4310_v15  ;;  %4439 = vmatpush1.bf16.msra.mxu1 %v4438_v16  ;;  %v2941_v15 = vld [vmem:[#allocation17 + $0x90] sm:$0xff]  ;;  %v2942_v16 = vld [vmem:[#allocation17 + $0x98] sm:$0xff] }
 0x4e4   :  { %4313 = vmatprep.subr.bf16.mxu0 %v4312_v18  ;;  %4441 = vmatprep.subr.bf16.mxu1 %v4440_v19  ;;  %v4458_v18 = vpack.c.bf16 %v2924_v47, %v2923_v10  ;;  %v4490_v19 = vpack.c.bf16 %v2956_v14, %v2955_v13  ;;  %v4460_v58 = vpack.c.bf16 %v2942_v16, %v2941_v15  ;;  %v2982_v10 = vld [vmem:[#allocation17 + $0x1d8] sm:$0xff]  ;;  %v2965_v15 = vld [vmem:[#allocation17 + $0x150] sm:$0xff] }
 0x4e5   :  { %v2966_v16 = vld [vmem:[#allocation17 + $0x158] sm:$0xff] }
 0x4e7   :  { %4315 = vmatpush1.bf16.msra.mxu0 %v4314_v25  ;;  %4443 = vmatpush1.bf16.msra.mxu1 %v4442_v26  ;;  %v2943_v25 = vld [vmem:[#allocation17 + $0xa0] sm:$0xff]  ;;  %v2944_v26 = vld [vmem:[#allocation17 + $0xa8] sm:$0xff] }
 0x4e8   :  { %4317 = vmatprep.subr.bf16.mxu0 %v4316_v43  ;;  %4445 = vmatprep.subr.bf16.mxu1 %v4444_v29  ;;  %v4462_v43 = vpack.c.bf16 %v2926_v21, %v2925_v20  ;;  %v4494_v29 = vpack.c.bf16 %v2958_v24, %v2957_v49  ;;  %v4464_v33 = vpack.c.bf16 %v2944_v26, %v2943_v25  ;;  %v2936_v49 = vld [vmem:[#allocation17 + $0x68] sm:$0xff]  ;;  %v2967_v24 = vld [vmem:[#allocation17 + $0x160] sm:$0xff] }
 0x4e9   :  { %v4510_v21 = vpack.c.bf16 %v2966_v16, %v2965_v15  ;;  %v2968_v26 = vld [vmem:[#allocation17 + $0x168] sm:$0xff] }
 0x4ea   :  { %v4514_v27 = vpack.c.bf16 %v2968_v26, %v2967_v24 }
 0x4eb   :  { %4319 = vmatpush1.bf16.msra.mxu0 %v4318_v37  ;;  %4447 = vmatpush1.bf16.msra.mxu1 %v4446_v39  ;;  %v2945_v37 = vld [vmem:[#allocation17 + $0xb0] sm:$0xff]  ;;  %v2946_v39 = vld [vmem:[#allocation17 + $0xb8] sm:$0xff] }
 0x4ec   :  { %4321 = vmatprep.subr.bf16.mxu0 %v4320_v42  ;;  %4449 = vmatprep.subr.bf16.mxu1 %v4448_v44  ;;  %v4466_v42 = vpack.c.bf16 %v2928_v32, %v2927_v30  ;;  %v4498_v44 = vpack.c.bf16 %v2960_v36, %v2959_v35  ;;  %v4468_v53 = vpack.c.bf16 %v2946_v39, %v2945_v37  ;;  %v2986_v32 = vld [vmem:[#allocation17 + $0x1f8] sm:$0xff]  ;;  %v2969_v37 = vld [vmem:[#allocation17 + $0x170] sm:$0xff] }
 0x4ed   :  { %v2970_v39 = vld [vmem:[#allocation17 + $0x178] sm:$0xff] }
 0x4ee   :  { %v4518_v40 = vpack.c.bf16 %v2970_v39, %v2969_v37 }
 0x4ef   :  { %4323 = vmatpush1.bf16.msra.mxu0 %v4322_v57  ;;  %4451 = vmatpush1.bf16.msra.mxu1 %v4450_v59  ;;  %v2947_v57 = vld [vmem:[#allocation17 + $0xc0] sm:$0xff]  ;;  %v2948_v59 = vld [vmem:[#allocation17 + $0xc8] sm:$0xff] }
 0x4f0   :  { %4325 = vmatprep.subr.bf16.mxu0 %v4324_v0  ;;  %4453 = vmatprep.subr.bf16.mxu1 %v4452_v1  ;;  %v4502_v0 = vpack.c.bf16 %v2962_v56, %v2961_v55  ;;  %v2931_v1 = vld [vmem:[#allocation17 + $0x40] sm:$0xff]  ;;  %v4472_v3 = vpack.c.bf16 %v2948_v59, %v2947_v57 }
 0x4f1   :  { %v4474_v47 = vpack.c.bf16 %v2932_v2, %v2931_v1 }
 0x4f3   :  { %4327 = vmatpush1.bf16.msra.mxu0 %v4326_v8  ;;  %4455 = vmatpush1.bf16.msra.mxu1 %v4454_v9  ;;  %v2950_v8 = vld [vmem:[#allocation17 + $0xd8] sm:$0xff]  ;;  %v2981_v9 = vld [vmem:[#allocation17 + $0x1d0] sm:$0xff] }
 0x4f4   :  { %4457 = vmatprep.subr.bf16.mxu0 %v4456_v31  ;;  %4489 = vmatprep.subr.bf16.mxu1 %v4488_v12  ;;  %v2933_v31 = vld [vmem:[#allocation17 + $0x50] sm:$0xff]  ;;  %v2934_v12 = vld [vmem:[#allocation17 + $0x58] sm:$0xff]  ;;  %v4476_v13 = vpack.c.bf16 %v2950_v8, %v2949_v7  ;;  %v4508_v14 = vpack.c.bf16 %v2982_v10, %v2981_v9 }
 0x4f5   :  { %v4478_v20 = vpack.c.bf16 %v2934_v12, %v2933_v31 }
 0x4f6   :  { %2771 = vmatmul.mubr.f32.vlgmr.msra.gmra.mrb[6].mxu0 %v2355_v22  ;;  %2913 = vmatmul.mubr.f32.vlgmr.msra.gmra.mrb[6].mxu1 %v2355_v22  ;;  %v4480_v22 = vpack.c.bf16 %v2952_v38, %v2951_v17 }
 0x4f7   :  { %4459 = vmatpush3.bf16.msra.mxu0 %v4458_v18  ;;  %4491 = vmatpush3.bf16.msra.mxu1 %v4490_v19  ;;  %v2983_v18 = vld [vmem:[#allocation17 + $0x1e0] sm:$0xff]  ;;  %v2984_v19 = vld [vmem:[#allocation17 + $0x1e8] sm:$0xff] }
 0x4f8   :  { %4461 = vmatprep.subr.bf16.mxu0 %v4460_v58  ;;  %4493 = vmatprep.subr.bf16.mxu1 %v4492_v23  ;;  %v4512_v58 = vpack.c.bf16 %v2984_v19, %v2983_v18  ;;  %v2935_v23 = vld [vmem:[#allocation17 + $0x60] sm:$0xff] }
 0x4f9   :  { %v4482_v25 = vpack.c.bf16 %v2936_v49, %v2935_v23 }
 0x4fb   :  { %4463 = vmatpush3.bf16.msra.mxu0 %v4462_v43  ;;  %4495 = vmatpush3.bf16.msra.mxu1 %v4494_v29  ;;  %v2954_v43 = vld [vmem:[#allocation17 + $0xf8] sm:$0xff]  ;;  %v2985_v29 = vld [vmem:[#allocation17 + $0x1f0] sm:$0xff] }
 0x4fc   :  { %4465 = vmatprep.subr.bf16.mxu0 %v4464_v33  ;;  %4497 = vmatprep.subr.bf16.mxu1 %v4496_v34  ;;  %v4484_v30 = vpack.c.bf16 %v2954_v43, %v2953_v28  ;;  %v2937_v33 = vld [vmem:[#allocation17 + $0x70] sm:$0xff]  ;;  %v2938_v34 = vld [vmem:[#allocation17 + $0x78] sm:$0xff]  ;;  %v4516_v35 = vpack.c.bf16 %v2986_v32, %v2985_v29 }
 0x4fd   :  { %v4486_v36 = vpack.c.bf16 %v2938_v34, %v2937_v33 }
 0x4ff   :  { %4467 = vmatpush3.bf16.msra.mxu0 %v4466_v42  ;;  %4499 = vmatpush3.bf16.msra.mxu1 %v4498_v44  ;;  %v2618_v42 = vrot.slane %v2613_v41, %v5084_v48  ;;  %v2626_v44 = vrot.slane %v2613_v41, %v5103_v62  ;;  %v3169_v62 = vld [vmem:[#allocation19] ss:$0 sm:$0xff] }
 0x500   :  { %4469 = vmatprep.subr.bf16.mxu0 %v4468_v53  ;;  %4501 = vmatprep.subr.bf16.mxu1 %v4500_v54 }
 0x503   :  { %4471 = vmatpush3.bf16.msra.mxu0 %v4470_v63  ;;  %4503 = vmatpush3.bf16.msra.mxu1 %v4502_v0 }
 0x504   :  { %4473 = vmatprep.subr.bf16.mxu0 %v4472_v3  ;;  %4505 = vmatprep.subr.bf16.mxu1 %v4504_v4  ;;  %v3135_v4 = vand.u32 127, %v633_v46 }
 0x506   :  { %vm3136_vm0 = vcmp.lt.s32.totalorder %v3135_v4, 10 }
 0x507   :  { %4475 = vmatpush3.bf16.msra.mxu0 %v4474_v47  ;;  %4507 = vmatpush3.bf16.msra.mxu1 %v4506_v11 }
 0x508   :  { %4477 = vmatprep.subr.bf16.mxu0 %v4476_v13  ;;  %4509 = vmatprep.subr.bf16.mxu1 %v4508_v14 }
 0x50b   :  { %4479 = vmatpush3.bf16.msra.mxu0 %v4478_v20  ;;  %4511 = vmatpush3.bf16.msra.mxu1 %v4510_v21 }
 0x50c   :  { %4481 = vmatprep.subr.bf16.mxu0 %v4480_v22  ;;  %4513 = vmatprep.subr.bf16.mxu1 %v4512_v58 }
 0x50f   :  { %4483 = vmatpush3.bf16.msra.mxu0 %v4482_v25  ;;  %4515 = vmatpush3.bf16.msra.mxu1 %v4514_v27 }
 0x510   :  { %4485 = vmatprep.subr.bf16.mxu0 %v4484_v30  ;;  %4517 = vmatprep.subr.bf16.mxu1 %v4516_v35 }
 0x513   :  { %4487 = vmatpush3.bf16.msra.mxu0 %v4486_v36  ;;  %4519 = vmatpush3.bf16.msra.mxu1 %v4518_v40 }
 0x5c9   :  { %v2772_v53 = vpop.f32.mrb[6].mxu0  ;;  %v2914_v54 = vpop.f32.mrb[6].mxu1 }
 0x5ca   :  { %v4532_v55 = vadd.f32 %v2772_v53, %v2618_v42  ;;  %v4534_v56 = vadd.f32 %v2914_v54, %v2626_v44  ;;  %v2774_v57 = vpop.f32.mrb[7].mxu0  ;;  %v2916_v59 = vpop.f32.mrb[7].mxu1 }
 0x5cb   :  { %v4533_v60 = vadd.f32 %v2774_v57, %v2622_v45  ;;  %v4535_v61 = vadd.f32 %v2916_v59, %v2630_v52 }
 0x5cc   :  { %v2919_v1 = vmax.f32 %v4532_v55, 0.0  ;;  %v2921_v2 = vmax.f32 %v4534_v56, 0.0 }
 0x5cd   :  { %v2920_v63 = vmax.f32 %v4533_v60, 0.0  ;;  %v2922_v0 = vmax.f32 %v4535_v61, 0.0 }
 0x5cf   :  { %3058 = vmatprep.mubr.f32.mxu0 %v2920_v63  ;;  %3128 = vmatprep.mubr.f32.mxu1 %v2922_v0 }
 0x5d0   :  { %3059 = vmatmul.mubr.f32.vlgmr.msra.gmra.mrb[8].mxu0 %v2919_v1  ;;  %3129 = vmatmul.mubr.f32.vlgmr.msra.gmra.mrb[8].mxu1 %v2921_v2 }
 0x6a3   :  { %v3202_v48 = vpop.f32.mrb[8].mxu0  ;;  %v3237_v50 = vpop.f32.mrb[8].mxu1 }
 0x6a4   :  { %v3203_v51 = vpop.f32.mrb[9].mxu0  ;;  %v3238_v3 = vpop.f32.mrb[9].mxu1 }
 0x6a5   :  { %v3204_v5 = vadd.f32 %v3203_v51, %v3202_v48  ;;  %v3239_v6 = vadd.f32 %v3238_v3, %v3237_v50 }
 0x6a7   :  { %v3061_v7 = vadd.f32 %v3204_v5, %v3169_v62 }
 0x6a9   :  { %v3131_v8 = vadd.f32 %v3239_v6, %v3061_v7 }
 0x6ab   :  { %v3137_v9 = vsel %vm3136_vm0, %v3131_v8, -1e+30 }
 0x6ac   :  { %3138 = vmax.xlane.f32.xlu0 %v3137_v9 }
 0x739   :  { %v3139_v10 = vpop.xlane.xlu0 %3138 }
 0x73a   :  { %v3140_v47 = vsub.f32 %v3137_v9, %v3139_v10 }
 0x73c   :  { %v3141_v11 = vmul.f32 1.442695, %v3140_v47 }
 0x73e   :  { %4577 = vpow2.f32 %v3141_v11 }
 0x748   :  { %v4578_v31 = vpop.eup %4577 }
 0x749   :  { %3143 = vadd.xlane.f32.xlu0 %v4578_v31 }
 0x7d6   :  { %v3144_v12 = vpop.xlane.xlu0 %3143 }
 0x7d7   :  { %4579 = vlog2.f32 %v3144_v12 }
 0x7e1   :  { %v4580_v13 = vpop.eup %4579 }
 0x7e2   :  { %v3146_v14 = vmul.f32 0.6931472, %v4580_v13 }
 0x7e4   :  { %v3147_v46 = vsub.f32 %v3140_v47, %v3146_v14 }
 0x7e6   :  { %3148 = vst [vmem:[#allocation20] sm:$0xff] %v3147_v46 }
 0x7e7   :  { %4834 = shalt.err (!%p4831_p8)
}
 0x7e8   :  { %s4835_s27 = scalar_lea.hbm %s5162_s11, 128 }
 0x7e9   :  { %p4836_p9 = scmp.ne.s32.totalorder %s5162_s11, %s4835_s27  ;;  %p4839_p10 = scmp.lt.u32.totalorder %s4835_s27, %s5162_s11 }
 0x7eb   :  { %p4841_p11 = pnand %p4839_p10, %p4836_p9 }
 0x7ed   :  { %4844 = shalt.err (!%p4841_p11)
}
 0x7ee   :  { %3158 = dma.vmem_to_hbm [thread:$0]  %s3156_s19, 128, %s5162_s11, [#allocation4]  }
 0x7ef   :  { %4857 = dma.done.wait [#allocation4], 128  }
 0x7f0   :  { %4858 = vsyncadd [#allocation4], 4294967168 }
 0x7f1   :  { %3162 = vsyncpa [#allocation3], 1 }
 0x7f2   :  { %3163 = vsyncpa [#allocation6], 1 }
 0x7f3   :  { %3164 = vsyncpa [#allocation9], 1 }
 0x7f4   :  { %3165 = vsyncpa [#allocation12], 1 }
 0x7f5   :  { %3166 = vsyncpa [#allocation15], 1 }
 0x7f6   :  { %3167 = vsyncpa [#allocation18], 1 }
 0x7f7   :  { %3168 = vsyncpa [#allocation4], 1 }

</bundles_post_ra>
